<compile_context>
chip_gen: v7x
topology: tpu7x:2x2x1
jax: 0.10.0
libtpu: 0.0.40
codegen_flags: <defaults>
</compile_context>

<pallas_src>
import functools

import jax
import jax.numpy as jnp
from jax.experimental import pallas as pl
from jax.experimental.pallas import tpu as pltpu

N_NODES = 161  # hard-coded by the module (fc1 = Linear(161 * hidden_dim, ...))


# ----------------------------------------------------------------------------
# Fused GCN kernel: per graph g in the block,
#   a_hat = adj * sim                                (computed once)
#   gcn1  = relu((a_hat @ feat) @ W1)                (reassociated, Cin < H)
#   gcn2  = relu(a_hat @ (gcn1 @ W2))
# gcn1 / a_hat never leave VMEM; only gcn2 is written back.
# ----------------------------------------------------------------------------
def _fused_gcn_kernel(adj_ref, sim_ref, feat_ref, w1_ref, w2_ref, out_ref, *, bt):
    w1 = w1_ref[...]                                     # (Cin, H)   resident
    w2 = w2_ref[...]                                     # (H, H)     resident
    for g in range(bt):                                  # static unroll, bt <= 4
        a_hat = adj_ref[g] * sim_ref[g]                  # (N, N)
        af = jnp.dot(a_hat, feat_ref[g],
                     preferred_element_type=jnp.float32)         # (N, Cin)
        g1 = jnp.maximum(
            jnp.dot(af, w1, preferred_element_type=jnp.float32), 0.0)   # (N, H)
        s2 = jnp.dot(g1, w2, preferred_element_type=jnp.float32)        # (N, H)
        g2 = jnp.maximum(
            jnp.dot(a_hat, s2, preferred_element_type=jnp.float32), 0.0)  # (N, H)
        out_ref[g] = g2


def _pick_graphs_per_step(batch, cap=4):
    """Largest divisor of `batch` <= cap that still leaves >=2 grid steps."""
    if batch <= 1:
        return 1
    best = 1
    for bt in range(1, min(cap, batch) + 1):
        if batch % bt == 0 and batch // bt >= 2:
            best = bt
    return best


def fused_gcn(adj, sim, feat, w1, w2):
    B, N, _ = adj.shape
    Cin = feat.shape[2]
    H = w2.shape[1]
    bt = _pick_graphs_per_step(B)
    grid = (B // bt,)

    flops = B * (N * N                       # a_hat elementwise
                 + 2 * N * N * Cin           # a_hat @ feat
                 + 2 * N * Cin * H           # (.) @ W1
                 + 2 * N * H * H             # gcn1 @ W2
                 + 2 * N * N * H)            # a_hat @ (.)
    bytes_accessed = 4 * (B * (2 * N * N + N * Cin + N * H) + Cin * H + H * H)

    return pl.pallas_call(
        functools.partial(_fused_gcn_kernel, bt=bt),
        out_shape=jax.ShapeDtypeStruct((B, N, H), jnp.float32),
        grid=grid,
        in_specs=[
            pl.BlockSpec((bt, N, N), lambda b: (b, 0, 0)),
            pl.BlockSpec((bt, N, N), lambda b: (b, 0, 0)),
            pl.BlockSpec((bt, N, Cin), lambda b: (b, 0, 0)),
            pl.BlockSpec((Cin, H), lambda b: (0, 0)),     # resident weights
            pl.BlockSpec((H, H), lambda b: (0, 0)),       # resident weights
        ],
        out_specs=pl.BlockSpec((bt, N, H), lambda b: (b, 0, 0)),
        compiler_params=pltpu.CompilerParams(dimension_semantics=("parallel",)),
        cost_estimate=pl.CostEstimate(flops=flops, transcendentals=0,
                                      bytes_accessed=bytes_accessed),
    )(adj, sim, feat, w1, w2)


# ----------------------------------------------------------------------------
# MLP head kernel: relu(x@W1+b1) -> relu(@W2+b2) -> @W3+b3
# Batched over grid so v7x can shard rows; weights resident (constant index_map).
# ----------------------------------------------------------------------------
def _mlp_kernel(x_ref, w1_ref, b1_ref, w2_ref, b2_ref, w3_ref, b3_ref, out_ref):
    x = x_ref[...]
    h1 = jnp.maximum(
        jnp.dot(x, w1_ref[...], preferred_element_type=jnp.float32) + b1_ref[...], 0.0)
    h2 = jnp.maximum(
        jnp.dot(h1, w2_ref[...], preferred_element_type=jnp.float32) + b2_ref[...], 0.0)
    out_ref[...] = (
        jnp.dot(h2, w3_ref[...], preferred_element_type=jnp.float32) + b3_ref[...])


def _pick_row_tile(batch):
    for d in (256, 128, 64, 32, 16, 8):
        if batch % d == 0:
            return d
    return batch  # small / odd batches: single block (full-dim block is always legal)


def mlp_head(x, w1, b1, w2, b2, w3, b3):
    B, F = x.shape
    F1, F2, C = w1.shape[1], w2.shape[1], w3.shape[1]
    bm = _pick_row_tile(B)
    grid = (B // bm,)

    flops = 2 * B * (F * F1 + F1 * F2 + F2 * C)
    bytes_accessed = 4 * (B * F + F * F1 + F1 * F2 + F2 * C + B * C + F1 + F2 + C)

    return pl.pallas_call(
        _mlp_kernel,
        out_shape=jax.ShapeDtypeStruct((B, C), jnp.float32),
        grid=grid,
        in_specs=[
            pl.BlockSpec((bm, F), lambda i: (i, 0)),
            pl.BlockSpec((F, F1), lambda i: (0, 0)),
            pl.BlockSpec((1, F1), lambda i: (0, 0)),
            pl.BlockSpec((F1, F2), lambda i: (0, 0)),
            pl.BlockSpec((1, F2), lambda i: (0, 0)),
            pl.BlockSpec((F2, C), lambda i: (0, 0)),
            pl.BlockSpec((1, C), lambda i: (0, 0)),
        ],
        out_specs=pl.BlockSpec((bm, C), lambda i: (i, 0)),
        compiler_params=pltpu.CompilerParams(dimension_semantics=("parallel",)),
        cost_estimate=pl.CostEstimate(flops=flops, transcendentals=0,
                                      bytes_accessed=bytes_accessed),
    )(x, w1, b1, w2, b2, w3, b3)


# ----------------------------------------------------------------------------
# Full GCN forward
# ----------------------------------------------------------------------------
def init_params(key, input_dim, hidden_dim, num_classes=2):
    ks = jax.random.split(key, 8)
    scale = 0.1
    return {
        "gc1_w": scale * jax.random.normal(ks[0], (input_dim, hidden_dim), jnp.float32),
        "gc2_w": scale * jax.random.normal(ks[1], (hidden_dim, hidden_dim), jnp.float32),
        "fc1_w": scale * jax.random.normal(ks[2], (N_NODES * hidden_dim, hidden_dim // 2), jnp.float32),
        "fc1_b": scale * jax.random.normal(ks[3], (1, hidden_dim // 2), jnp.float32),
        "fc2_w": scale * jax.random.normal(ks[4], (hidden_dim // 2, hidden_dim // 4), jnp.float32),
        "fc2_b": scale * jax.random.normal(ks[5], (1, hidden_dim // 4), jnp.float32),
        "fc3_w": scale * jax.random.normal(ks[6], (hidden_dim // 4, num_classes), jnp.float32),
        "fc3_b": scale * jax.random.normal(ks[7], (1, num_classes), jnp.float32),
    }


@jax.jit
def gcn_forward(params, adjacency, input_feature, similarity):
    # Both GraphConvolution layers fused: a_hat computed once, gcn1 stays in VMEM.
    gcn2 = fused_gcn(adjacency, similarity, input_feature,
                     params["gc1_w"], params["gc2_w"])            # (B, N, H), relu fused
    # Flatten node-major / channel-minor, matching torch .reshape(-1, 161*H).
    gc2_rl = gcn2.reshape(gcn2.shape[0], N_NODES * gcn2.shape[2])  # (B, 161*H)
    logits = mlp_head(gc2_rl,
                      params["fc1_w"], params["fc1_b"],
                      params["fc2_w"], params["fc2_b"],
                      params["fc3_w"], params["fc3_b"])
    return logits


if __name__ == "__main__":
    B = 2
    input_dim = 8
    hidden_dim = 32
    num_classes = 2

    key = jax.random.PRNGKey(0)
    k_adj, k_feat, k_sim, k_par = jax.random.split(key, 4)

    adjacency = jax.random.uniform(k_adj, (B, N_NODES, N_NODES), jnp.float32)
    input_feature = jax.random.normal(k_feat, (B, N_NODES, input_dim), jnp.float32)
    similarity = jax.random.uniform(k_sim, (B, N_NODES, N_NODES), jnp.float32)

    params = init_params(k_par, input_dim, hidden_dim, num_classes)

    logits = gcn_forward(params, adjacency, input_feature, similarity)
    jax.block_until_ready(logits)
    assert logits.shape == (B, num_classes), logits.shape
    print("KERNEL_OK")
</pallas_src>

<mosaic_0001>
module attributes {stable_mosaic.version = 11 : i64} {
  func.func @_mlp_kernel(%arg0: i32, %arg1: memref<2x5152xf32, #tpu.memory_space<vmem>>, %arg2: memref<5152x16xf32, #tpu.memory_space<vmem>>, %arg3: memref<1x16xf32, #tpu.memory_space<vmem>>, %arg4: memref<16x8xf32, #tpu.memory_space<vmem>>, %arg5: memref<1x8xf32, #tpu.memory_space<vmem>>, %arg6: memref<8x2xf32, #tpu.memory_space<vmem>>, %arg7: memref<1x2xf32, #tpu.memory_space<vmem>>, %arg8: memref<2x2xf32, #tpu.memory_space<vmem>>) attributes {dimension_semantics = [#tpu.dimension_semantics<parallel>], iteration_bounds = array<i64: 1>, scalar_prefetch = 0 : i64, scratch_operands = 0 : i64, tpu.core_type = #tpu.core_type<tc>, window_params = [{transform_indices = @transform_0, window_bounds = array<i64: 2, 5152>}, {pipeline_mode = #tpu.pipeline_mode<synchronous>, transform_indices = @transform_1, window_bounds = array<i64: 5152, 16>}, {pipeline_mode = #tpu.pipeline_mode<synchronous>, transform_indices = @transform_2, window_bounds = array<i64: 1, 16>}, {pipeline_mode = #tpu.pipeline_mode<synchronous>, transform_indices = @transform_3, window_bounds = array<i64: 16, 8>}, {pipeline_mode = #tpu.pipeline_mode<synchronous>, transform_indices = @transform_4, window_bounds = array<i64: 1, 8>}, {pipeline_mode = #tpu.pipeline_mode<synchronous>, transform_indices = @transform_5, window_bounds = array<i64: 8, 2>}, {pipeline_mode = #tpu.pipeline_mode<synchronous>, transform_indices = @transform_6, window_bounds = array<i64: 1, 2>}, {transform_indices = @transform_7, window_bounds = array<i64: 2, 2>}]} {
    %c0 = arith.constant 0 : index
    %c0_0 = arith.constant 0 : index
    %0 = vector.load %arg1[%c0, %c0_0] : memref<2x5152xf32, #tpu.memory_space<vmem>>, vector<2x5152xf32>
    %c0_1 = arith.constant 0 : index
    %c0_2 = arith.constant 0 : index
    %1 = vector.load %arg2[%c0_1, %c0_2] : memref<5152x16xf32, #tpu.memory_space<vmem>>, vector<5152x16xf32>
    %cst = arith.constant dense<0.000000e+00> : vector<2x16xf32>
    %2 = tpu.matmul %0, %1, %cst {dimension_numbers = #tpu.dot_dimension_numbers<[1], [0], [0], [1], [0, 0, 1, 1], [], []>} : vector<2x5152xf32>, vector<5152x16xf32>, vector<2x16xf32> -> vector<2x16xf32>
    %c0_3 = arith.constant 0 : index
    %c0_4 = arith.constant 0 : index
    %3 = vector.load %arg3[%c0_3, %c0_4] : memref<1x16xf32, #tpu.memory_space<vmem>>, vector<1x16xf32>
    %4 = vector.broadcast %3 : vector<1x16xf32> to vector<2x16xf32>
    %5 = arith.addf %2, %4 : vector<2x16xf32>
    %cst_5 = arith.constant 0.000000e+00 : f32
    %6 = vector.broadcast %cst_5 : f32 to vector<2x16xf32>
    %7 = arith.maximumf %5, %6 : vector<2x16xf32>
    %c0_6 = arith.constant 0 : index
    %c0_7 = arith.constant 0 : index
    %8 = vector.load %arg4[%c0_6, %c0_7] : memref<16x8xf32, #tpu.memory_space<vmem>>, vector<16x8xf32>
    %cst_8 = arith.constant dense<0.000000e+00> : vector<2x8xf32>
    %9 = tpu.matmul %7, %8, %cst_8 {dimension_numbers = #tpu.dot_dimension_numbers<[1], [0], [0], [1], [0, 0, 1, 1], [], []>} : vector<2x16xf32>, vector<16x8xf32>, vector<2x8xf32> -> vector<2x8xf32>
    %c0_9 = arith.constant 0 : index
    %c0_10 = arith.constant 0 : index
    %10 = vector.load %arg5[%c0_9, %c0_10] : memref<1x8xf32, #tpu.memory_space<vmem>>, vector<1x8xf32>
    %11 = vector.broadcast %10 : vector<1x8xf32> to vector<2x8xf32>
    %12 = arith.addf %9, %11 : vector<2x8xf32>
    %cst_11 = arith.constant 0.000000e+00 : f32
    %13 = vector.broadcast %cst_11 : f32 to vector<2x8xf32>
    %14 = arith.maximumf %12, %13 : vector<2x8xf32>
    %c0_12 = arith.constant 0 : index
    %c0_13 = arith.constant 0 : index
    %15 = vector.load %arg6[%c0_12, %c0_13] : memref<8x2xf32, #tpu.memory_space<vmem>>, vector<8x2xf32>
    %cst_14 = arith.constant dense<0.000000e+00> : vector<2x2xf32>
    %16 = tpu.matmul %14, %15, %cst_14 {dimension_numbers = #tpu.dot_dimension_numbers<[1], [0], [0], [1], [0, 0, 1, 1], [], []>} : vector<2x8xf32>, vector<8x2xf32>, vector<2x2xf32> -> vector<2x2xf32>
    %c0_15 = arith.constant 0 : index
    %c0_16 = arith.constant 0 : index
    %17 = vector.load %arg7[%c0_15, %c0_16] : memref<1x2xf32, #tpu.memory_space<vmem>>, vector<1x2xf32>
    %18 = vector.broadcast %17 : vector<1x2xf32> to vector<2x2xf32>
    %19 = arith.addf %16, %18 : vector<2x2xf32>
    %c0_17 = arith.constant 0 : index
    %c0_18 = arith.constant 0 : index
    %20 = vector.load %arg8[%c0_17, %c0_18] : memref<2x2xf32, #tpu.memory_space<vmem>>, vector<2x2xf32>
    tpu.vector_store %arg8[%c0_17, %c0_18], %19 {strides = array<i32>} : memref<2x2xf32, #tpu.memory_space<vmem>>, vector<2x2xf32>,
    return
  }
  func.func @transform_0(%arg0: i32) -> (i32, i32) {
    %c0_i32 = arith.constant 0 : i32
    %c0_i32_0 = arith.constant 0 : i32
    return %arg0, %c0_i32 : i32, i32
  }
  func.func @transform_1(%arg0: i32) -> (i32, i32) {
    %c0_i32 = arith.constant 0 : i32
    %c0_i32_0 = arith.constant 0 : i32
    %c0_i32_1 = arith.constant 0 : i32
    return %c0_i32, %c0_i32_0 : i32, i32
  }
  func.func @transform_2(%arg0: i32) -> (i32, i32) {
    %c0_i32 = arith.constant 0 : i32
    %c0_i32_0 = arith.constant 0 : i32
    %c0_i32_1 = arith.constant 0 : i32
    return %c0_i32, %c0_i32_0 : i32, i32
  }
  func.func @transform_3(%arg0: i32) -> (i32, i32) {
    %c0_i32 = arith.constant 0 : i32
    %c0_i32_0 = arith.constant 0 : i32
    %c0_i32_1 = arith.constant 0 : i32
    return %c0_i32, %c0_i32_0 : i32, i32
  }
  func.func @transform_4(%arg0: i32) -> (i32, i32) {
    %c0_i32 = arith.constant 0 : i32
    %c0_i32_0 = arith.constant 0 : i32
    %c0_i32_1 = arith.constant 0 : i32
    return %c0_i32, %c0_i32_0 : i32, i32
  }
  func.func @transform_5(%arg0: i32) -> (i32, i32) {
    %c0_i32 = arith.constant 0 : i32
    %c0_i32_0 = arith.constant 0 : i32
    %c0_i32_1 = arith.constant 0 : i32
    return %c0_i32, %c0_i32_0 : i32, i32
  }
  func.func @transform_6(%arg0: i32) -> (i32, i32) {
    %c0_i32 = arith.constant 0 : i32
    %c0_i32_0 = arith.constant 0 : i32
    %c0_i32_1 = arith.constant 0 : i32
    return %c0_i32, %c0_i32_0 : i32, i32
  }
  func.func @transform_7(%arg0: i32) -> (i32, i32) {
    %c0_i32 = arith.constant 0 : i32
    %c0_i32_0 = arith.constant 0 : i32
    return %arg0, %c0_i32 : i32, i32
  }
}

module attributes {stable_mosaic.version = 11 : i64} {
  func.func @_fused_gcn_kernel(%arg0: i32, %arg1: memref<1x161x161xf32, #tpu.memory_space<vmem>>, %arg2: memref<1x161x161xf32, #tpu.memory_space<vmem>>, %arg3: memref<1x161x8xf32, #tpu.memory_space<vmem>>, %arg4: memref<8x32xf32, #tpu.memory_space<vmem>>, %arg5: memref<32x32xf32, #tpu.memory_space<vmem>>, %arg6: memref<1x161x32xf32, #tpu.memory_space<vmem>>) attributes {dimension_semantics = [#tpu.dimension_semantics<parallel>], iteration_bounds = array<i64: 2>, scalar_prefetch = 0 : i64, scratch_operands = 0 : i64, tpu.core_type = #tpu.core_type<tc>, window_params = [{transform_indices = @transform_0, window_bounds = array<i64: 1, 161, 161>}, {transform_indices = @transform_1, window_bounds = array<i64: 1, 161, 161>}, {transform_indices = @transform_2, window_bounds = array<i64: 1, 161, 8>}, {pipeline_mode = #tpu.pipeline_mode<synchronous>, transform_indices = @transform_3, window_bounds = array<i64: 8, 32>}, {pipeline_mode = #tpu.pipeline_mode<synchronous>, transform_indices = @transform_4, window_bounds = array<i64: 32, 32>}, {transform_indices = @transform_5, window_bounds = array<i64: 1, 161, 32>}]} {
    %c0 = arith.constant 0 : index
    %c0_0 = arith.constant 0 : index
    %0 = vector.load %arg4[%c0, %c0_0] : memref<8x32xf32, #tpu.memory_space<vmem>>, vector<8x32xf32>
    %c0_1 = arith.constant 0 : index
    %c0_2 = arith.constant 0 : index
    %1 = vector.load %arg5[%c0_1, %c0_2] : memref<32x32xf32, #tpu.memory_space<vmem>>, vector<32x32xf32>
    %c0_3 = arith.constant 0 : index
    %c0_4 = arith.constant 0 : index
    %c0_5 = arith.constant 0 : index
    %2 = vector.load %arg1[%c0_3, %c0_4, %c0_5] : memref<1x161x161xf32, #tpu.memory_space<vmem>>, vector<1x161x161xf32>
    %3 = vector.shape_cast %2 : vector<1x161x161xf32> to vector<161x161xf32>
    %c0_6 = arith.constant 0 : index
    %c0_7 = arith.constant 0 : index
    %c0_8 = arith.constant 0 : index
    %4 = vector.load %arg2[%c0_6, %c0_7, %c0_8] : memref<1x161x161xf32, #tpu.memory_space<vmem>>, vector<1x161x161xf32>
    %5 = vector.shape_cast %4 : vector<1x161x161xf32> to vector<161x161xf32>
    %6 = arith.mulf %3, %5 : vector<161x161xf32>
    %c0_9 = arith.constant 0 : index
    %c0_10 = arith.constant 0 : index
    %c0_11 = arith.constant 0 : index
    %7 = vector.load %arg3[%c0_9, %c0_10, %c0_11] : memref<1x161x8xf32, #tpu.memory_space<vmem>>, vector<1x161x8xf32>
    %8 = vector.shape_cast %7 : vector<1x161x8xf32> to vector<161x8xf32>
    %cst = arith.constant dense<0.000000e+00> : vector<161x8xf32>
    %9 = tpu.matmul %6, %8, %cst {dimension_numbers = #tpu.dot_dimension_numbers<[1], [0], [0], [1], [0, 0, 1, 1], [], []>} : vector<161x161xf32>, vector<161x8xf32>, vector<161x8xf32> -> vector<161x8xf32>
    %cst_12 = arith.constant dense<0.000000e+00> : vector<161x32xf32>
    %10 = tpu.matmul %9, %0, %cst_12 {dimension_numbers = #tpu.dot_dimension_numbers<[1], [0], [0], [1], [0, 0, 1, 1], [], []>} : vector<161x8xf32>, vector<8x32xf32>, vector<161x32xf32> -> vector<161x32xf32>
    %cst_13 = arith.constant 0.000000e+00 : f32
    %11 = vector.broadcast %cst_13 : f32 to vector<161x32xf32>
    %12 = arith.maximumf %10, %11 : vector<161x32xf32>
    %cst_14 = arith.constant dense<0.000000e+00> : vector<161x32xf32>
    %13 = tpu.matmul %12, %1, %cst_14 {dimension_numbers = #tpu.dot_dimension_numbers<[1], [0], [0], [1], [0, 0, 1, 1], [], []>} : vector<161x32xf32>, vector<32x32xf32>, vector<161x32xf32> -> vector<161x32xf32>
    %cst_15 = arith.constant dense<0.000000e+00> : vector<161x32xf32>
    %14 = tpu.matmul %6, %13, %cst_15 {dimension_numbers = #tpu.dot_dimension_numbers<[1], [0], [0], [1], [0, 0, 1, 1], [], []>} : vector<161x161xf32>, vector<161x32xf32>, vector<161x32xf32> -> vector<161x32xf32>
    %cst_16 = arith.constant 0.000000e+00 : f32
    %15 = vector.broadcast %cst_16 : f32 to vector<161x32xf32>
    %16 = arith.maximumf %14, %15 : vector<161x32xf32>
    %c0_17 = arith.constant 0 : index
    %c0_18 = arith.constant 0 : index
    %c0_19 = arith.constant 0 : index
    %17 = vector.load %arg6[%c0_17, %c0_18, %c0_19] : memref<1x161x32xf32, #tpu.memory_space<vmem>>, vector<1x161x32xf32>
    %18 = vector.shape_cast %17 : vector<1x161x32xf32> to vector<161x32xf32>
    %19 = vector.shape_cast %16 : vector<161x32xf32> to vector<1x161x32xf32>
    tpu.vector_store %arg6[%c0_17, %c0_18, %c0_19], %19 {strides = array<i32>} : memref<1x161x32xf32, #tpu.memory_space<vmem>>, vector<1x161x32xf32>,
    return
  }
  func.func @transform_0(%arg0: i32) -> (i32, i32, i32) {
    %c0_i32 = arith.constant 0 : i32
    %c0_i32_0 = arith.constant 0 : i32
    %c0_i32_1 = arith.constant 0 : i32
    return %arg0, %c0_i32, %c0_i32_0 : i32, i32, i32
  }
  func.func @transform_1(%arg0: i32) -> (i32, i32, i32) {
    %c0_i32 = arith.constant 0 : i32
    %c0_i32_0 = arith.constant 0 : i32
    %c0_i32_1 = arith.constant 0 : i32
    return %arg0, %c0_i32, %c0_i32_0 : i32, i32, i32
  }
  func.func @transform_2(%arg0: i32) -> (i32, i32, i32) {
    %c0_i32 = arith.constant 0 : i32
    %c0_i32_0 = arith.constant 0 : i32
    %c0_i32_1 = arith.constant 0 : i32
    return %arg0, %c0_i32, %c0_i32_0 : i32, i32, i32
  }
  func.func @transform_3(%arg0: i32) -> (i32, i32) {
    %c0_i32 = arith.constant 0 : i32
    %c0_i32_0 = arith.constant 0 : i32
    %c0_i32_1 = arith.constant 0 : i32
    return %c0_i32, %c0_i32_0 : i32, i32
  }
  func.func @transform_4(%arg0: i32) -> (i32, i32) {
    %c0_i32 = arith.constant 0 : i32
    %c0_i32_0 = arith.constant 0 : i32
    %c0_i32_1 = arith.constant 0 : i32
    return %c0_i32, %c0_i32_0 : i32, i32
  }
  func.func @transform_5(%arg0: i32) -> (i32, i32, i32) {
    %c0_i32 = arith.constant 0 : i32
    %c0_i32_0 = arith.constant 0 : i32
    %c0_i32_1 = arith.constant 0 : i32
    return %arg0, %c0_i32, %c0_i32_0 : i32, i32, i32
  }
}

</mosaic_0001>

<bundles_post_ra>
// kernel: gcn_forward.2
= control target key start
LH: loop header
LB: loop body
LE: loop exit
PB: predicated region body
PF: predicated region fallthrough
CT: control target
= control target key end

     0   :  { %10 = vsyncpa [#allocation3], 0  ;;  %s2642_s0 = inlined_call_operand.vmem [shape: f32[2,161,161], index: 0, kind: input, shape index: {}]   ;;  %s2643_s1 = inlined_call_operand.vmem [shape: f32[2,161,161], index: 1, kind: input, shape index: {}]   ;;  %s2644_s2 = inlined_call_operand.vmem [shape: f32[2,161,8], index: 2, kind: input, shape index: {}]   ;;  %s2645_s3 = inlined_call_operand.hbm [shape: f32[8,32], index: 3, kind: input, shape index: {}]   ;;  %s2646_s4 = inlined_call_operand.hbm [shape: f32[32,32], index: 4, kind: input, shape index: {}]   ;;  %s2647_s5 = inlined_call_operand.vmem [shape: f32[2,161,32], index: 5, kind: output, shape index: {}]  }
   0x1   :  { %11 = vsyncpa [#allocation5], 0  ;;  %s2006_s18 = smov 0  }
   0x2 LB: > { %s2012_s19 = sadd.s32 4294967295, %s1967_s18   ;;  %p1491_p0 = scmp.ge.s32.totalorder %s1967_s18, 1  ;;  %s1967_s18 = sphi %s2006_s18, %s17_s18  }
   0x3   : > { %p168_p1 = scmp.lt.s32.totalorder %s1967_s18, 3  ;;  %p2648_p2 = scmp.eq.s32.totalorder %s2012_s19, 0 }
   0x4   : > { %s1969_s20 = smov [#allocation2]   ;;  %s1970_s23 = smov [#allocation4]  }
   0x5   : > { %s181_s21 = sshll.u32 %s1969_s20, 4  ;;  %p2017_p3 = pnand %p1491_p0, %p168_p1  ;;  %s182_s21 = int_to_ptr.vmem [resolvable:$true] %s181_s21 }
   0x6   : > { %s191_s24 = sshll.u32 %s1970_s23, 4  ;;  %s1897_s28 = scalar_lea.hbm %s2645_s3, 128  ;;  %s2029_s24 = int_to_ptr.vmem [resolvable:$true] %s191_s24 }
   0x7   : > { %s2650_s22 = scalar_select %p2017_p3, 1, 0 }
   0x8   : > { %p1871_p4 = pneg %p2017_p3  ;;  %p1898_p6 = scmp.ne.s32.totalorder %s2645_s3, %s1897_s28 }
   0x9   : > { %p1904_p10 = scmp.lt.u32.totalorder %s1897_s28, %s2645_s3 }
   0xa   : > { %p2025_p5 = pnand %p2648_p2, %p1871_p4 }
   0xc   : > { %p1899_p7 = pneg %p2025_p5 }
   0xe   : > { %p1900_p8 = pnand %p1899_p7, %p1898_p6 }
  0x10   : > { %p1901_p9 = pneg %p1900_p8 }
  0x12   : > { %p1906_p11 = pnand %p1904_p10, %p1901_p9 }
  0x14   : > { %1909 = shalt.err (!%p1906_p11)
}
  0x15   : > { %s1910_s8 = scalar_lea.vmem %s182_s21, 128  ;;  %p1918_p1 = scmp.lt.s32.totalorder %s182_s21, %s182_s21 }
  0x16   : > { %p1911_p12 = scmp.ne.s32.totalorder %s182_s21, %s1910_s8  ;;  %p1919_p4 = scmp.lt.s32.totalorder %s1910_s8, %s1910_s8 }
  0x18   : > { %p1913_p13 = pnand %p1911_p12, %p1899_p7  ;;  %p1920_p2 = por %p1919_p4, %p1918_p1 }
  0x1a   : > { %p1914_p0 = pneg %p1913_p13 }
  0x1c   : > { %p1921_p3 = pnand %p1920_p2, %p1914_p0 }
  0x1e   : > { %1924 = shalt.err (!%p1921_p3)
}
  0x1f   : > { %1874 = dma.hbm_to_vmem [thread:$0]  (!%p2025_p5), %s2645_s3, 128, %s182_s21, [#allocation3]  }
  0x20   : > { %s1925_s13 = scalar_lea.hbm %s2646_s4, 512 }
  0x21   : > { %p1926_p6 = scmp.ne.s32.totalorder %s2646_s4, %s1925_s13  ;;  %p1932_p3 = scmp.lt.u32.totalorder %s1925_s13, %s2646_s4 }
  0x23   : > { %p1928_p8 = pnand %p1926_p6, %p1899_p7 }
  0x25   : > { %p1929_p2 = pneg %p1928_p8 }
  0x27   : > { %p1934_p9 = pnand %p1932_p3, %p1929_p2 }
  0x29   : > { %1937 = shalt.err (!%p1934_p9)
}
  0x2a   : > { %s1938_s20 = scalar_lea.vmem %s2029_s24, 512  ;;  %p1946_p13 = scmp.lt.s32.totalorder %s2029_s24, %s2029_s24 }
  0x2b   : > { %p1939_p10 = scmp.ne.s32.totalorder %s2029_s24, %s1938_s20  ;;  %p1947_p0 = scmp.lt.s32.totalorder %s1938_s20, %s1938_s20 }
  0x2d   : > { %p1941_p11 = pnand %p1939_p10, %p1899_p7  ;;  %p1948_p1 = por %p1947_p0, %p1946_p13 }
  0x2f   : > { %p1942_p12 = pneg %p1941_p11 }
  0x31   : > { %p1949_p4 = pnand %p1948_p1, %p1942_p12 }
  0x33   : > { %1952 = shalt.err (!%p1949_p4)
}
  0x34   : > { %s1971_s21 = smov 128   ;;  %s1972_s23 = smov 8  }
  0x35   : > { %1877 = dma.hbm_to_vmem [thread:$0]  (!%p2025_p5), %s2646_s4, 512, %s2029_s24, [#allocation5], %s1971_s21, %s1971_s21, %s1972_s23  }
  0x36   : > { %p2652_p6 = scmp.ne.s32.totalorder %s2650_s22, 0 }
  0x37   : > { %p2653_p7 = scmp.eq.s32.totalorder (!%p2652_p6), %s2012_s19, 0 }
  0x38   : > { %231 = sbr.rel (%p2652_p6) target bundleno = 1115 (0x45b), region = 40 }
  0x3f   : > { %1958 = dma.done.wait (%p2653_p7), [#allocation3], 128   ;;  %p2654_p8 = pmov %p2653_p7 }
  0x40   : > { %p2655_p2 = pmov %p2653_p7 }
  0x41   : > { %1960 = vsyncadd (%p2654_p8), [#allocation3], 4294967168 }
  0x42   : > { %1962 = dma.done.wait (%p2655_p2), [#allocation5], 512   ;;  %p2656_p3 = pmov %p2655_p2 }
  0x43   : > { %p273_p9 = scmp.lt.s32.totalorder %s2012_s19, 1  ;;  %v1973_v0 = vmov 0.0|0.0   ;;  %v1974_v1 = vmov 0.0   ;;  %vm445_vm0 = vcmask 269312   ;;  %vm509_vm1 = vcmask 1040384  }
  0x44   : > { %1964 = vsyncadd (%p2656_p3), [#allocation5], 4294966784  ;;  %1773 = vmatprep.subr.bf16.mxu0 %v1973_v0  ;;  %1637 = vmatprep.subr.mxu1 %v1974_v1  ;;  %vm1975_vm2 = vmmov 0   ;;  %vm683_vm3 = vcmask 64512   ;;  %vm938_vm4 = vcmask 261120   ;;  %vm1386_vm5 = vcmask 253952  }
  0x45   : > { %s2658_s19 = smov (!%p273_p9, %s2012_s19), 1  ;;  %1639 = vmatprep.mubr.msk.f32.mxu1 %vm1975_vm2, %v1974_v1 }
  0x46   : > { %s1861_s22 = smul.u32 336, %s2658_s19 }
  0x47   : > { %s1862_s24 = smul.u32 168, %s2658_s19 }
  0x48   : > { %s2099_s29 = scalar_lea.vmem %s2642_s0, %s1861_s22  ;;  %s2104_s7 = scalar_lea.vmem %s2643_s1, %s1861_s22 }
  0x49   : > { %s2111_s10 = scalar_lea.vmem %s2644_s2, %s1862_s24  ;;  %v299_v2 = vld [vmem:[%s2099_s29 + $0x8] sm:$0xff]  ;;  %v310_v21 = vld [vmem:[%s2099_s29 + $0x60] sm:$0xff]  ;;  %v313_v24 = vld [vmem:[%s2099_s29 + $0x78] sm:$0xff]  ;;  %s2596_s13 = scalar_lea.vmem %s2647_s5, %s1862_s24 }
  0x4a   : > { %v341_v3 = vld [vmem:[%s2104_s7 + $0x8] sm:$0xff]  ;;  %v424_v4 = vld [vmem:[%s2111_s10] sm:$0xff]  ;;  %v426_v6 = vld [vmem:[%s2111_s10 + $0x10] sm:$0xff] }
  0x4b   : > { %v425_v5 = vld [vmem:[%s2111_s10 + $0x8] sm:$0xff]  ;;  %v2118_v7 = vmul.f32 %v341_v3, %v299_v2  ;;  %v427_v9 = vld [vmem:[%s2111_s10 + $0x18] sm:$0xff]  ;;  %v428_v11 = vld [vmem:[%s2111_s10 + $0x20] sm:$0xff] }
  0x4c   : > { %v1774_v8 = vpack.c.bf16 %v425_v5, %v424_v4  ;;  %v1777_v10 = vpack.c.bf16 %v427_v9, %v426_v6  ;;  %v429_v12 = vld [vmem:[%s2111_s10 + $0x28] sm:$0xff]  ;;  %v430_v14 = vld [vmem:[%s2111_s10 + $0x30] sm:$0xff]  ;;  %v431_v15 = vld [vmem:[%s2111_s10 + $0x38] sm:$0xff] }
  0x4d   : > { %1503 = vmatprep.mubr.msk.f32.mxu0 %vm445_vm0, %v2118_v7  ;;  %v1780_v13 = vpack.c.bf16 %v429_v12, %v428_v11  ;;  %v1783_v16 = vpack.c.bf16 %v431_v15, %v430_v14  ;;  %v432_v17 = vld [vmem:[%s2111_s10 + $0x40] sm:$0xff]  ;;  %v433_v18 = vld [vmem:[%s2111_s10 + $0x48] sm:$0xff]  ;;  %v434_v19 = vld [vmem:[%s2111_s10 + $0x50] sm:$0xff] }
  0x4e   : > { %1775 = vmatpush1.bf16.msra.mxu0 %v1774_v8  ;;  %v435_v20 = vld [vmem:[%s2111_s10 + $0x58] sm:$0xff]  ;;  %v1786_v22 = vpack.c.bf16 %v433_v18, %v432_v17  ;;  %v352_v23 = vld [vmem:[%s2104_s7 + $0x60] sm:$0xff]  ;;  %v312_v28 = vld [vmem:[%s2099_s29 + $0x70] sm:$0xff] }
  0x4f   : > { %1776 = vmatprep.subr.bf16.mxu0 %v1973_v0  ;;  %v355_v25 = vld [vmem:[%s2104_s7 + $0x78] sm:$0xff]  ;;  %v2139_v26 = vmul.f32 %v352_v23, %v310_v21  ;;  %v354_v29 = vld [vmem:[%s2104_s7 + $0x70] sm:$0xff]  ;;  %v315_v30 = vld [vmem:[%s2099_s29 + $0x88] sm:$0xff]  ;;  %v1789_v42 = vpack.c.bf16 %v435_v20, %v434_v19 }
  0x50   : > { %v2141_v27 = vmul.f32 %v355_v25, %v313_v24  ;;  %v2146_v31 = vmul.f32 %v354_v29, %v312_v28  ;;  %v357_v32 = vld [vmem:[%s2104_s7 + $0x88] sm:$0xff]  ;;  %v314_v33 = vld [vmem:[%s2099_s29 + $0x80] sm:$0xff]  ;;  %v317_v39 = vld [vmem:[%s2099_s29 + $0x98] sm:$0xff] }
  0x51   : > { %v356_v34 = vld [vmem:[%s2104_s7 + $0x80] sm:$0xff]  ;;  %v437_v36 = vld [vmem:[%s2111_s10 + $0x68] sm:$0xff]  ;;  %v2153_v37 = vmul.f32 %v357_v32, %v315_v30  ;;  %v359_v40 = vld [vmem:[%s2104_s7 + $0x98] sm:$0xff] }
  0x52   : > { %1778 = vmatpush1.bf16.msra.mxu0 %v1777_v10  ;;  %v436_v35 = vld [vmem:[%s2111_s10 + $0x60] sm:$0xff]  ;;  %v2155_v38 = vmul.f32 %v356_v34, %v314_v33  ;;  %v316_v41 = vld [vmem:[%s2099_s29 + $0x90] sm:$0xff]  ;;  %v2160_v43 = vmul.f32 %v359_v40, %v317_v39  ;;  %v319_v45 = vld [vmem:[%s2099_s29 + $0xa8] sm:$0xff] }
  0x53   : > { %1779 = vmatprep.subr.bf16.mxu0 %v1973_v0  ;;  %v358_v44 = vld [vmem:[%s2104_s7 + $0x90] sm:$0xff]  ;;  %v361_v46 = vld [vmem:[%s2104_s7 + $0xa8] sm:$0xff]  ;;  %v318_v49 = vld [vmem:[%s2099_s29 + $0xa0] sm:$0xff]  ;;  %v1792_v63 = vpack.c.bf16 %v437_v36, %v436_v35 }
  0x54   : > { %v2166_v47 = vmul.f32 %v358_v44, %v316_v41  ;;  %v2168_v48 = vmul.f32 %v361_v46, %v319_v45  ;;  %v360_v50 = vld [vmem:[%s2104_s7 + $0xa0] sm:$0xff]  ;;  %v321_v51 = vld [vmem:[%s2099_s29 + $0xb8] sm:$0xff]  ;;  %v320_v54 = vld [vmem:[%s2099_s29 + $0xb0] sm:$0xff] }
  0x55   : > { %v2173_v52 = vmul.f32 %v360_v50, %v318_v49  ;;  %v363_v53 = vld [vmem:[%s2104_s7 + $0xb8] sm:$0xff]  ;;  %v362_v55 = vld [vmem:[%s2104_s7 + $0xb0] sm:$0xff]  ;;  %v323_v60 = vld [vmem:[%s2099_s29 + $0xc8] sm:$0xff] }
  0x56   : > { %1781 = vmatpush1.bf16.msra.mxu0 %v1780_v13  ;;  %v438_v56 = vld [vmem:[%s2111_s10 + $0x70] sm:$0xff]  ;;  %v439_v57 = vld [vmem:[%s2111_s10 + $0x78] sm:$0xff]  ;;  %v2180_v58 = vmul.f32 %v363_v53, %v321_v51  ;;  %v2182_v59 = vmul.f32 %v362_v55, %v320_v54  ;;  %v365_v61 = vld [vmem:[%s2104_s7 + $0xc8] sm:$0xff] }
  0x57   : > { %1782 = vmatprep.subr.bf16.mxu0 %v1973_v0  ;;  %v322_v62 = vld [vmem:[%s2099_s29 + $0xc0] sm:$0xff]  ;;  %v2187_v2 = vmul.f32 %v365_v61, %v323_v60  ;;  %v325_v4 = vld [vmem:[%s2099_s29 + $0xd8] sm:$0xff]  ;;  %v324_v9 = vld [vmem:[%s2099_s29 + $0xd0] sm:$0xff]  ;;  %v1795_v23 = vpack.c.bf16 %v439_v57, %v438_v56 }
  0x58   : > { %v364_v3 = vld [vmem:[%s2104_s7 + $0xc0] sm:$0xff]  ;;  %v367_v5 = vld [vmem:[%s2104_s7 + $0xd8] sm:$0xff]  ;;  %v366_v10 = vld [vmem:[%s2104_s7 + $0xd0] sm:$0xff] }
  0x59   : > { %v2193_v6 = vmul.f32 %v364_v3, %v322_v62  ;;  %v2195_v8 = vmul.f32 %v367_v5, %v325_v4  ;;  %v327_v11 = vld [vmem:[%s2099_s29 + $0xe8] sm:$0xff]  ;;  %v2200_v12 = vmul.f32 %v366_v10, %v324_v9  ;;  %v326_v14 = vld [vmem:[%s2099_s29 + $0xe0] sm:$0xff]  ;;  %v329_v20 = vld [vmem:[%s2099_s29 + $0xf8] sm:$0xff] }
  0x5a   : > { %1784 = vmatpush1.bf16.msra.mxu0 %v1783_v16  ;;  %v369_v13 = vld [vmem:[%s2104_s7 + $0xe8] sm:$0xff]  ;;  %v368_v15 = vld [vmem:[%s2104_s7 + $0xe0] sm:$0xff]  ;;  %v371_v21 = vld [vmem:[%s2104_s7 + $0xf8] sm:$0xff] }
  0x5b   : > { %1785 = vmatprep.subr.bf16.mxu0 %v1973_v0  ;;  %v440_v16 = vld [vmem:[%s2111_s10 + $0x80] sm:$0xff]  ;;  %v441_v17 = vld [vmem:[%s2111_s10 + $0x88] sm:$0xff]  ;;  %v2207_v18 = vmul.f32 %v369_v13, %v327_v11  ;;  %v2209_v19 = vmul.f32 %v368_v15, %v326_v14  ;;  %v2214_v24 = vmul.f32 %v371_v21, %v329_v20  ;;  %v370_v25 = vld [vmem:[%s2104_s7 + $0xf0] sm:$0xff] }
  0x5c   : > { %v331_v28 = vld [vmem:[%s2099_s29 + $0x108] sm:$0xff]  ;;  %v330_v33 = vld [vmem:[%s2099_s29 + $0x100] sm:$0xff]  ;;  %v333_v35 = vld [vmem:[%s2099_s29 + $0x118] sm:$0xff]  ;;  %v1798_v53 = vpack.c.bf16 %v441_v17, %v440_v16 }
  0x5d   : > { %v373_v29 = vld [vmem:[%s2104_s7 + $0x108] sm:$0xff]  ;;  %v372_v34 = vld [vmem:[%s2104_s7 + $0x100] sm:$0xff]  ;;  %v375_v39 = vld [vmem:[%s2104_s7 + $0x118] sm:$0xff] }
  0x5e   : > { %1787 = vmatpush1.bf16.msra.mxu0 %v1786_v22  ;;  %v328_v22 = vld [vmem:[%s2099_s29 + $0xf0] sm:$0xff]  ;;  %v2222_v32 = vmul.f32 %v373_v29, %v331_v28  ;;  %v2227_v36 = vmul.f32 %v372_v34, %v330_v33  ;;  %v443_v44 = vld [vmem:[%s2111_s10 + $0x98] sm:$0xff]  ;;  %v2234_v45 = vmul.f32 %v375_v39, %v333_v35  ;;  %v335_v49 = vld [vmem:[%s2099_s29 + $0x128] sm:$0xff] }
  0x5f   : > { %1788 = vmatprep.subr.bf16.mxu0 %v1973_v0  ;;  %v2220_v30 = vmul.f32 %v370_v25, %v328_v22  ;;  %v332_v40 = vld [vmem:[%s2099_s29 + $0x110] sm:$0xff]  ;;  %v377_v50 = vld [vmem:[%s2104_s7 + $0x128] sm:$0xff]  ;;  %v334_v51 = vld [vmem:[%s2099_s29 + $0x120] sm:$0xff] }
  0x60   : > { %v374_v41 = vld [vmem:[%s2104_s7 + $0x110] sm:$0xff]  ;;  %v2241_v54 = vmul.f32 %v377_v50, %v335_v49  ;;  %v376_v55 = vld [vmem:[%s2104_s7 + $0x120] sm:$0xff]  ;;  %v337_v56 = vld [vmem:[%s2099_s29 + $0x138] sm:$0xff] }
  0x61   : > { %v2236_v46 = vmul.f32 %v374_v41, %v332_v40  ;;  %v379_v57 = vld [vmem:[%s2104_s7 + $0x138] sm:$0xff]  ;;  %v2247_v60 = vmul.f32 %v376_v55, %v334_v51  ;;  %v336_v62 = vld [vmem:[%s2099_s29 + $0x130] sm:$0xff]  ;;  %v339_v3 = vld [vmem:[%s2099_s29 + $0x148] sm:$0x1] }
  0x62   : > { %1790 = vmatpush1.bf16.msra.mxu0 %v1789_v42  ;;  %v442_v42 = vld [vmem:[%s2111_s10 + $0x90] sm:$0xff]  ;;  %v2249_v61 = vmul.f32 %v379_v57, %v337_v56  ;;  %v381_v5 = vld [vmem:[%s2104_s7 + $0x148] sm:$0x1]  ;;  %v338_v9 = vld [vmem:[%s2099_s29 + $0x140] sm:$0x1] }
  0x63   : > { %1791 = vmatprep.subr.bf16.mxu0 %v1973_v0  ;;  %v380_v10 = vld [vmem:[%s2104_s7 + $0x140] sm:$0x1]  ;;  %v2259_v11 = vmul.f32 %v381_v5, %v339_v3  ;;  %v1801_v14 = vpack.c.bf16 %v443_v44, %v442_v42  ;;  %v301_v17 = vld [vmem:[%s2099_s29 + $0x18] sm:$0xff]  ;;  %v300_v25 = vld [vmem:[%s2099_s29 + $0x10] sm:$0xff] }
  0x64   : > { %v2261_v13 = vmul.f32 %v380_v10, %v338_v9  ;;  %v298_v15 = vld [vmem:[%s2099_s29] sm:$0xff]  ;;  %v343_v20 = vld [vmem:[%s2104_s7 + $0x18] sm:$0xff]  ;;  %v342_v28 = vld [vmem:[%s2104_s7 + $0x10] sm:$0xff] }
  0x65   : > { %v340_v16 = vld [vmem:[%s2104_s7] sm:$0xff]  ;;  %v303_v29 = vld [vmem:[%s2099_s29 + $0x28] sm:$0xff]  ;;  %v2280_v34 = vmul.f32 %v342_v28, %v300_v25  ;;  %v305_v41 = vld [vmem:[%s2099_s29 + $0x38] sm:$0xff] }
  0x66   : > { %1793 = vmatpush1.bf16.msra.mxu0 %v1792_v63  ;;  %v378_v63 = vld [vmem:[%s2104_s7 + $0x130] sm:$0xff]  ;;  %v444_v21 = vld [vmem:[%s2111_s10 + $0xa0] sm:$0x1]  ;;  %v2270_v22 = vmul.f32 %v340_v16, %v298_v15  ;;  %v345_v33 = vld [vmem:[%s2104_s7 + $0x28] sm:$0xff] }
  0x67   : > { %1794 = vmatprep.subr.bf16.mxu0 %v1973_v0  ;;  %v2254_v4 = vmul.f32 %v378_v63, %v336_v62  ;;  %v2285_v35 = vmul.f32 %v345_v33, %v303_v29  ;;  %v302_v39 = vld [vmem:[%s2099_s29 + $0x20] sm:$0xff]  ;;  %v347_v42 = vld [vmem:[%s2104_s7 + $0x38] sm:$0xff]  ;;  %v304_v50 = vld [vmem:[%s2099_s29 + $0x30] sm:$0xff] }
  0x68   : > { %v344_v40 = vld [vmem:[%s2104_s7 + $0x20] sm:$0xff]  ;;  %v2296_v49 = vmul.f32 %v347_v42, %v305_v41  ;;  %v346_v51 = vld [vmem:[%s2104_s7 + $0x30] sm:$0xff]  ;;  %v349_v55 = vld [vmem:[%s2104_s7 + $0x48] sm:$0xff] }
  0x69   : > { %v2292_v44 = vmul.f32 %v344_v40, %v302_v39  ;;  %v2303_v56 = vmul.f32 %v346_v51, %v304_v50  ;;  %v306_v62 = vld [vmem:[%s2099_s29 + $0x40] sm:$0xff]  ;;  %v309_v3 = vld [vmem:[%s2099_s29 + $0x58] sm:$0xff]  ;;  %v350_v15 = vld [vmem:[%s2104_s7 + $0x50] sm:$0xff] }
  0x6a   : > { %1796 = vmatpush1.bf16.msra.mxu0 %v1795_v23  ;;  %v2272_v23 = vmul.f32 %v343_v20, %v301_v17  ;;  %v348_v63 = vld [vmem:[%s2104_s7 + $0x40] sm:$0xff]  ;;  %v351_v5 = vld [vmem:[%s2104_s7 + $0x58] sm:$0xff]  ;;  %v311_v16 = vld [vmem:[%s2099_s29 + $0x68] sm:$0xff] }
  0x6b   : > { %1797 = vmatprep.subr.bf16.mxu0 %v1973_v0  ;;  %v2314_v9 = vmul.f32 %v348_v63, %v306_v62  ;;  %v2318_v10 = vmul.f32 %v351_v5, %v309_v3  ;;  %v353_v17 = vld [vmem:[%s2104_s7 + $0x68] sm:$0xff]  ;;  %v293_v25 = vld [vmem:[#allocation2] sm:$0xff]  ;;  %v295_v29 = vld [vmem:[#allocation4 + $0x8] sm:$0xff] }
  0x6c   : > { %1638 = vmatpush3.msra.mxu1 %v293_v25  ;;  %v294_v28 = vld [vmem:[#allocation4] sm:$0xff]  ;;  %v296_v39 = vld [vmem:[#allocation4 + $0x10] sm:$0xff]  ;;  %v297_v40 = vld [vmem:[#allocation4 + $0x18] sm:$0xff] }
  0x6d   : > { %1803 = vmatprep.subr.bf16.mxu1 %v1973_v0  ;;  %v1804_v33 = vpack.c.bf16 %v295_v29, %v294_v28 }
  0x6e   : > { %1799 = vmatpush1.bf16.msra.mxu0 %v1798_v53  ;;  %v307_v53 = vld [vmem:[%s2099_s29 + $0x48] sm:$0xff] }
  0x6f   : > { %1800 = vmatprep.subr.bf16.mxu0 %v1973_v0  ;;  %v2307_v57 = vmul.f32 %v349_v55, %v307_v53 }
  0x72   : > { %1802 = vmatpush1.bf16.msra.mxu0 %v1801_v14  ;;  %v308_v14 = vld [vmem:[%s2099_s29 + $0x50] sm:$0xff] }
  0x73   : > { %553 = vmatprep.subr.mxu0 %v1974_v1  ;;  %v2325_v20 = vmul.f32 %v350_v15, %v308_v14 }
  0x76   : > { %1502 = vmatpush1.msk.msra.mxu0 %vm509_vm1, %v444_v21  ;;  %v2329_v21 = vmul.f32 %v353_v17, %v311_v16 }
  0x77   : > { %578 = vmatmul.mubr.f32.vlgmr.msra.gmra.mrb[0].mxu0 %v2270_v22  ;;  %1809 = vmatprep.subr.bf16.mxu0 %v1973_v0 }
  0x78   : > { %1504 = vmatprep.mubr.msk.f32.mxu0 %vm445_vm0, %v2272_v23 }
  0x7b   : > { %583 = vmatmul.mubr.f32.gmra.mrb[2].mxu0 %v2280_v34 }
  0x7c   : > { %1505 = vmatprep.mubr.msk.f32.mxu0 %vm445_vm0, %v2285_v35 }
  0x7f   : > { %588 = vmatmul.mubr.f32.gmra.mrb[4].mxu0 %v2292_v44 }
  0x80   : > { %1506 = vmatprep.mubr.msk.f32.mxu0 %vm445_vm0, %v2296_v49 }
  0x83   : > { %593 = vmatmul.mubr.f32.gmra.mrb[6].mxu0 %v2303_v56 }
  0x84   : > { %1507 = vmatprep.mubr.msk.f32.mxu0 %vm445_vm0, %v2307_v57 }
  0x87   : > { %598 = vmatmul.mubr.f32.gmra.mrb[8].mxu0 %v2314_v9 }
  0x88   : > { %1508 = vmatprep.mubr.msk.f32.mxu0 %vm445_vm0, %v2318_v10 }
  0x8b   : > { %603 = vmatmul.mubr.f32.gmra.mrb[10].mxu0 %v2325_v20 }
  0x8c   : > { %1509 = vmatprep.mubr.msk.f32.mxu0 %vm445_vm0, %v2329_v21 }
  0x8f   : > { %608 = vmatmul.mubr.f32.gmra.mrb[12].mxu0 %v2139_v26 }
  0x90   : > { %1510 = vmatprep.mubr.msk.f32.mxu0 %vm445_vm0, %v2141_v27 }
  0x93   : > { %613 = vmatmul.mubr.f32.gmra.mrb[14].mxu0 %v2146_v31 }
  0x94   : > { %1511 = vmatprep.mubr.msk.f32.mxu0 %vm445_vm0, %v2153_v37 }
  0x97   : > { %618 = vmatmul.mubr.f32.gmra.mrb[16].mxu0 %v2155_v38 }
  0x98   : > { %1512 = vmatprep.mubr.msk.f32.mxu0 %vm445_vm0, %v2160_v43 }
  0x9b   : > { %623 = vmatmul.mubr.f32.gmra.mrb[18].mxu0 %v2166_v47 }
  0x9c   : > { %1513 = vmatprep.mubr.msk.f32.mxu0 %vm445_vm0, %v2168_v48 }
  0x9f   : > { %628 = vmatmul.mubr.f32.gmra.mrb[20].mxu0 %v2173_v52 }
  0xa0   : > { %1514 = vmatprep.mubr.msk.f32.mxu0 %vm445_vm0, %v2180_v58 }
  0xa3   : > { %633 = vmatmul.mubr.f32.gmra.mrb[22].mxu0 %v2182_v59 }
  0xa4   : > { %1515 = vmatprep.mubr.msk.f32.mxu0 %vm445_vm0, %v2187_v2 }
  0xa7   : > { %638 = vmatmul.mubr.f32.gmra.mrb[24].mxu0 %v2193_v6 }
  0xa8   : > { %1516 = vmatprep.mubr.msk.f32.mxu0 %vm445_vm0, %v2195_v8 }
  0xab   : > { %643 = vmatmul.mubr.f32.gmra.mrb[26].mxu0 %v2200_v12 }
  0xac   : > { %1517 = vmatprep.mubr.msk.f32.mxu0 %vm445_vm0, %v2207_v18 }
  0xaf   : > { %648 = vmatmul.mubr.f32.gmra.mrb[28].mxu0 %v2209_v19 }
  0xb0   : > { %1518 = vmatprep.mubr.msk.f32.mxu0 %vm445_vm0, %v2214_v24 }
  0xb3   : > { %653 = vmatmul.mubr.f32.gmra.mrb[30].mxu0 %v2220_v30 }
  0xb4   : > { %1519 = vmatprep.mubr.msk.f32.mxu0 %vm445_vm0, %v2222_v32 }
  0xb7   : > { %658 = vmatmul.mubr.f32.gmra.mrb[32].mxu0 %v2227_v36 }
  0xb8   : > { %1520 = vmatprep.mubr.msk.f32.mxu0 %vm445_vm0, %v2234_v45 }
  0xbb   : > { %663 = vmatmul.mubr.f32.gmra.mrb[34].mxu0 %v2236_v46 }
  0xbc   : > { %1521 = vmatprep.mubr.msk.f32.mxu0 %vm445_vm0, %v2241_v54 }
  0xbf   : > { %668 = vmatmul.mubr.f32.gmra.mrb[36].mxu0 %v2247_v60 }
  0xc0   : > { %1522 = vmatprep.mubr.msk.f32.mxu0 %vm445_vm0, %v2249_v61 }
  0xc3   : > { %673 = vmatmul.mubr.f32.gmra.mrb[38].mxu0 %v2254_v4 }
  0xc4   : > { %1523 = vmatprep.mubr.msk.f32.mxu0 %vm445_vm0, %v2259_v11 }
  0xc7   : > { %678 = vmatmul.mubr.f32.gmra.mrb[40].mxu0 %v2261_v13 }
  0xc8   : > { %1567 = vmatprep.mubr.msk.f32.mxu0 %vm445_vm0, %v2118_v7  ;;  %v1807_v7 = vpack.c.bf16 %v297_v40, %v296_v39 }
 0x14a   : > { %v579_v41 = vpop.f32.mrb[0].mxu0 }
 0x14b   : > { %v581_v42 = vpop.f32.mrb[1].mxu0  ;;  %1640 = vmatmul.mubr.msk.f32.vlgmr.msra.gmra.mrb[0].mxu1 %vm683_vm3, %v579_v41 }
 0x14c   : > { %1642 = vmatprep.mubr.msk.f32.mxu1 %vm1975_vm2, %v1974_v1  ;;  %1805 = vmatpush3.bf16.msra.mxu1 %v1804_v33 }
 0x14d   : > { %1806 = vmatprep.subr.bf16.mxu1 %v1973_v0 }
 0x14e   : > { %v584_v50 = vpop.f32.mrb[2].mxu0 }
 0x14f   : > { %v586_v51 = vpop.f32.mrb[3].mxu0  ;;  %1643 = vmatmul.mubr.msk.f32.gmra.mrb[2].mxu1 %vm683_vm3, %v584_v50 }
 0x150   : > { %1645 = vmatprep.mubr.msk.f32.mxu1 %vm1975_vm2, %v1974_v1  ;;  %1808 = vmatpush3.bf16.msra.mxu1 %v1807_v7 }
 0x151   : > { %1839 = vmatprep.subr.bf16.mxu1 %v1973_v0 }
 0x152   : > { %v589_v53 = vpop.f32.mrb[4].mxu0 }
 0x153   : > { %v591_v55 = vpop.f32.mrb[5].mxu0  ;;  %1646 = vmatmul.mubr.msk.f32.gmra.mrb[4].mxu1 %vm683_vm3, %v589_v53 }
 0x154   : > { %1648 = vmatprep.mubr.msk.f32.mxu1 %vm1975_vm2, %v1974_v1 }
 0x156   : > { %v594_v62 = vpop.f32.mrb[6].mxu0 }
 0x157   : > { %v596_v63 = vpop.f32.mrb[7].mxu0  ;;  %1649 = vmatmul.mubr.msk.f32.gmra.mrb[6].mxu1 %vm683_vm3, %v594_v62 }
 0x158   : > { %1651 = vmatprep.mubr.msk.f32.mxu1 %vm1975_vm2, %v1974_v1 }
 0x15a   : > { %v599_v3 = vpop.f32.mrb[8].mxu0 }
 0x15b   : > { %v601_v5 = vpop.f32.mrb[9].mxu0  ;;  %1652 = vmatmul.mubr.msk.f32.gmra.mrb[8].mxu1 %vm683_vm3, %v599_v3 }
 0x15c   : > { %1654 = vmatprep.mubr.msk.f32.mxu1 %vm1975_vm2, %v1974_v1 }
 0x15e   : > { %v604_v14 = vpop.f32.mrb[10].mxu0 }
 0x15f   : > { %v606_v15 = vpop.f32.mrb[11].mxu0  ;;  %1655 = vmatmul.mubr.msk.f32.gmra.mrb[10].mxu1 %vm683_vm3, %v604_v14 }
 0x160   : > { %1657 = vmatprep.mubr.msk.f32.mxu1 %vm1975_vm2, %v1974_v1 }
 0x162   : > { %v609_v16 = vpop.f32.mrb[12].mxu0 }
 0x163   : > { %v611_v17 = vpop.f32.mrb[13].mxu0  ;;  %1658 = vmatmul.mubr.msk.f32.gmra.mrb[12].mxu1 %vm683_vm3, %v609_v16 }
 0x164   : > { %1660 = vmatprep.mubr.msk.f32.mxu1 %vm1975_vm2, %v1974_v1 }
 0x166   : > { %v614_v25 = vpop.f32.mrb[14].mxu0 }
 0x167   : > { %v616_v28 = vpop.f32.mrb[15].mxu0  ;;  %1661 = vmatmul.mubr.msk.f32.gmra.mrb[14].mxu1 %vm683_vm3, %v614_v25 }
 0x168   : > { %1663 = vmatprep.mubr.msk.f32.mxu1 %vm1975_vm2, %v1974_v1 }
 0x16a   : > { %v619_v29 = vpop.f32.mrb[16].mxu0 }
 0x16b   : > { %v621_v33 = vpop.f32.mrb[17].mxu0  ;;  %1664 = vmatmul.mubr.msk.f32.gmra.mrb[16].mxu1 %vm683_vm3, %v619_v29 }
 0x16c   : > { %1666 = vmatprep.mubr.msk.f32.mxu1 %vm1975_vm2, %v1974_v1 }
 0x16e   : > { %v624_v39 = vpop.f32.mrb[18].mxu0 }
 0x16f   : > { %v626_v40 = vpop.f32.mrb[19].mxu0  ;;  %1667 = vmatmul.mubr.msk.f32.gmra.mrb[18].mxu1 %vm683_vm3, %v624_v39 }
 0x170   : > { %1669 = vmatprep.mubr.msk.f32.mxu1 %vm1975_vm2, %v1974_v1 }
 0x172   : > { %v629_v41 = vpop.f32.mrb[20].mxu0 }
 0x173   : > { %v631_v42 = vpop.f32.mrb[21].mxu0  ;;  %1670 = vmatmul.mubr.msk.f32.gmra.mrb[20].mxu1 %vm683_vm3, %v629_v41 }
 0x174   : > { %1672 = vmatprep.mubr.msk.f32.mxu1 %vm1975_vm2, %v1974_v1 }
 0x176   : > { %v634_v7 = vpop.f32.mrb[22].mxu0 }
 0x177   : > { %v636_v50 = vpop.f32.mrb[23].mxu0  ;;  %1673 = vmatmul.mubr.msk.f32.gmra.mrb[22].mxu1 %vm683_vm3, %v634_v7 }
 0x178   : > { %1675 = vmatprep.mubr.msk.f32.mxu1 %vm1975_vm2, %v1974_v1 }
 0x17a   : > { %v639_v51 = vpop.f32.mrb[24].mxu0 }
 0x17b   : > { %v641_v53 = vpop.f32.mrb[25].mxu0  ;;  %1676 = vmatmul.mubr.msk.f32.gmra.mrb[24].mxu1 %vm683_vm3, %v639_v51 }
 0x17c   : > { %1678 = vmatprep.mubr.msk.f32.mxu1 %vm1975_vm2, %v1974_v1 }
 0x17e   : > { %v644_v55 = vpop.f32.mrb[26].mxu0 }
 0x17f   : > { %v646_v62 = vpop.f32.mrb[27].mxu0  ;;  %1679 = vmatmul.mubr.msk.f32.gmra.mrb[26].mxu1 %vm683_vm3, %v644_v55 }
 0x180   : > { %1681 = vmatprep.mubr.msk.f32.mxu1 %vm1975_vm2, %v1974_v1 }
 0x182   : > { %v649_v63 = vpop.f32.mrb[28].mxu0 }
 0x183   : > { %v651_v3 = vpop.f32.mrb[29].mxu0  ;;  %1682 = vmatmul.mubr.msk.f32.gmra.mrb[28].mxu1 %vm683_vm3, %v649_v63 }
 0x184   : > { %1684 = vmatprep.mubr.msk.f32.mxu1 %vm1975_vm2, %v1974_v1 }
 0x186   : > { %v654_v5 = vpop.f32.mrb[30].mxu0 }
 0x187   : > { %v656_v14 = vpop.f32.mrb[31].mxu0  ;;  %1685 = vmatmul.mubr.msk.f32.gmra.mrb[30].mxu1 %vm683_vm3, %v654_v5 }
 0x188   : > { %1687 = vmatprep.mubr.msk.f32.mxu1 %vm1975_vm2, %v1974_v1 }
 0x18a   : > { %v659_v15 = vpop.f32.mrb[32].mxu0 }
 0x18b   : > { %v661_v16 = vpop.f32.mrb[33].mxu0  ;;  %1688 = vmatmul.mubr.msk.f32.gmra.mrb[32].mxu1 %vm683_vm3, %v659_v15 }
 0x18c   : > { %1690 = vmatprep.mubr.msk.f32.mxu1 %vm1975_vm2, %v1974_v1 }
 0x18e   : > { %v664_v17 = vpop.f32.mrb[34].mxu0 }
 0x18f   : > { %v666_v25 = vpop.f32.mrb[35].mxu0  ;;  %1691 = vmatmul.mubr.msk.f32.gmra.mrb[34].mxu1 %vm683_vm3, %v664_v17 }
 0x190   : > { %1693 = vmatprep.mubr.msk.f32.mxu1 %vm1975_vm2, %v1974_v1 }
 0x192   : > { %v669_v28 = vpop.f32.mrb[36].mxu0 }
 0x193   : > { %v671_v29 = vpop.f32.mrb[37].mxu0  ;;  %1694 = vmatmul.mubr.msk.f32.gmra.mrb[36].mxu1 %vm683_vm3, %v669_v28 }
 0x194   : > { %1696 = vmatprep.mubr.msk.f32.mxu1 %vm1975_vm2, %v1974_v1 }
 0x196   : > { %v674_v33 = vpop.f32.mrb[38].mxu0 }
 0x197   : > { %v676_v39 = vpop.f32.mrb[39].mxu0  ;;  %1697 = vmatmul.mubr.msk.f32.gmra.mrb[38].mxu1 %vm683_vm3, %v674_v33 }
 0x198   : > { %1699 = vmatprep.mubr.msk.f32.mxu1 %vm1975_vm2, %v1974_v1 }
 0x19a   : > { %v679_v40 = vpop.f32.mrb[40].mxu0 }
 0x19b   : > { %v681_v41 = vpop.f32.mrb[41].mxu0  ;;  %1700 = vmatmul.mubr.msk.f32.gmra.mrb[40].mxu1 %vm683_vm3, %v679_v40 }
 0x19c   : > { %1710 = vmatprep.mubr.msk.f32.mxu1 %vm1975_vm2, %v1974_v1 }
 0x21e   : > { %v813_v42 = vpop.f32.mrb[0].mxu1 }
 0x21f   : > { %v917_v7 = vmax.f32 %v813_v42, 0.0  ;;  %v1641_v50 = vpop.f32.mrb[1].mxu1 }
 0x221   : > { %1711 = vmatmul.mubr.msk.f32.vlgmr.msra.gmra.mrb[42].mxu1 %vm938_vm4, %v917_v7 }
 0x222   : > { %v818_v51 = vpop.f32.mrb[2].mxu1  ;;  %1713 = vmatprep.mubr.msk.f32.mxu1 %vm1975_vm2, %v1974_v1 }
 0x223   : > { %v918_v53 = vmax.f32 %v818_v51, 0.0  ;;  %v1644_v55 = vpop.f32.mrb[3].mxu1 }
 0x225   : > { %1714 = vmatmul.mubr.msk.f32.gmra.mrb[44].mxu1 %vm938_vm4, %v918_v53 }
 0x226   : > { %v823_v62 = vpop.f32.mrb[4].mxu1  ;;  %1716 = vmatprep.mubr.msk.f32.mxu1 %vm1975_vm2, %v1974_v1 }
 0x227   : > { %v919_v63 = vmax.f32 %v823_v62, 0.0  ;;  %v1647_v3 = vpop.f32.mrb[5].mxu1 }
 0x229   : > { %1717 = vmatmul.mubr.msk.f32.gmra.mrb[46].mxu1 %vm938_vm4, %v919_v63 }
 0x22a   : > { %v828_v5 = vpop.f32.mrb[6].mxu1  ;;  %1719 = vmatprep.mubr.msk.f32.mxu1 %vm1975_vm2, %v1974_v1 }
 0x22b   : > { %v920_v14 = vmax.f32 %v828_v5, 0.0  ;;  %v1650_v15 = vpop.f32.mrb[7].mxu1 }
 0x22d   : > { %1720 = vmatmul.mubr.msk.f32.gmra.mrb[48].mxu1 %vm938_vm4, %v920_v14 }
 0x22e   : > { %v833_v16 = vpop.f32.mrb[8].mxu1  ;;  %1722 = vmatprep.mubr.msk.f32.mxu1 %vm1975_vm2, %v1974_v1 }
 0x22f   : > { %v921_v17 = vmax.f32 %v833_v16, 0.0  ;;  %v1653_v25 = vpop.f32.mrb[9].mxu1 }
 0x231   : > { %1723 = vmatmul.mubr.msk.f32.gmra.mrb[50].mxu1 %vm938_vm4, %v921_v17 }
 0x232   : > { %v838_v28 = vpop.f32.mrb[10].mxu1  ;;  %1725 = vmatprep.mubr.msk.f32.mxu1 %vm1975_vm2, %v1974_v1 }
 0x233   : > { %v922_v29 = vmax.f32 %v838_v28, 0.0  ;;  %v1656_v33 = vpop.f32.mrb[11].mxu1 }
 0x235   : > { %1726 = vmatmul.mubr.msk.f32.gmra.mrb[52].mxu1 %vm938_vm4, %v922_v29 }
 0x236   : > { %v843_v39 = vpop.f32.mrb[12].mxu1  ;;  %1728 = vmatprep.mubr.msk.f32.mxu1 %vm1975_vm2, %v1974_v1 }
 0x237   : > { %v923_v40 = vmax.f32 %v843_v39, 0.0  ;;  %v1659_v41 = vpop.f32.mrb[13].mxu1 }
 0x239   : > { %1729 = vmatmul.mubr.msk.f32.gmra.mrb[54].mxu1 %vm938_vm4, %v923_v40 }
 0x23a   : > { %v848_v42 = vpop.f32.mrb[14].mxu1  ;;  %1731 = vmatprep.mubr.msk.f32.mxu1 %vm1975_vm2, %v1974_v1 }
 0x23b   : > { %v924_v7 = vmax.f32 %v848_v42, 0.0  ;;  %v1662_v50 = vpop.f32.mrb[15].mxu1 }
 0x23d   : > { %1732 = vmatmul.mubr.msk.f32.gmra.mrb[56].mxu1 %vm938_vm4, %v924_v7 }
 0x23e   : > { %v853_v51 = vpop.f32.mrb[16].mxu1  ;;  %1734 = vmatprep.mubr.msk.f32.mxu1 %vm1975_vm2, %v1974_v1 }
 0x23f   : > { %v925_v53 = vmax.f32 %v853_v51, 0.0  ;;  %v1665_v55 = vpop.f32.mrb[17].mxu1 }
 0x241   : > { %1735 = vmatmul.mubr.msk.f32.gmra.mrb[58].mxu1 %vm938_vm4, %v925_v53 }
 0x242   : > { %v858_v62 = vpop.f32.mrb[18].mxu1  ;;  %1737 = vmatprep.mubr.msk.f32.mxu1 %vm1975_vm2, %v1974_v1 }
 0x243   : > { %v926_v63 = vmax.f32 %v858_v62, 0.0  ;;  %v1668_v3 = vpop.f32.mrb[19].mxu1 }
 0x245   : > { %1738 = vmatmul.mubr.msk.f32.gmra.mrb[60].mxu1 %vm938_vm4, %v926_v63 }
 0x246   : > { %v863_v5 = vpop.f32.mrb[20].mxu1  ;;  %1740 = vmatprep.mubr.msk.f32.mxu1 %vm1975_vm2, %v1974_v1 }
 0x247   : > { %v927_v14 = vmax.f32 %v863_v5, 0.0  ;;  %v1671_v15 = vpop.f32.mrb[21].mxu1 }
 0x249   : > { %1741 = vmatmul.mubr.msk.f32.gmra.mrb[62].mxu1 %vm938_vm4, %v927_v14 }
 0x24a   : > { %v868_v16 = vpop.f32.mrb[22].mxu1  ;;  %1743 = vmatprep.mubr.msk.f32.mxu1 %vm1975_vm2, %v1974_v1 }
 0x24b   : > { %v928_v17 = vmax.f32 %v868_v16, 0.0  ;;  %v1674_v25 = vpop.f32.mrb[23].mxu1 }
 0x24d   : > { %1744 = vmatmul.mubr.msk.f32.gmra.mrb[64].mxu1 %vm938_vm4, %v928_v17 }
 0x24e   : > { %v873_v28 = vpop.f32.mrb[24].mxu1  ;;  %1746 = vmatprep.mubr.msk.f32.mxu1 %vm1975_vm2, %v1974_v1 }
 0x24f   : > { %v929_v29 = vmax.f32 %v873_v28, 0.0  ;;  %v1677_v33 = vpop.f32.mrb[25].mxu1 }
 0x251   : > { %1747 = vmatmul.mubr.msk.f32.gmra.mrb[66].mxu1 %vm938_vm4, %v929_v29 }
 0x252   : > { %v878_v39 = vpop.f32.mrb[26].mxu1  ;;  %1749 = vmatprep.mubr.msk.f32.mxu1 %vm1975_vm2, %v1974_v1 }
 0x253   : > { %v930_v40 = vmax.f32 %v878_v39, 0.0  ;;  %v1680_v41 = vpop.f32.mrb[27].mxu1 }
 0x255   : > { %1750 = vmatmul.mubr.msk.f32.gmra.mrb[68].mxu1 %vm938_vm4, %v930_v40 }
 0x256   : > { %v883_v42 = vpop.f32.mrb[28].mxu1  ;;  %1752 = vmatprep.mubr.msk.f32.mxu1 %vm1975_vm2, %v1974_v1 }
 0x257   : > { %v931_v7 = vmax.f32 %v883_v42, 0.0  ;;  %v1683_v50 = vpop.f32.mrb[29].mxu1 }
 0x259   : > { %1753 = vmatmul.mubr.msk.f32.gmra.mrb[70].mxu1 %vm938_vm4, %v931_v7 }
 0x25a   : > { %v888_v51 = vpop.f32.mrb[30].mxu1  ;;  %1755 = vmatprep.mubr.msk.f32.mxu1 %vm1975_vm2, %v1974_v1 }
 0x25b   : > { %v932_v53 = vmax.f32 %v888_v51, 0.0  ;;  %v1686_v55 = vpop.f32.mrb[31].mxu1 }
 0x25d   : > { %1756 = vmatmul.mubr.msk.f32.gmra.mrb[72].mxu1 %vm938_vm4, %v932_v53 }
 0x25e   : > { %v893_v62 = vpop.f32.mrb[32].mxu1  ;;  %1758 = vmatprep.mubr.msk.f32.mxu1 %vm1975_vm2, %v1974_v1 }
 0x25f   : > { %v933_v63 = vmax.f32 %v893_v62, 0.0  ;;  %v1689_v3 = vpop.f32.mrb[33].mxu1 }
 0x261   : > { %1759 = vmatmul.mubr.msk.f32.gmra.mrb[74].mxu1 %vm938_vm4, %v933_v63 }
 0x262   : > { %v898_v5 = vpop.f32.mrb[34].mxu1  ;;  %1761 = vmatprep.mubr.msk.f32.mxu1 %vm1975_vm2, %v1974_v1 }
 0x263   : > { %v934_v14 = vmax.f32 %v898_v5, 0.0  ;;  %v1692_v15 = vpop.f32.mrb[35].mxu1 }
 0x265   : > { %1762 = vmatmul.mubr.msk.f32.gmra.mrb[76].mxu1 %vm938_vm4, %v934_v14 }
 0x266   : > { %v903_v16 = vpop.f32.mrb[36].mxu1  ;;  %1764 = vmatprep.mubr.msk.f32.mxu1 %vm1975_vm2, %v1974_v1 }
 0x267   : > { %v935_v17 = vmax.f32 %v903_v16, 0.0  ;;  %v1695_v25 = vpop.f32.mrb[37].mxu1 }
 0x269   : > { %1765 = vmatmul.mubr.msk.f32.gmra.mrb[78].mxu1 %vm938_vm4, %v935_v17 }
 0x26a   : > { %v908_v28 = vpop.f32.mrb[38].mxu1  ;;  %1767 = vmatprep.mubr.msk.f32.mxu1 %vm1975_vm2, %v1974_v1 }
 0x26b   : > { %v936_v29 = vmax.f32 %v908_v28, 0.0  ;;  %v1698_v33 = vpop.f32.mrb[39].mxu1 }
 0x26d   : > { %1768 = vmatmul.mubr.msk.f32.gmra.mrb[80].mxu1 %vm938_vm4, %v936_v29 }
 0x26e   : > { %v913_v39 = vpop.f32.mrb[40].mxu1  ;;  %1770 = vmatprep.mubr.msk.f32.mxu1 %vm1975_vm2, %v1974_v1 }
 0x26f   : > { %v937_v40 = vmax.f32 %v913_v39, 0.0  ;;  %v1701_v41 = vpop.f32.mrb[41].mxu1 }
 0x271   : > { %1771 = vmatmul.mubr.msk.f32.gmra.mrb[82].mxu1 %vm938_vm4, %v937_v40 }
 0x272   : > { %1583 = vmatprep.mubr.msk.f32.mxu1 %vm445_vm0, %v2222_v32 }
 0x2f4   : > { %v1068_v42 = vpop.f32.mrb[42].mxu1 }
 0x2f5   : > { %v1712_v7 = vpop.f32.mrb[43].mxu1 }
 0x2f8   : > { %v1073_v50 = vpop.f32.mrb[44].mxu1 }
 0x2f9   : > { %v1810_v51 = vpack.c.bf16 %v1073_v50, %v1068_v42  ;;  %v1715_v53 = vpop.f32.mrb[45].mxu1 }
 0x2fb   : > { %1811 = vmatpush1.bf16.msra.mxu0 %v1810_v51  ;;  %1850 = vmatpush1.bf16.msra.mxu1 %v1810_v51 }
 0x2fc   : > { %v1078_v55 = vpop.f32.mrb[46].mxu1  ;;  %1812 = vmatprep.subr.bf16.mxu0 %v1973_v0  ;;  %1840 = vmatprep.subr.bf16.mxu1 %v1973_v0 }
 0x2fd   : > { %v1718_v62 = vpop.f32.mrb[47].mxu1 }
 0x300   : > { %v1083_v63 = vpop.f32.mrb[48].mxu1 }
 0x301   : > { %v1813_v3 = vpack.c.bf16 %v1083_v63, %v1078_v55  ;;  %v1721_v5 = vpop.f32.mrb[49].mxu1 }
 0x303   : > { %1814 = vmatpush1.bf16.msra.mxu0 %v1813_v3  ;;  %1851 = vmatpush1.bf16.msra.mxu1 %v1813_v3 }
 0x304   : > { %v1088_v14 = vpop.f32.mrb[50].mxu1  ;;  %1815 = vmatprep.subr.bf16.mxu0 %v1973_v0  ;;  %1841 = vmatprep.subr.bf16.mxu1 %v1973_v0 }
 0x305   : > { %v1724_v32 = vpop.f32.mrb[51].mxu1 }
 0x308   : > { %v1093_v15 = vpop.f32.mrb[52].mxu1 }
 0x309   : > { %v1816_v16 = vpack.c.bf16 %v1093_v15, %v1088_v14  ;;  %v1727_v17 = vpop.f32.mrb[53].mxu1 }
 0x30b   : > { %1817 = vmatpush1.bf16.msra.mxu0 %v1816_v16  ;;  %1852 = vmatpush1.bf16.msra.mxu1 %v1816_v16 }
 0x30c   : > { %v1098_v25 = vpop.f32.mrb[54].mxu1  ;;  %1818 = vmatprep.subr.bf16.mxu0 %v1973_v0  ;;  %1842 = vmatprep.subr.bf16.mxu1 %v1973_v0 }
 0x30d   : > { %v1730_v28 = vpop.f32.mrb[55].mxu1 }
 0x310   : > { %v1103_v29 = vpop.f32.mrb[56].mxu1 }
 0x311   : > { %v1819_v33 = vpack.c.bf16 %v1103_v29, %v1098_v25  ;;  %v1733_v39 = vpop.f32.mrb[57].mxu1 }
 0x313   : > { %1820 = vmatpush1.bf16.msra.mxu0 %v1819_v33  ;;  %1853 = vmatpush1.bf16.msra.mxu1 %v1819_v33 }
 0x314   : > { %v1108_v40 = vpop.f32.mrb[58].mxu1  ;;  %1821 = vmatprep.subr.bf16.mxu0 %v1973_v0  ;;  %1843 = vmatprep.subr.bf16.mxu1 %v1973_v0 }
 0x315   : > { %v1736_v41 = vpop.f32.mrb[59].mxu1 }
 0x318   : > { %v1113_v42 = vpop.f32.mrb[60].mxu1 }
 0x319   : > { %v1822_v7 = vpack.c.bf16 %v1113_v42, %v1108_v40  ;;  %v1739_v50 = vpop.f32.mrb[61].mxu1 }
 0x31b   : > { %1823 = vmatpush1.bf16.msra.mxu0 %v1822_v7  ;;  %1854 = vmatpush1.bf16.msra.mxu1 %v1822_v7 }
 0x31c   : > { %v1118_v51 = vpop.f32.mrb[62].mxu1  ;;  %1824 = vmatprep.subr.bf16.mxu0 %v1973_v0  ;;  %1844 = vmatprep.subr.bf16.mxu1 %v1973_v0 }
 0x31d   : > { %v1742_v53 = vpop.f32.mrb[63].mxu1 }
 0x320   : > { %v1123_v55 = vpop.f32.mrb[64].mxu1 }
 0x321   : > { %v1825_v62 = vpack.c.bf16 %v1123_v55, %v1118_v51  ;;  %v1745_v63 = vpop.f32.mrb[65].mxu1 }
 0x323   : > { %1826 = vmatpush1.bf16.msra.mxu0 %v1825_v62  ;;  %1855 = vmatpush1.bf16.msra.mxu1 %v1825_v62 }
 0x324   : > { %v1128_v3 = vpop.f32.mrb[66].mxu1  ;;  %1827 = vmatprep.subr.bf16.mxu0 %v1973_v0  ;;  %1845 = vmatprep.subr.bf16.mxu1 %v1973_v0 }
 0x325   : > { %v1748_v5 = vpop.f32.mrb[67].mxu1 }
 0x328   : > { %v1133_v14 = vpop.f32.mrb[68].mxu1 }
 0x329   : > { %v1828_v32 = vpack.c.bf16 %v1133_v14, %v1128_v3  ;;  %v1751_v15 = vpop.f32.mrb[69].mxu1 }
 0x32b   : > { %1829 = vmatpush1.bf16.msra.mxu0 %v1828_v32  ;;  %1856 = vmatpush1.bf16.msra.mxu1 %v1828_v32 }
 0x32c   : > { %v1138_v16 = vpop.f32.mrb[70].mxu1  ;;  %1830 = vmatprep.subr.bf16.mxu0 %v1973_v0  ;;  %1846 = vmatprep.subr.bf16.mxu1 %v1973_v0 }
 0x32d   : > { %v1754_v17 = vpop.f32.mrb[71].mxu1 }
 0x330   : > { %v1143_v25 = vpop.f32.mrb[72].mxu1 }
 0x331   : > { %v1831_v28 = vpack.c.bf16 %v1143_v25, %v1138_v16  ;;  %v1757_v29 = vpop.f32.mrb[73].mxu1 }
 0x333   : > { %1832 = vmatpush1.bf16.msra.mxu0 %v1831_v28  ;;  %1857 = vmatpush1.bf16.msra.mxu1 %v1831_v28 }
 0x334   : > { %v1148_v33 = vpop.f32.mrb[74].mxu1  ;;  %1833 = vmatprep.subr.bf16.mxu0 %v1973_v0  ;;  %1847 = vmatprep.subr.bf16.mxu1 %v1973_v0 }
 0x335   : > { %v1760_v39 = vpop.f32.mrb[75].mxu1 }
 0x338   : > { %v1153_v40 = vpop.f32.mrb[76].mxu1 }
 0x339   : > { %v1834_v41 = vpack.c.bf16 %v1153_v40, %v1148_v33  ;;  %v1763_v42 = vpop.f32.mrb[77].mxu1 }
 0x33b   : > { %1835 = vmatpush1.bf16.msra.mxu0 %v1834_v41  ;;  %1858 = vmatpush1.bf16.msra.mxu1 %v1834_v41 }
 0x33c   : > { %v1158_v7 = vpop.f32.mrb[78].mxu1  ;;  %1836 = vmatprep.subr.bf16.mxu0 %v1973_v0  ;;  %1848 = vmatprep.subr.bf16.mxu1 %v1973_v0 }
 0x33d   : > { %v1766_v50 = vpop.f32.mrb[79].mxu1 }
 0x340   : > { %v1163_v51 = vpop.f32.mrb[80].mxu1 }
 0x341   : > { %v1837_v53 = vpack.c.bf16 %v1163_v51, %v1158_v7  ;;  %v1769_v55 = vpop.f32.mrb[81].mxu1 }
 0x343   : > { %1838 = vmatpush1.bf16.msra.mxu0 %v1837_v53  ;;  %1859 = vmatpush1.bf16.msra.mxu1 %v1837_v53 }
 0x344   : > { %v1168_v62 = vpop.f32.mrb[82].mxu1  ;;  %1215 = vmatprep.subr.mxu0 %v1974_v1  ;;  %1849 = vmatprep.subr.mxu1 %v1974_v1 }
 0x345   : > { %v1772_v63 = vpop.f32.mrb[83].mxu1 }
 0x347   : > { %1566 = vmatpush1.msk.msra.mxu0 %vm509_vm1, %v1168_v62  ;;  %1860 = vmatpush1.msk.msra.mxu1 %vm509_vm1, %v1168_v62 }
 0x348   : > { %1240 = vmatmul.mubr.f32.vlgmr.msra.gmra.mrb[42].mxu0 %v2270_v22  ;;  %1320 = vmatmul.mubr.f32.vlgmr.msra.gmra.mrb[84].mxu1 %v2227_v36 }
 0x349   : > { %1568 = vmatprep.mubr.msk.f32.mxu0 %vm445_vm0, %v2272_v23  ;;  %1584 = vmatprep.mubr.msk.f32.mxu1 %vm445_vm0, %v2234_v45 }
 0x34c   : > { %1245 = vmatmul.mubr.f32.gmra.mrb[44].mxu0 %v2280_v34  ;;  %1325 = vmatmul.mubr.f32.gmra.mrb[86].mxu1 %v2236_v46 }
 0x34d   : > { %1569 = vmatprep.mubr.msk.f32.mxu0 %vm445_vm0, %v2285_v35  ;;  %1585 = vmatprep.mubr.msk.f32.mxu1 %vm445_vm0, %v2241_v54 }
 0x350   : > { %1250 = vmatmul.mubr.f32.gmra.mrb[46].mxu0 %v2292_v44  ;;  %1330 = vmatmul.mubr.f32.gmra.mrb[88].mxu1 %v2247_v60 }
 0x351   : > { %1570 = vmatprep.mubr.msk.f32.mxu0 %vm445_vm0, %v2296_v49  ;;  %1586 = vmatprep.mubr.msk.f32.mxu1 %vm445_vm0, %v2249_v61 }
 0x354   : > { %1255 = vmatmul.mubr.f32.gmra.mrb[48].mxu0 %v2303_v56  ;;  %1335 = vmatmul.mubr.f32.gmra.mrb[90].mxu1 %v2254_v4 }
 0x355   : > { %1571 = vmatprep.mubr.msk.f32.mxu0 %vm445_vm0, %v2307_v57  ;;  %1587 = vmatprep.mubr.msk.f32.mxu1 %vm445_vm0, %v2259_v11 }
 0x358   : > { %1260 = vmatmul.mubr.f32.gmra.mrb[50].mxu0 %v2314_v9  ;;  %1340 = vmatmul.mubr.f32.gmra.mrb[92].mxu1 %v2261_v13 }
 0x359   : > { %1572 = vmatprep.mubr.msk.f32.mxu0 %vm445_vm0, %v2318_v10 }
 0x35c   : > { %1265 = vmatmul.mubr.f32.gmra.mrb[52].mxu0 %v2325_v20 }
 0x35d   : > { %1573 = vmatprep.mubr.msk.f32.mxu0 %vm445_vm0, %v2329_v21 }
 0x360   : > { %1270 = vmatmul.mubr.f32.gmra.mrb[54].mxu0 %v2139_v26 }
 0x361   : > { %1574 = vmatprep.mubr.msk.f32.mxu0 %vm445_vm0, %v2141_v27 }
 0x364   : > { %1275 = vmatmul.mubr.f32.gmra.mrb[56].mxu0 %v2146_v31 }
 0x365   : > { %1575 = vmatprep.mubr.msk.f32.mxu0 %vm445_vm0, %v2153_v37 }
 0x368   : > { %1280 = vmatmul.mubr.f32.gmra.mrb[58].mxu0 %v2155_v38 }
 0x369   : > { %1576 = vmatprep.mubr.msk.f32.mxu0 %vm445_vm0, %v2160_v43 }
 0x36c   : > { %1285 = vmatmul.mubr.f32.gmra.mrb[60].mxu0 %v2166_v47 }
 0x36d   : > { %1577 = vmatprep.mubr.msk.f32.mxu0 %vm445_vm0, %v2168_v48 }
 0x370   : > { %1290 = vmatmul.mubr.f32.gmra.mrb[62].mxu0 %v2173_v52 }
 0x371   : > { %1578 = vmatprep.mubr.msk.f32.mxu0 %vm445_vm0, %v2180_v58 }
 0x374   : > { %1295 = vmatmul.mubr.f32.gmra.mrb[64].mxu0 %v2182_v59 }
 0x375   : > { %1579 = vmatprep.mubr.msk.f32.mxu0 %vm445_vm0, %v2187_v2 }
 0x378   : > { %1300 = vmatmul.mubr.f32.gmra.mrb[66].mxu0 %v2193_v6 }
 0x379   : > { %1580 = vmatprep.mubr.msk.f32.mxu0 %vm445_vm0, %v2195_v8 }
 0x37c   : > { %1305 = vmatmul.mubr.f32.gmra.mrb[68].mxu0 %v2200_v12 }
 0x37d   : > { %1581 = vmatprep.mubr.msk.f32.mxu0 %vm445_vm0, %v2207_v18 }
 0x380   : > { %1310 = vmatmul.mubr.f32.gmra.mrb[70].mxu0 %v2209_v19 }
 0x381   : > { %1582 = vmatprep.mubr.msk.f32.mxu0 %vm445_vm0, %v2214_v24 }
 0x384   : > { %1315 = vmatmul.mubr.f32.gmra.mrb[72].mxu0 %v2220_v30 }
 0x41b   : > { %v1241_v0 = vpop.f32.mrb[42].mxu0  ;;  %v1321_v1 = vpop.f32.mrb[84].mxu1 }
 0x41c   : > { %v1345_v26 = vmax.f32 %v1241_v0, 0.0  ;;  %v1243_v27 = vpop.f32.mrb[43].mxu0  ;;  %v1361_v31 = vmax.f32 %v1321_v1, 0.0  ;;  %v1323_v37 = vpop.f32.mrb[85].mxu1 }
 0x41e   : > { %1366 = vst.msk [vmem:[%s2596_s13] sm:$0xff] %vm938_vm4, %v1345_v26  ;;  %1382 = vst.msk [vmem:[%s2596_s13 + $0x80] sm:$0xff] %vm938_vm4, %v1361_v31 }
 0x41f   : > { %v1246_v38 = vpop.f32.mrb[44].mxu0  ;;  %v1326_v43 = vpop.f32.mrb[86].mxu1 }
 0x420   : > { %v1346_v47 = vmax.f32 %v1246_v38, 0.0  ;;  %v1248_v48 = vpop.f32.mrb[45].mxu0  ;;  %v1362_v52 = vmax.f32 %v1326_v43, 0.0  ;;  %v1328_v58 = vpop.f32.mrb[87].mxu1 }
 0x422   : > { %1367 = vst.msk [vmem:[%s2596_s13 + $0x8] sm:$0xff] %vm938_vm4, %v1346_v47  ;;  %1383 = vst.msk [vmem:[%s2596_s13 + $0x88] sm:$0xff] %vm938_vm4, %v1362_v52 }
 0x423   : > { %v1251_v59 = vpop.f32.mrb[46].mxu0  ;;  %v1331_v2 = vpop.f32.mrb[88].mxu1 }
 0x424   : > { %v1347_v6 = vmax.f32 %v1251_v59, 0.0  ;;  %v1253_v8 = vpop.f32.mrb[47].mxu0  ;;  %v1363_v12 = vmax.f32 %v1331_v2, 0.0  ;;  %v1333_v18 = vpop.f32.mrb[89].mxu1 }
 0x426   : > { %1368 = vst.msk [vmem:[%s2596_s13 + $0x10] sm:$0xff] %vm938_vm4, %v1347_v6  ;;  %1384 = vst.msk [vmem:[%s2596_s13 + $0x90] sm:$0xff] %vm938_vm4, %v1363_v12 }
 0x427   : > { %v1256_v19 = vpop.f32.mrb[48].mxu0  ;;  %v1336_v24 = vpop.f32.mrb[90].mxu1 }
 0x428   : > { %v1348_v30 = vmax.f32 %v1256_v19, 0.0  ;;  %v1258_v36 = vpop.f32.mrb[49].mxu0  ;;  %v1364_v45 = vmax.f32 %v1336_v24, 0.0  ;;  %v1338_v46 = vpop.f32.mrb[91].mxu1 }
 0x42a   : > { %1369 = vst.msk [vmem:[%s2596_s13 + $0x18] sm:$0xff] %vm938_vm4, %v1348_v30  ;;  %1385 = vst.msk [vmem:[%s2596_s13 + $0x98] sm:$0xff] %vm938_vm4, %v1364_v45 }
 0x42b   : > { %v1261_v54 = vpop.f32.mrb[50].mxu0  ;;  %v1341_v60 = vpop.f32.mrb[92].mxu1 }
 0x42c   : > { %v1349_v61 = vmax.f32 %v1261_v54, 0.0  ;;  %v1263_v4 = vpop.f32.mrb[51].mxu0  ;;  %v1365_v11 = vmax.f32 %v1341_v60, 0.0  ;;  %v1343_v13 = vpop.f32.mrb[93].mxu1 }
 0x42e   : > { %1370 = vst.msk [vmem:[%s2596_s13 + $0x20] sm:$0xff] %vm938_vm4, %v1349_v61 }
 0x42f   : > { %1387 = vst.msk [vmem:[%s2596_s13 + $0xa0] sm:$0x1] %vm1386_vm5, %v1365_v11  ;;  %v1266_v22 = vpop.f32.mrb[52].mxu0 }
 0x430   : > { %v1350_v23 = vmax.f32 %v1266_v22, 0.0  ;;  %v1268_v34 = vpop.f32.mrb[53].mxu0 }
 0x432   : > { %1371 = vst.msk [vmem:[%s2596_s13 + $0x28] sm:$0xff] %vm938_vm4, %v1350_v23 }
 0x433   : > { %v1271_v35 = vpop.f32.mrb[54].mxu0 }
 0x434   : > { %v1351_v44 = vmax.f32 %v1271_v35, 0.0  ;;  %v1273_v49 = vpop.f32.mrb[55].mxu0 }
 0x436   : > { %1372 = vst.msk [vmem:[%s2596_s13 + $0x30] sm:$0xff] %vm938_vm4, %v1351_v44 }
 0x437   : > { %v1276_v56 = vpop.f32.mrb[56].mxu0 }
 0x438   : > { %v1352_v57 = vmax.f32 %v1276_v56, 0.0  ;;  %v1278_v9 = vpop.f32.mrb[57].mxu0 }
 0x43a   : > { %1373 = vst.msk [vmem:[%s2596_s13 + $0x38] sm:$0xff] %vm938_vm4, %v1352_v57 }
 0x43b   : > { %v1281_v10 = vpop.f32.mrb[58].mxu0 }
 0x43c   : > { %v1353_v20 = vmax.f32 %v1281_v10, 0.0  ;;  %v1283_v21 = vpop.f32.mrb[59].mxu0 }
 0x43e   : > { %1374 = vst.msk [vmem:[%s2596_s13 + $0x40] sm:$0xff] %vm938_vm4, %v1353_v20 }
 0x43f   : > { %v1286_v3 = vpop.f32.mrb[60].mxu0 }
 0x440   : > { %v1354_v5 = vmax.f32 %v1286_v3, 0.0  ;;  %v1288_v14 = vpop.f32.mrb[61].mxu0 }
 0x442   : > { %1375 = vst.msk [vmem:[%s2596_s13 + $0x48] sm:$0xff] %vm938_vm4, %v1354_v5 }
 0x443   : > { %v1291_v32 = vpop.f32.mrb[62].mxu0 }
 0x444   : > { %v1355_v15 = vmax.f32 %v1291_v32, 0.0  ;;  %v1293_v16 = vpop.f32.mrb[63].mxu0 }
 0x446   : > { %1376 = vst.msk [vmem:[%s2596_s13 + $0x50] sm:$0xff] %vm938_vm4, %v1355_v15 }
 0x447   : > { %v1296_v17 = vpop.f32.mrb[64].mxu0 }
 0x448   : > { %v1356_v25 = vmax.f32 %v1296_v17, 0.0  ;;  %v1298_v28 = vpop.f32.mrb[65].mxu0 }
 0x44a   : > { %1377 = vst.msk [vmem:[%s2596_s13 + $0x58] sm:$0xff] %vm938_vm4, %v1356_v25 }
 0x44b   : > { %v1301_v29 = vpop.f32.mrb[66].mxu0 }
 0x44c   : > { %v1357_v33 = vmax.f32 %v1301_v29, 0.0  ;;  %v1303_v39 = vpop.f32.mrb[67].mxu0 }
 0x44e   : > { %1378 = vst.msk [vmem:[%s2596_s13 + $0x60] sm:$0xff] %vm938_vm4, %v1357_v33 }
 0x44f   : > { %v1306_v40 = vpop.f32.mrb[68].mxu0 }
 0x450   : > { %v1358_v41 = vmax.f32 %v1306_v40, 0.0  ;;  %v1308_v42 = vpop.f32.mrb[69].mxu0 }
 0x452   : > { %1379 = vst.msk [vmem:[%s2596_s13 + $0x68] sm:$0xff] %vm938_vm4, %v1358_v41 }
 0x453   : > { %v1311_v7 = vpop.f32.mrb[70].mxu0 }
 0x454   : > { %v1359_v50 = vmax.f32 %v1311_v7, 0.0  ;;  %v1313_v51 = vpop.f32.mrb[71].mxu0 }
 0x456   : > { %1380 = vst.msk [vmem:[%s2596_s13 + $0x70] sm:$0xff] %vm938_vm4, %v1359_v50 }
 0x457   : > { %v1316_v53 = vpop.f32.mrb[72].mxu0 }
 0x458   : > { %v1360_v55 = vmax.f32 %v1316_v53, 0.0  ;;  %v1318_v62 = vpop.f32.mrb[73].mxu0 }
 0x45a   : > { %1381 = vst.msk [vmem:[%s2596_s13 + $0x78] sm:$0xff] %vm938_vm4, %v1360_v55 }
 0x45b PF: > { %s17_s18 = sadd.s32 1, %s1967_s18  }
 0x45c   : > { %p14_p5 = scmp.ge.s32.totalorder %s17_s18, 4  }
 0x45e   :  { %16 = sbr.rel (!%p14_p5) target bundleno = 2 (0x2), region = 85 }
 0x465   :  { %1409 = vsyncpa [#allocation3], 1 }
 0x466   :  { %1411 = vsyncpa [#allocation3 + $0x1], 1 }
 0x467   :  { %1412 = vsyncpa [#allocation5], 1 }

// kernel: gcn_forward.3
= control target key start
LH: loop header
LB: loop body
LE: loop exit
PB: predicated region body
PF: predicated region fallthrough
CT: control target
= control target key end

     0   :  { %v4001_v43 = vmov 1983009808   ;;  %v704_v45 = vlaneseq  ;;  %s6166_s0 = inlined_call_operand.vmem [shape: f32[2,5152], index: 0, kind: input, shape index: {}]   ;;  %s6167_s1 = inlined_call_operand.vmem [shape: f32[5152,16], index: 1, kind: input, shape index: {}]   ;;  %s6168_s2 = inlined_call_operand.vmem [shape: f32[1,16], index: 2, kind: input, shape index: {}]   ;;  %s6169_s3 = inlined_call_operand.vmem [shape: f32[16,8], index: 3, kind: input, shape index: {}]   ;;  %s6170_s4 = inlined_call_operand.vmem [shape: f32[1,8], index: 4, kind: input, shape index: {}]   ;;  %s6171_s5 = inlined_call_operand.vmem [shape: f32[8,2], index: 5, kind: input, shape index: {}]   ;;  %s6172_s6 = inlined_call_operand.vmem [shape: f32[1,2], index: 6, kind: input, shape index: {}]   ;;  %s6173_s7 = inlined_call_operand.hbm [shape: f32[2,2], index: 7, kind: output, shape index: {}]  }
   0x1   :  { %v54_v0 = vld [vmem:[%s6167_s1 + $0x80] sm:$0xff]  ;;  %v55_v1 = vld [vmem:[%s6167_s1 + $0x88] sm:$0xff]  ;;  %v56_v11 = vld [vmem:[%s6167_s1 + $0x90] sm:$0xff]  ;;  %v702_v44 = vunpack.c.l.s4 %v4001_v43 }
   0x2   :  { %v38_v2 = vld [vmem:[%s6167_s1] sm:$0xff]  ;;  %v3313_v3 = vpack.c.bf16 %v55_v1, %v54_v0  ;;  %v39_v4 = vld [vmem:[%s6167_s1 + $0x8] sm:$0xff]  ;;  %v57_v13 = vld [vmem:[%s6167_s1 + $0x98] sm:$0xff]  ;;  %v705_v60 = vshrl.u32 %v704_v45, 7 }
   0x3   :  { %v86_v5 = vld [vmem:[%s6167_s1 + $0x180] sm:$0xff]  ;;  %v87_v6 = vld [vmem:[%s6167_s1 + $0x188] sm:$0xff]  ;;  %v3315_v7 = vpack.c.bf16 %v39_v4, %v38_v2  ;;  %v40_v14 = vld [vmem:[%s6167_s1 + $0x10] sm:$0xff]  ;;  %v3317_v16 = vpack.c.bf16 %v57_v13, %v56_v11  ;;  %v703_v59 = vunpack.c.0.s8 %v702_v44 }
   0x4   :  { %v3345_v8 = vpack.c.bf16 %v87_v6, %v86_v5  ;;  %v70_v9 = vld [vmem:[%s6167_s1 + $0x100] sm:$0xff]  ;;  %v71_v10 = vld [vmem:[%s6167_s1 + $0x108] sm:$0xff]  ;;  %3314 = vmatprep.subr.bf16.mxu0 %v3313_v3  ;;  %v41_v15 = vld [vmem:[%s6167_s1 + $0x18] sm:$0xff] }
   0x5   :  { %v3347_v12 = vpack.c.bf16 %v71_v10, %v70_v9  ;;  %3316 = vmatpush3.bf16.msra.mxu0 %v3315_v7  ;;  %v3319_v17 = vpack.c.bf16 %v41_v15, %v40_v14  ;;  %v88_v18 = vld [vmem:[%s6167_s1 + $0x190] sm:$0xff]  ;;  %v89_v19 = vld [vmem:[%s6167_s1 + $0x198] sm:$0xff]  ;;  %v58_v23 = vld [vmem:[%s6167_s1 + $0xa0] sm:$0xff]  ;;  %v4190_v10 = vsub.s32 %v703_v59, %v705_v60 }
   0x6   :  { %3346 = vmatprep.subr.bf16.mxu1 %v3345_v8  ;;  %v72_v20 = vld [vmem:[%s6167_s1 + $0x110] sm:$0xff]  ;;  %v3349_v21 = vpack.c.bf16 %v89_v19, %v88_v18  ;;  %v73_v22 = vld [vmem:[%s6167_s1 + $0x118] sm:$0xff]  ;;  %v59_v24 = vld [vmem:[%s6167_s1 + $0xa8] sm:$0xff]  ;;  %3318 = vmatprep.subr.bf16.mxu0 %v3317_v16 }
   0x7   :  { %3348 = vmatpush3.bf16.msra.mxu1 %v3347_v12  ;;  %v3351_v25 = vpack.c.bf16 %v73_v22, %v72_v20  ;;  %v3321_v26 = vpack.c.bf16 %v59_v24, %v58_v23  ;;  %v42_v27 = vld [vmem:[%s6167_s1 + $0x20] sm:$0xff]  ;;  %v43_v28 = vld [vmem:[%s6167_s1 + $0x28] sm:$0xff]  ;;  %v60_v35 = vld [vmem:[%s6167_s1 + $0xb0] sm:$0xff] }
   0x8   :  { %v90_v29 = vld [vmem:[%s6167_s1 + $0x1a0] sm:$0xff]  ;;  %3350 = vmatprep.subr.bf16.mxu1 %v3349_v21  ;;  %v91_v30 = vld [vmem:[%s6167_s1 + $0x1a8] sm:$0xff]  ;;  %v3323_v33 = vpack.c.bf16 %v43_v28, %v42_v27  ;;  %v61_v36 = vld [vmem:[%s6167_s1 + $0xb8] sm:$0xff] }
   0x9   :  { %v74_v31 = vld [vmem:[%s6167_s1 + $0x120] sm:$0xff]  ;;  %v75_v32 = vld [vmem:[%s6167_s1 + $0x128] sm:$0xff]  ;;  %3320 = vmatpush3.bf16.msra.mxu0 %v3319_v17  ;;  %v3353_v34 = vpack.c.bf16 %v91_v30, %v90_v29  ;;  %v44_v37 = vld [vmem:[%s6167_s1 + $0x30] sm:$0xff]  ;;  %v3325_v39 = vpack.c.bf16 %v61_v36, %v60_v35 }
   0xa   :  { %3322 = vmatprep.subr.bf16.mxu0 %v3321_v26  ;;  %v3355_v38 = vpack.c.bf16 %v75_v32, %v74_v31  ;;  %v45_v40 = vld [vmem:[%s6167_s1 + $0x38] sm:$0xff]  ;;  %v92_v41 = vld [vmem:[%s6167_s1 + $0x1b0] sm:$0xff]  ;;  %v62_v49 = vld [vmem:[%s6167_s1 + $0xc0] sm:$0xff] }
   0xb   :  { %3352 = vmatpush3.bf16.msra.mxu1 %v3351_v25  ;;  %v93_v42 = vld [vmem:[%s6167_s1 + $0x1b8] sm:$0xff]  ;;  %v76_v47 = vld [vmem:[%s6167_s1 + $0x130] sm:$0xff]  ;;  %v63_v50 = vld [vmem:[%s6167_s1 + $0xc8] sm:$0xff]  ;;  %v3327_v51 = vpack.c.bf16 %v45_v40, %v44_v37 }
   0xc   :  { %3354 = vmatprep.subr.bf16.mxu1 %v3353_v34  ;;  %v3357_v46 = vpack.c.bf16 %v93_v42, %v92_v41  ;;  %v77_v48 = vld [vmem:[%s6167_s1 + $0x138] sm:$0xff]  ;;  %v94_v52 = vld [vmem:[%s6167_s1 + $0x1c0] sm:$0xff]  ;;  %v95_v53 = vld [vmem:[%s6167_s1 + $0x1c8] sm:$0xff]  ;;  %v3329_v55 = vpack.c.bf16 %v63_v50, %v62_v49 }
   0xd   :  { %3324 = vmatpush3.bf16.msra.mxu0 %v3323_v33  ;;  %v3359_v54 = vpack.c.bf16 %v77_v48, %v76_v47  ;;  %v46_v56 = vld [vmem:[%s6167_s1 + $0x40] sm:$0xff]  ;;  %v47_v57 = vld [vmem:[%s6167_s1 + $0x48] sm:$0xff]  ;;  %v3361_v61 = vpack.c.bf16 %v95_v53, %v94_v52  ;;  %v64_v63 = vld [vmem:[%s6167_s1 + $0xd0] sm:$0xff] }
   0xe   :  { %3326 = vmatprep.subr.bf16.mxu0 %v3325_v39  ;;  %v78_v58 = vld [vmem:[%s6167_s1 + $0x140] sm:$0xff]  ;;  %v79_v62 = vld [vmem:[%s6167_s1 + $0x148] sm:$0xff]  ;;  %v65_v0 = vld [vmem:[%s6167_s1 + $0xd8] sm:$0xff]  ;;  %v3331_v3 = vpack.c.bf16 %v47_v57, %v46_v56 }
   0xf   :  { %3356 = vmatpush3.bf16.msra.mxu1 %v3355_v38  ;;  %v96_v1 = vld [vmem:[%s6167_s1 + $0x1d0] sm:$0xff]  ;;  %v97_v2 = vld [vmem:[%s6167_s1 + $0x1d8] sm:$0xff]  ;;  %v3363_v5 = vpack.c.bf16 %v79_v62, %v78_v58  ;;  %v3333_v6 = vpack.c.bf16 %v65_v0, %v64_v63  ;;  %v66_v12 = vld [vmem:[%s6167_s1 + $0xe0] sm:$0xff] }
  0x10   :  { %3358 = vmatprep.subr.bf16.mxu1 %v3357_v46  ;;  %v48_v4 = vld [vmem:[%s6167_s1 + $0x50] sm:$0xff]  ;;  %v49_v7 = vld [vmem:[%s6167_s1 + $0x58] sm:$0xff]  ;;  %v3365_v11 = vpack.c.bf16 %v97_v2, %v96_v1  ;;  %v67_v13 = vld [vmem:[%s6167_s1 + $0xe8] sm:$0xff] }
  0x11   :  { %3328 = vmatpush3.bf16.msra.mxu0 %v3327_v51  ;;  %v80_v8 = vld [vmem:[%s6167_s1 + $0x150] sm:$0xff]  ;;  %v81_v9 = vld [vmem:[%s6167_s1 + $0x158] sm:$0xff]  ;;  %v98_v14 = vld [vmem:[%s6167_s1 + $0x1e0] sm:$0xff]  ;;  %v3335_v16 = vpack.c.bf16 %v49_v7, %v48_v4  ;;  %v3337_v19 = vpack.c.bf16 %v67_v13, %v66_v12 }
  0x12   :  { %3330 = vmatprep.subr.bf16.mxu0 %v3329_v55  ;;  %v99_v15 = vld [vmem:[%s6167_s1 + $0x1e8] sm:$0xff]  ;;  %v3367_v17 = vpack.c.bf16 %v81_v9, %v80_v8  ;;  %v27_v18 = vld [vmem:[%s6166_s0] sm:$0xff]  ;;  %v68_v27 = vld [vmem:[%s6167_s1 + $0xf0] sm:$0xff] }
  0x13   :  { %3360 = vmatpush3.bf16.msra.mxu1 %v3359_v54  ;;  %v50_v20 = vld [vmem:[%s6167_s1 + $0x60] sm:$0xff]  ;;  %v51_v21 = vld [vmem:[%s6167_s1 + $0x68] sm:$0xff]  ;;  %v707_v23 = vrot.slane %v27_v18, %v4190_v10  ;;  %v700_v24 = vcombine.high %v27_v18, %v27_v18  ;;  %v3369_v25 = vpack.c.bf16 %v99_v15, %v98_v14  ;;  %v69_v28 = vld [vmem:[%s6167_s1 + $0xf8] sm:$0xff] }
  0x14   :  { %3362 = vmatprep.subr.bf16.mxu1 %v3361_v61  ;;  %v82_v22 = vld [vmem:[%s6167_s1 + $0x160] sm:$0xff]  ;;  %v83_v26 = vld [vmem:[%s6167_s1 + $0x168] sm:$0xff]  ;;  %v100_v29 = vld [vmem:[%s6167_s1 + $0x1f0] sm:$0xff]  ;;  %v3339_v33 = vpack.c.bf16 %v51_v21, %v50_v20  ;;  %v3341_v35 = vpack.c.bf16 %v69_v28, %v68_v27 }
  0x15   :  { %3332 = vmatpush3.bf16.msra.mxu0 %v3331_v3  ;;  %v101_v30 = vld [vmem:[%s6167_s1 + $0x1f8] sm:$0xff]  ;;  %v715_v31 = vcombine.high %v707_v23, %v707_v23  ;;  %v714_v32 = vrot.slane %v700_v24, %v4190_v10  ;;  %v3371_v34 = vpack.c.bf16 %v83_v26, %v82_v22  ;;  %v52_v36 = vld [vmem:[%s6167_s1 + $0x70] sm:$0xff]  ;;  %v118_v42 = vld [vmem:[%s6167_s1 + $0x280] sm:$0xff] }
  0x16   :  { %3334 = vmatprep.subr.bf16.mxu0 %v3333_v6  ;;  %v53_v37 = vld [vmem:[%s6167_s1 + $0x78] sm:$0xff]  ;;  %v84_v38 = vld [vmem:[%s6167_s1 + $0x170] sm:$0xff]  ;;  %v3373_v40 = vpack.c.bf16 %v101_v30, %v100_v29  ;;  %v119_v43 = vld [vmem:[%s6167_s1 + $0x288] sm:$0xff] }
  0x17   :  { %3364 = vmatpush3.bf16.msra.mxu1 %v3363_v5  ;;  %v716_v39 = vcombine.high %v714_v32, %v714_v32  ;;  %984 = vmatprep.mubr.f32.mxu0 %v715_v31  ;;  %v85_v41 = vld [vmem:[%s6167_s1 + $0x178] sm:$0xff]  ;;  %v150_v44 = vld [vmem:[%s6167_s1 + $0x380] sm:$0xff]  ;;  %v151_v45 = vld [vmem:[%s6167_s1 + $0x388] sm:$0xff]  ;;  %v3343_v46 = vpack.c.bf16 %v53_v37, %v52_v36  ;;  %v3377_v48 = vpack.c.bf16 %v119_v43, %v118_v42 }
  0x18   :  { %3366 = vmatprep.subr.bf16.mxu1 %v3365_v11  ;;  %v3375_v47 = vpack.c.bf16 %v85_v41, %v84_v38  ;;  %v102_v49 = vld [vmem:[%s6167_s1 + $0x200] sm:$0xff]  ;;  %v103_v50 = vld [vmem:[%s6167_s1 + $0x208] sm:$0xff]  ;;  %v3409_v52 = vpack.c.bf16 %v151_v45, %v150_v44  ;;  %v120_v54 = vld [vmem:[%s6167_s1 + $0x290] sm:$0xff] }
  0x19   :  { %3336 = vmatpush3.bf16.msra.mxu0 %v3335_v16  ;;  %1054 = vmatprep.mubr.f32.mxu1 %v716_v39  ;;  %v134_v51 = vld [vmem:[%s6167_s1 + $0x300] sm:$0xff]  ;;  %v135_v53 = vld [vmem:[%s6167_s1 + $0x308] sm:$0xff]  ;;  %v121_v55 = vld [vmem:[%s6167_s1 + $0x298] sm:$0xff]  ;;  %v3379_v58 = vpack.c.bf16 %v103_v50, %v102_v49 }
  0x1a   :  { %3338 = vmatprep.subr.bf16.mxu0 %v3337_v19  ;;  %v152_v56 = vld [vmem:[%s6167_s1 + $0x390] sm:$0xff]  ;;  %v153_v57 = vld [vmem:[%s6167_s1 + $0x398] sm:$0xff]  ;;  %v3411_v59 = vpack.c.bf16 %v135_v53, %v134_v51  ;;  %v3381_v60 = vpack.c.bf16 %v121_v55, %v120_v54  ;;  %v122_v2 = vld [vmem:[%s6167_s1 + $0x2a0] sm:$0xff] }
  0x1b   :  { %3368 = vmatpush3.bf16.msra.mxu1 %v3367_v17  ;;  %v104_v61 = vld [vmem:[%s6167_s1 + $0x210] sm:$0xff]  ;;  %v105_v62 = vld [vmem:[%s6167_s1 + $0x218] sm:$0xff]  ;;  %v3413_v0 = vpack.c.bf16 %v153_v57, %v152_v56  ;;  %v123_v3 = vld [vmem:[%s6167_s1 + $0x2a8] sm:$0xff] }
  0x1c   :  { %3370 = vmatprep.subr.bf16.mxu1 %v3369_v25  ;;  %v136_v63 = vld [vmem:[%s6167_s1 + $0x310] sm:$0xff]  ;;  %v137_v1 = vld [vmem:[%s6167_s1 + $0x318] sm:$0xff]  ;;  %v154_v4 = vld [vmem:[%s6167_s1 + $0x3a0] sm:$0xff]  ;;  %v3383_v6 = vpack.c.bf16 %v105_v62, %v104_v61  ;;  %v3385_v8 = vpack.c.bf16 %v123_v3, %v122_v2 }
  0x1d   :  { %3340 = vmatpush3.bf16.msra.mxu0 %v3339_v33  ;;  %v155_v5 = vld [vmem:[%s6167_s1 + $0x3a8] sm:$0xff]  ;;  %v3415_v7 = vpack.c.bf16 %v137_v1, %v136_v63  ;;  %v106_v9 = vld [vmem:[%s6167_s1 + $0x220] sm:$0xff]  ;;  %v124_v15 = vld [vmem:[%s6167_s1 + $0x2b0] sm:$0xff] }
  0x1e   :  { %3342 = vmatprep.subr.bf16.mxu0 %v3341_v35  ;;  %v107_v11 = vld [vmem:[%s6167_s1 + $0x228] sm:$0xff]  ;;  %v138_v12 = vld [vmem:[%s6167_s1 + $0x320] sm:$0xff]  ;;  %v3417_v13 = vpack.c.bf16 %v155_v5, %v154_v4  ;;  %v125_v16 = vld [vmem:[%s6167_s1 + $0x2b8] sm:$0xff] }
  0x1f   :  { %3372 = vmatpush3.bf16.msra.mxu1 %v3371_v34  ;;  %v139_v14 = vld [vmem:[%s6167_s1 + $0x328] sm:$0xff]  ;;  %v156_v17 = vld [vmem:[%s6167_s1 + $0x3b0] sm:$0xff]  ;;  %v157_v18 = vld [vmem:[%s6167_s1 + $0x3b8] sm:$0xff]  ;;  %v3387_v19 = vpack.c.bf16 %v107_v11, %v106_v9  ;;  %v3389_v22 = vpack.c.bf16 %v125_v16, %v124_v15 }
  0x20   :  { %3374 = vmatprep.subr.bf16.mxu1 %v3373_v40  ;;  %v108_v20 = vld [vmem:[%s6167_s1 + $0x230] sm:$0xff]  ;;  %v3419_v21 = vpack.c.bf16 %v139_v14, %v138_v12  ;;  %v141_v25 = vld [vmem:[%s6167_s1 + $0x338] sm:$0xff]  ;;  %v3421_v26 = vpack.c.bf16 %v157_v18, %v156_v17  ;;  %v126_v27 = vld [vmem:[%s6167_s1 + $0x2c0] sm:$0xff] }
  0x21   :  { %3344 = vmatpush3.bf16.msra.mxu0 %v3343_v46  ;;  %v140_v24 = vld [vmem:[%s6167_s1 + $0x330] sm:$0xff]  ;;  %v127_v28 = vld [vmem:[%s6167_s1 + $0x2c8] sm:$0xff]  ;;  %v158_v30 = vld [vmem:[%s6167_s1 + $0x3c0] sm:$0xff] }
  0x22   :  { %3378 = vmatprep.subr.bf16.mxu0 %v3377_v48  ;;  %v28_v29 = vld [vmem:[%s6166_s0 + $0x8] sm:$0xff]  ;;  %v3423_v35 = vpack.c.bf16 %v141_v25, %v140_v24  ;;  %v3393_v36 = vpack.c.bf16 %v127_v28, %v126_v27  ;;  %v110_v37 = vld [vmem:[%s6167_s1 + $0x240] sm:$0xff]  ;;  %v128_v44 = vld [vmem:[%s6167_s1 + $0x2d0] sm:$0xff] }
  0x23   :  { %3376 = vmatpush3.bf16.msra.mxu1 %v3375_v47  ;;  %v159_v31 = vld [vmem:[%s6167_s1 + $0x3c8] sm:$0xff]  ;;  %v717_v33 = vcombine.high %v28_v29, %v28_v29  ;;  %v142_v39 = vld [vmem:[%s6167_s1 + $0x340] sm:$0xff]  ;;  %v129_v45 = vld [vmem:[%s6167_s1 + $0x2d8] sm:$0xff] }
  0x24   :  { %3410 = vmatprep.subr.bf16.mxu1 %v3409_v52  ;;  %985 = vmatmul.mubr.f32.vlgmr.msra.gmra.mrb[0].mxu0 %v707_v23  ;;  %v109_v23 = vld [vmem:[%s6167_s1 + $0x238] sm:$0xff]  ;;  %v111_v38 = vld [vmem:[%s6167_s1 + $0x248] sm:$0xff]  ;;  %v3425_v42 = vpack.c.bf16 %v159_v31, %v158_v30  ;;  %v160_v46 = vld [vmem:[%s6167_s1 + $0x3d0] sm:$0xff]  ;;  %v3397_v51 = vpack.c.bf16 %v129_v45, %v128_v44 }
  0x25   :  { %3380 = vmatpush3.bf16.msra.mxu0 %v3379_v58  ;;  %v3391_v34 = vpack.c.bf16 %v109_v23, %v108_v20  ;;  %v4371_v41 = vrot.slane %v717_v33, %v4190_v10  ;;  %v143_v43 = vld [vmem:[%s6167_s1 + $0x348] sm:$0xff]  ;;  %v161_v47 = vld [vmem:[%s6167_s1 + $0x3d8] sm:$0xff]  ;;  %v3395_v49 = vpack.c.bf16 %v111_v38, %v110_v37  ;;  %v112_v52 = vld [vmem:[%s6167_s1 + $0x250] sm:$0xff] }
  0x26   :  { %1055 = vmatmul.mubr.f32.vlgmr.msra.gmra.mrb[0].mxu1 %v714_v32  ;;  %3382 = vmatprep.subr.bf16.mxu0 %v3381_v60  ;;  %v4357_v32 = vrot.slane %v28_v29, %v4190_v10  ;;  %v3427_v50 = vpack.c.bf16 %v143_v43, %v142_v39  ;;  %v113_v53 = vld [vmem:[%s6167_s1 + $0x258] sm:$0xff]  ;;  %v144_v54 = vld [vmem:[%s6167_s1 + $0x350] sm:$0xff]  ;;  %v3429_v55 = vpack.c.bf16 %v161_v47, %v160_v46  ;;  %v130_v57 = vld [vmem:[%s6167_s1 + $0x2e0] sm:$0xff] }
  0x27   :  { %3412 = vmatpush3.bf16.msra.mxu1 %v3411_v59  ;;  %v733_v48 = vcombine.high %v4371_v41, %v4371_v41  ;;  %v145_v56 = vld [vmem:[%s6167_s1 + $0x358] sm:$0xff]  ;;  %v131_v58 = vld [vmem:[%s6167_s1 + $0x2e8] sm:$0xff]  ;;  %v162_v59 = vld [vmem:[%s6167_s1 + $0x3e0] sm:$0xff]  ;;  %v3399_v61 = vpack.c.bf16 %v113_v53, %v112_v52 }
  0x28   :  { %3414 = vmatprep.subr.bf16.mxu1 %v3413_v0  ;;  %v732_v40 = vcombine.high %v4357_v32, %v4357_v32  ;;  %v163_v60 = vld [vmem:[%s6167_s1 + $0x3e8] sm:$0xff]  ;;  %v3431_v62 = vpack.c.bf16 %v145_v56, %v144_v54  ;;  %v3401_v63 = vpack.c.bf16 %v131_v58, %v130_v57  ;;  %v114_v0 = vld [vmem:[%s6167_s1 + $0x260] sm:$0xff]  ;;  %v132_v5 = vld [vmem:[%s6167_s1 + $0x2f0] sm:$0xff] }
  0x29   :  { %3384 = vmatpush3.bf16.msra.mxu0 %v3383_v6  ;;  %1194 = vmatprep.mubr.f32.mxu1 %v733_v48  ;;  %v115_v1 = vld [vmem:[%s6167_s1 + $0x268] sm:$0xff]  ;;  %v146_v2 = vld [vmem:[%s6167_s1 + $0x360] sm:$0xff]  ;;  %v3433_v3 = vpack.c.bf16 %v163_v60, %v162_v59  ;;  %v133_v6 = vld [vmem:[%s6167_s1 + $0x2f8] sm:$0xff] }
  0x2a   :  { %3386 = vmatprep.subr.bf16.mxu0 %v3385_v8  ;;  %1124 = vmatprep.mubr.f32.mxu0 %v732_v40  ;;  %v147_v4 = vld [vmem:[%s6167_s1 + $0x368] sm:$0xff]  ;;  %v165_v8 = vld [vmem:[%s6167_s1 + $0x3f8] sm:$0xff]  ;;  %v3403_v9 = vpack.c.bf16 %v115_v1, %v114_v0  ;;  %v3405_v12 = vpack.c.bf16 %v133_v6, %v132_v5  ;;  %v148_v15 = vld [vmem:[%s6167_s1 + $0x370] sm:$0xff] }
  0x2b   :  { %3416 = vmatpush3.bf16.msra.mxu1 %v3415_v7  ;;  %v164_v7 = vld [vmem:[%s6167_s1 + $0x3f0] sm:$0xff]  ;;  %v3435_v11 = vpack.c.bf16 %v147_v4, %v146_v2  ;;  %v117_v14 = vld [vmem:[%s6167_s1 + $0x278] sm:$0xff]  ;;  %v182_v18 = vld [vmem:[%s6167_s1 + $0x480] sm:$0xff] }
  0x2c   :  { %3418 = vmatprep.subr.bf16.mxu1 %v3417_v13  ;;  %v116_v13 = vld [vmem:[%s6167_s1 + $0x270] sm:$0xff]  ;;  %v3437_v16 = vpack.c.bf16 %v165_v8, %v164_v7  ;;  %v149_v17 = vld [vmem:[%s6167_s1 + $0x378] sm:$0xff]  ;;  %v214_v20 = vld [vmem:[%s6167_s1 + $0x580] sm:$0xff] }
  0x2d   :  { %3388 = vmatpush3.bf16.msra.mxu0 %v3387_v19  ;;  %v183_v19 = vld [vmem:[%s6167_s1 + $0x488] sm:$0xff]  ;;  %v166_v23 = vld [vmem:[%s6167_s1 + $0x400] sm:$0xff]  ;;  %v3439_v24 = vpack.c.bf16 %v149_v17, %v148_v15  ;;  %v184_v30 = vld [vmem:[%s6167_s1 + $0x490] sm:$0xff] }
  0x2e   :  { %3390 = vmatprep.subr.bf16.mxu0 %v3389_v22  ;;  %v3407_v22 = vpack.c.bf16 %v117_v14, %v116_v13  ;;  %v3441_v25 = vpack.c.bf16 %v183_v19, %v182_v18  ;;  %v198_v27 = vld [vmem:[%s6167_s1 + $0x500] sm:$0xff]  ;;  %v199_v28 = vld [vmem:[%s6167_s1 + $0x508] sm:$0xff]  ;;  %v185_v31 = vld [vmem:[%s6167_s1 + $0x498] sm:$0xff] }
  0x2f   :  { %3420 = vmatpush3.bf16.msra.mxu1 %v3419_v21  ;;  %v215_v21 = vld [vmem:[%s6167_s1 + $0x588] sm:$0xff]  ;;  %v216_v33 = vld [vmem:[%s6167_s1 + $0x590] sm:$0xff]  ;;  %v3445_v38 = vpack.c.bf16 %v185_v31, %v184_v30  ;;  %v169_v40 = vld [vmem:[%s6167_s1 + $0x418] sm:$0xff] }
  0x30   :  { %3422 = vmatprep.subr.bf16.mxu1 %v3421_v26  ;;  %v167_v26 = vld [vmem:[%s6167_s1 + $0x408] sm:$0xff]  ;;  %v3473_v29 = vpack.c.bf16 %v215_v21, %v214_v20  ;;  %v29_v37 = vld [vmem:[%s6166_s0 + $0x10] sm:$0xff]  ;;  %v201_v46 = vld [vmem:[%s6167_s1 + $0x518] sm:$0xff] }
  0x31   :  { %3392 = vmatpush3.bf16.msra.mxu0 %v3391_v34  ;;  %v217_v34 = vld [vmem:[%s6167_s1 + $0x598] sm:$0xff]  ;;  %v168_v39 = vld [vmem:[%s6167_s1 + $0x410] sm:$0xff]  ;;  %v4499_v43 = vrot.slane %v29_v37, %v4190_v10  ;;  %v734_v44 = vcombine.high %v29_v37, %v29_v37  ;;  %v186_v47 = vld [vmem:[%s6167_s1 + $0x4a0] sm:$0xff] }
  0x32   :  { %3394 = vmatprep.subr.bf16.mxu0 %v3393_v36  ;;  %v3475_v36 = vpack.c.bf16 %v199_v28, %v198_v27  ;;  %v3477_v45 = vpack.c.bf16 %v217_v34, %v216_v33  ;;  %v187_v48 = vld [vmem:[%s6167_s1 + $0x4a8] sm:$0xff]  ;;  %v3447_v53 = vpack.c.bf16 %v169_v40, %v168_v39  ;;  %v202_v57 = vld [vmem:[%s6167_s1 + $0x520] sm:$0xff]  ;;  %v188_v60 = vld [vmem:[%s6167_s1 + $0x4b0] sm:$0xff] }
  0x33   :  { %3424 = vmatpush3.bf16.msra.mxu1 %v3423_v35  ;;  %v3443_v35 = vpack.c.bf16 %v167_v26, %v166_v23  ;;  %v4520_v52 = vrot.slane %v734_v44, %v4190_v10  ;;  %v3449_v54 = vpack.c.bf16 %v187_v48, %v186_v47  ;;  %v171_v56 = vld [vmem:[%s6167_s1 + $0x428] sm:$0xff]  ;;  %v173_v4 = vld [vmem:[%s6167_s1 + $0x438] sm:$0xff]  ;;  %v204_v5 = vld [vmem:[%s6167_s1 + $0x530] sm:$0xff] }
  0x34   :  { %3426 = vmatprep.subr.bf16.mxu1 %v3425_v42  ;;  %v200_v42 = vld [vmem:[%s6167_s1 + $0x510] sm:$0xff]  ;;  %v203_v59 = vld [vmem:[%s6167_s1 + $0x528] sm:$0xff]  ;;  %v205_v7 = vld [vmem:[%s6167_s1 + $0x538] sm:$0xff] }
  0x35   :  { %3396 = vmatpush3.bf16.msra.mxu0 %v3395_v49  ;;  %v218_v49 = vld [vmem:[%s6167_s1 + $0x5a0] sm:$0xff]  ;;  %v3483_v1 = vpack.c.bf16 %v203_v59, %v202_v57  ;;  %v3487_v14 = vpack.c.bf16 %v205_v7, %v204_v5  ;;  %v175_v17 = vld [vmem:[%s6167_s1 + $0x448] sm:$0xff]  ;;  %v192_v21 = vld [vmem:[%s6167_s1 + $0x4d0] sm:$0xff] }
  0x36   :  { %3398 = vmatprep.subr.bf16.mxu0 %v3397_v51  ;;  %v749_v51 = vcombine.high %v4499_v43, %v4499_v43  ;;  %v190_v8 = vld [vmem:[%s6167_s1 + $0x4c0] sm:$0xff]  ;;  %v207_v20 = vld [vmem:[%s6167_s1 + $0x548] sm:$0xff]  ;;  %v224_v23 = vld [vmem:[%s6167_s1 + $0x5d0] sm:$0xff] }
  0x37   :  { %3428 = vmatpush3.bf16.msra.mxu1 %v3427_v50  ;;  %v219_v50 = vld [vmem:[%s6167_s1 + $0x5a8] sm:$0xff]  ;;  %v206_v18 = vld [vmem:[%s6167_s1 + $0x540] sm:$0xff]  ;;  %v176_v28 = vld [vmem:[%s6167_s1 + $0x450] sm:$0xff] }
  0x38   :  { %3430 = vmatprep.subr.bf16.mxu1 %v3429_v55  ;;  %v170_v55 = vld [vmem:[%s6167_s1 + $0x420] sm:$0xff]  ;;  %v3481_v58 = vpack.c.bf16 %v219_v50, %v218_v49  ;;  %v3491_v26 = vpack.c.bf16 %v207_v20, %v206_v18  ;;  %v208_v30 = vld [vmem:[%s6167_s1 + $0x550] sm:$0xff]  ;;  %v209_v33 = vld [vmem:[%s6167_s1 + $0x558] sm:$0xff] }
  0x39   :  { %3400 = vmatpush3.bf16.msra.mxu0 %v3399_v61  ;;  %v189_v61 = vld [vmem:[%s6167_s1 + $0x4b8] sm:$0xff]  ;;  %v3451_v0 = vpack.c.bf16 %v171_v56, %v170_v55  ;;  %v194_v34 = vld [vmem:[%s6167_s1 + $0x4e0] sm:$0xff]  ;;  %v227_v37 = vld [vmem:[%s6167_s1 + $0x5e8] sm:$0xff]  ;;  %v3495_v39 = vpack.c.bf16 %v209_v33, %v208_v30 }
  0x3a   :  { %3402 = vmatprep.subr.bf16.mxu0 %v3401_v63  ;;  %v221_v63 = vld [vmem:[%s6167_s1 + $0x5b8] sm:$0xff]  ;;  %v3453_v2 = vpack.c.bf16 %v189_v61, %v188_v60  ;;  %v179_v44 = vld [vmem:[%s6167_s1 + $0x468] sm:$0xff]  ;;  %v196_v48 = vld [vmem:[%s6167_s1 + $0x4f0] sm:$0xff] }
  0x3b   :  { %3432 = vmatpush3.bf16.msra.mxu1 %v3431_v62  ;;  %v220_v62 = vld [vmem:[%s6167_s1 + $0x5b0] sm:$0xff]  ;;  %v211_v47 = vld [vmem:[%s6167_s1 + $0x568] sm:$0xff]  ;;  %v197_v49 = vld [vmem:[%s6167_s1 + $0x4f8] sm:$0xff] }
  0x3c   :  { %3434 = vmatprep.subr.bf16.mxu1 %v3433_v3  ;;  %v172_v3 = vld [vmem:[%s6167_s1 + $0x430] sm:$0xff]  ;;  %v3485_v6 = vpack.c.bf16 %v221_v63, %v220_v62  ;;  %v3469_v55 = vpack.c.bf16 %v197_v49, %v196_v48  ;;  %v181_v57 = vld [vmem:[%s6167_s1 + $0x478] sm:$0xff]  ;;  %v246_v60 = vld [vmem:[%s6167_s1 + $0x680] sm:$0xff] }
  0x3d   :  { %3404 = vmatpush3.bf16.msra.mxu0 %v3403_v9  ;;  %v191_v9 = vld [vmem:[%s6167_s1 + $0x4c8] sm:$0xff]  ;;  %v3455_v13 = vpack.c.bf16 %v173_v4, %v172_v3  ;;  %v228_v50 = vld [vmem:[%s6167_s1 + $0x5f0] sm:$0xff]  ;;  %v213_v59 = vld [vmem:[%s6167_s1 + $0x578] sm:$0xff] }
  0x3e   :  { %3406 = vmatprep.subr.bf16.mxu0 %v3405_v12  ;;  %v223_v12 = vld [vmem:[%s6167_s1 + $0x5c8] sm:$0xff]  ;;  %v3457_v15 = vpack.c.bf16 %v191_v9, %v190_v8  ;;  %v180_v56 = vld [vmem:[%s6167_s1 + $0x470] sm:$0xff]  ;;  %v278_v62 = vld [vmem:[%s6167_s1 + $0x780] sm:$0xff] }
  0x3f   :  { %3436 = vmatpush3.bf16.msra.mxu1 %v3435_v11  ;;  %v222_v11 = vld [vmem:[%s6167_s1 + $0x5c0] sm:$0xff]  ;;  %v247_v61 = vld [vmem:[%s6167_s1 + $0x688] sm:$0xff]  ;;  %v248_v9 = vld [vmem:[%s6167_s1 + $0x690] sm:$0xff] }
  0x40   :  { %3438 = vmatprep.subr.bf16.mxu1 %v3437_v16  ;;  %v174_v16 = vld [vmem:[%s6167_s1 + $0x440] sm:$0xff]  ;;  %v3489_v19 = vpack.c.bf16 %v223_v12, %v222_v11  ;;  %v279_v63 = vld [vmem:[%s6167_s1 + $0x788] sm:$0xff]  ;;  %v3505_v3 = vpack.c.bf16 %v247_v61, %v246_v60  ;;  %v249_v11 = vld [vmem:[%s6167_s1 + $0x698] sm:$0xff] }
  0x41   :  { %3408 = vmatpush3.bf16.msra.mxu0 %v3407_v22  ;;  %v193_v22 = vld [vmem:[%s6167_s1 + $0x4d8] sm:$0xff]  ;;  %v230_v4 = vld [vmem:[%s6167_s1 + $0x600] sm:$0xff]  ;;  %v231_v5 = vld [vmem:[%s6167_s1 + $0x608] sm:$0xff]  ;;  %v3537_v7 = vpack.c.bf16 %v279_v63, %v278_v62  ;;  %v3509_v18 = vpack.c.bf16 %v249_v11, %v248_v9 }
  0x42   :  { %3442 = vmatprep.subr.bf16.mxu0 %v3441_v25  ;;  %v3459_v25 = vpack.c.bf16 %v175_v17, %v174_v16  ;;  %v3461_v27 = vpack.c.bf16 %v193_v22, %v192_v21  ;;  %v263_v8 = vld [vmem:[%s6167_s1 + $0x708] sm:$0xff]  ;;  %v3507_v16 = vpack.c.bf16 %v231_v5, %v230_v4  ;;  %v233_v20 = vld [vmem:[%s6167_s1 + $0x618] sm:$0xff]  ;;  %v264_v21 = vld [vmem:[%s6167_s1 + $0x710] sm:$0xff] }
  0x43   :  { %3440 = vmatpush3.bf16.msra.mxu1 %v3439_v24  ;;  %v225_v24 = vld [vmem:[%s6167_s1 + $0x5d8] sm:$0xff]  ;;  %v268_v48 = vld [vmem:[%s6167_s1 + $0x730] sm:$0xff]  ;;  %v271_v61 = vld [vmem:[%s6167_s1 + $0x748] sm:$0xff] }
  0x44   :  { %3474 = vmatprep.subr.bf16.mxu1 %v3473_v29  ;;  %1125 = vmatmul.mubr.f32.vlgmr.msra.gmra.mrb[2].mxu0 %v4357_v32  ;;  %v3479_v32 = vpack.c.bf16 %v201_v46, %v200_v42  ;;  %v177_v29 = vld [vmem:[%s6167_s1 + $0x458] sm:$0xff]  ;;  %v3493_v31 = vpack.c.bf16 %v225_v24, %v224_v23  ;;  %v178_v42 = vld [vmem:[%s6167_s1 + $0x460] sm:$0xff]  ;;  %v256_v62 = vld [vmem:[%s6167_s1 + $0x6d0] sm:$0xff] }
  0x45   :  { %3444 = vmatpush3.bf16.msra.mxu0 %v3443_v35  ;;  %1264 = vmatprep.mubr.f32.mxu0 %v749_v51  ;;  %v195_v35 = vld [vmem:[%s6167_s1 + $0x4e8] sm:$0xff]  ;;  %v229_v51 = vld [vmem:[%s6167_s1 + $0x5f8] sm:$0xff]  ;;  %v250_v24 = vld [vmem:[%s6167_s1 + $0x6a0] sm:$0xff] }
  0x46   :  { %1195 = vmatmul.mubr.f32.vlgmr.msra.gmra.mrb[2].mxu1 %v4371_v41  ;;  %3446 = vmatprep.subr.bf16.mxu0 %v3445_v38  ;;  %v750_v41 = vcombine.high %v4520_v52, %v4520_v52  ;;  %v3463_v38 = vpack.c.bf16 %v177_v29, %v176_v28  ;;  %v3465_v40 = vpack.c.bf16 %v195_v35, %v194_v34  ;;  %v265_v23 = vld [vmem:[%s6167_s1 + $0x718] sm:$0xff]  ;;  %v283_v28 = vld [vmem:[%s6167_s1 + $0x7a8] sm:$0xff]  ;;  %v266_v35 = vld [vmem:[%s6167_s1 + $0x720] sm:$0xff] }
  0x47   :  { %3476 = vmatpush3.bf16.msra.mxu1 %v3475_v36  ;;  %v226_v36 = vld [vmem:[%s6167_s1 + $0x5e0] sm:$0xff]  ;;  %v235_v34 = vld [vmem:[%s6167_s1 + $0x628] sm:$0xff]  ;;  %v257_v63 = vld [vmem:[%s6167_s1 + $0x6d8] sm:$0xff] }
  0x48   :  { %3478 = vmatprep.subr.bf16.mxu1 %v3477_v45  ;;  %1334 = vmatprep.mubr.f32.mxu1 %v750_v41  ;;  %v210_v45 = vld [vmem:[%s6167_s1 + $0x560] sm:$0xff]  ;;  %v3497_v46 = vpack.c.bf16 %v227_v37, %v226_v36  ;;  %v212_v41 = vld [vmem:[%s6167_s1 + $0x570] sm:$0xff]  ;;  %v3525_v4 = vpack.c.bf16 %v257_v63, %v256_v62  ;;  %v273_v9 = vld [vmem:[%s6167_s1 + $0x758] sm:$0xff] }
  0x49   :  { %3448 = vmatpush3.bf16.msra.mxu0 %v3447_v53  ;;  %v3467_v53 = vpack.c.bf16 %v179_v44, %v178_v42  ;;  %v252_v37 = vld [vmem:[%s6167_s1 + $0x6b0] sm:$0xff]  ;;  %v258_v11 = vld [vmem:[%s6167_s1 + $0x6e0] sm:$0xff] }
  0x4a   :  { %3450 = vmatprep.subr.bf16.mxu0 %v3449_v54  ;;  %v3499_v54 = vpack.c.bf16 %v211_v47, %v210_v45  ;;  %v237_v47 = vld [vmem:[%s6167_s1 + $0x638] sm:$0xff]  ;;  %v240_v5 = vld [vmem:[%s6167_s1 + $0x650] sm:$0xff] }
  0x4b   :  { %3480 = vmatpush3.bf16.msra.mxu1 %v3479_v32  ;;  %v30_v32 = vld [vmem:[%s6166_s0 + $0x18] sm:$0xff]  ;;  %v328_v62 = vld [vmem:[%s6167_s1 + $0x910] sm:$0xff] }
  0x4c   :  { %3482 = vmatprep.subr.bf16.mxu1 %v3481_v58  ;;  %v3501_v58 = vpack.c.bf16 %v229_v51, %v228_v50  ;;  %v4691_v12 = vrot.slane %v30_v32, %v4190_v10  ;;  %v269_v50 = vld [vmem:[%s6167_s1 + $0x738] sm:$0xff]  ;;  %v254_v51 = vld [vmem:[%s6167_s1 + $0x6c0] sm:$0xff] }
  0x4d   :  { %3452 = vmatpush3.bf16.msra.mxu0 %v3451_v0  ;;  %v751_v0 = vcombine.high %v30_v32, %v30_v32  ;;  %v286_v32 = vld [vmem:[%s6167_s1 + $0x7c0] sm:$0xff] }
  0x4e   :  { %3454 = vmatprep.subr.bf16.mxu0 %v3453_v2  ;;  %v3503_v2 = vpack.c.bf16 %v213_v59, %v212_v41  ;;  %v238_v41 = vld [vmem:[%s6167_s1 + $0x640] sm:$0xff] }
  0x4f   :  { %3484 = vmatpush3.bf16.msra.mxu1 %v3483_v1  ;;  %v3471_v1 = vpack.c.bf16 %v181_v57, %v180_v56  ;;  %v3551_v56 = vpack.c.bf16 %v269_v50, %v268_v48  ;;  %v270_v59 = vld [vmem:[%s6167_s1 + $0x740] sm:$0xff]  ;;  %v295_v48 = vld [vmem:[%s6167_s1 + $0x808] sm:$0xff] }
  0x50   :  { %3486 = vmatprep.subr.bf16.mxu1 %v3485_v6  ;;  %v262_v6 = vld [vmem:[%s6167_s1 + $0x700] sm:$0xff] }
  0x51   :  { %3456 = vmatpush3.bf16.msra.mxu0 %v3455_v13  ;;  %v280_v13 = vld [vmem:[%s6167_s1 + $0x790] sm:$0xff]  ;;  %v3539_v17 = vpack.c.bf16 %v263_v8, %v262_v6  ;;  %v241_v6 = vld [vmem:[%s6167_s1 + $0x658] sm:$0xff] }
  0x52   :  { %3458 = vmatprep.subr.bf16.mxu0 %v3457_v15  ;;  %v4700_v15 = vrot.slane %v751_v0, %v4190_v10  ;;  %v288_v0 = vld [vmem:[%s6167_s1 + $0x7d0] sm:$0xff] }
  0x53   :  { %3488 = vmatpush3.bf16.msra.mxu1 %v3487_v14  ;;  %v281_v14 = vld [vmem:[%s6167_s1 + $0x798] sm:$0xff] }
  0x54   :  { %3490 = vmatprep.subr.bf16.mxu1 %v3489_v19  ;;  %v232_v19 = vld [vmem:[%s6167_s1 + $0x610] sm:$0xff]  ;;  %v3541_v22 = vpack.c.bf16 %v281_v14, %v280_v13  ;;  %v767_v29 = vcombine.high %v4700_v15, %v4700_v15  ;;  %v259_v13 = vld [vmem:[%s6167_s1 + $0x6e8] sm:$0xff]  ;;  %v290_v14 = vld [vmem:[%s6167_s1 + $0x7e0] sm:$0xff] }
  0x55   :  { %3460 = vmatpush3.bf16.msra.mxu0 %v3459_v25  ;;  %v251_v25 = vld [vmem:[%s6167_s1 + $0x6a8] sm:$0xff]  ;;  %v3511_v30 = vpack.c.bf16 %v233_v20, %v232_v19  ;;  %v3529_v19 = vpack.c.bf16 %v259_v13, %v258_v11  ;;  %v242_v20 = vld [vmem:[%s6167_s1 + $0x660] sm:$0xff] }
  0x56   :  { %3462 = vmatprep.subr.bf16.mxu0 %v3461_v27  ;;  %v282_v27 = vld [vmem:[%s6167_s1 + $0x7a0] sm:$0xff]  ;;  %v3513_v33 = vpack.c.bf16 %v251_v25, %v250_v24  ;;  %v275_v24 = vld [vmem:[%s6167_s1 + $0x768] sm:$0xff]  ;;  %v260_v25 = vld [vmem:[%s6167_s1 + $0x6f0] sm:$0xff] }
  0x57   :  { %3492 = vmatpush3.bf16.msra.mxu1 %v3491_v26  ;;  %v766_v26 = vcombine.high %v4691_v12, %v4691_v12  ;;  %v3545_v36 = vpack.c.bf16 %v283_v28, %v282_v27  ;;  %v292_v27 = vld [vmem:[%s6167_s1 + $0x7f0] sm:$0xff]  ;;  %v293_v28 = vld [vmem:[%s6167_s1 + $0x7f8] sm:$0xff]  ;;  %v299_v11 = vld [vmem:[%s6167_s1 + $0x828] sm:$0xff] }
  0x58   :  { %3494 = vmatprep.subr.bf16.mxu1 %v3493_v31  ;;  %v3543_v31 = vpack.c.bf16 %v265_v23, %v264_v21  ;;  %v243_v21 = vld [vmem:[%s6167_s1 + $0x668] sm:$0xff]  ;;  %v330_v13 = vld [vmem:[%s6167_s1 + $0x920] sm:$0xff] }
  0x59   :  { %3464 = vmatpush3.bf16.msra.mxu0 %v3463_v38  ;;  %v253_v38 = vld [vmem:[%s6167_s1 + $0x6b8] sm:$0xff] }
  0x5a   :  { %3466 = vmatprep.subr.bf16.mxu0 %v3465_v40  ;;  %v285_v40 = vld [vmem:[%s6167_s1 + $0x7b8] sm:$0xff]  ;;  %v3517_v45 = vpack.c.bf16 %v253_v38, %v252_v37  ;;  %v310_v37 = vld [vmem:[%s6167_s1 + $0x880] sm:$0xff]  ;;  %v311_v38 = vld [vmem:[%s6167_s1 + $0x888] sm:$0xff] }
  0x5b   :  { %3496 = vmatpush3.bf16.msra.mxu1 %v3495_v39  ;;  %v284_v39 = vld [vmem:[%s6167_s1 + $0x7b0] sm:$0xff] }
  0x5c   :  { %3498 = vmatprep.subr.bf16.mxu1 %v3497_v46  ;;  %v236_v46 = vld [vmem:[%s6167_s1 + $0x630] sm:$0xff]  ;;  %v3549_v49 = vpack.c.bf16 %v285_v40, %v284_v39  ;;  %v342_v39 = vld [vmem:[%s6167_s1 + $0x980] sm:$0xff]  ;;  %v343_v40 = vld [vmem:[%s6167_s1 + $0x988] sm:$0xff] }
  0x5d   :  { %3468 = vmatpush3.bf16.msra.mxu0 %v3467_v53  ;;  %v255_v53 = vld [vmem:[%s6167_s1 + $0x6c8] sm:$0xff]  ;;  %v3601_v50 = vpack.c.bf16 %v343_v40, %v342_v39  ;;  %v320_v39 = vld [vmem:[%s6167_s1 + $0x8d0] sm:$0xff]  ;;  %v321_v40 = vld [vmem:[%s6167_s1 + $0x8d8] sm:$0xff] }
  0x5e   :  { %3470 = vmatprep.subr.bf16.mxu0 %v3469_v55  ;;  %v3519_v55 = vpack.c.bf16 %v237_v47, %v236_v46  ;;  %v3521_v57 = vpack.c.bf16 %v255_v53, %v254_v51  ;;  %v3569_v46 = vpack.c.bf16 %v311_v38, %v310_v37  ;;  %v294_v47 = vld [vmem:[%s6167_s1 + $0x800] sm:$0xff]  ;;  %v327_v51 = vld [vmem:[%s6167_s1 + $0x908] sm:$0xff]  ;;  %v312_v53 = vld [vmem:[%s6167_s1 + $0x890] sm:$0xff] }
  0x5f   :  { %3500 = vmatpush3.bf16.msra.mxu1 %v3499_v54  ;;  %v287_v54 = vld [vmem:[%s6167_s1 + $0x7c8] sm:$0xff] }
  0x60   :  { %3502 = vmatprep.subr.bf16.mxu1 %v3501_v58  ;;  %v239_v58 = vld [vmem:[%s6167_s1 + $0x648] sm:$0xff]  ;;  %v3553_v60 = vpack.c.bf16 %v287_v54, %v286_v32  ;;  %v313_v32 = vld [vmem:[%s6167_s1 + $0x898] sm:$0xff] }
  0x61   :  { %3472 = vmatpush3.bf16.msra.mxu0 %v3471_v1  ;;  %v289_v1 = vld [vmem:[%s6167_s1 + $0x7d8] sm:$0xff]  ;;  %v335_v38 = vld [vmem:[%s6167_s1 + $0x948] sm:$0xff] }
  0x62   :  { %3506 = vmatprep.subr.bf16.mxu0 %v3505_v3  ;;  %v3555_v3 = vpack.c.bf16 %v271_v61, %v270_v59  ;;  %v3557_v8 = vpack.c.bf16 %v289_v1, %v288_v0  ;;  %v3573_v59 = vpack.c.bf16 %v313_v32, %v312_v53  ;;  %v297_v61 = vld [vmem:[%s6167_s1 + $0x818] sm:$0xff]  ;;  %v314_v1 = vld [vmem:[%s6167_s1 + $0x8a0] sm:$0xff] }
  0x63   :  { %3504 = vmatpush3.bf16.msra.mxu1 %v3503_v2  ;;  %v3523_v2 = vpack.c.bf16 %v239_v58, %v238_v41  ;;  %v3571_v41 = vpack.c.bf16 %v295_v48, %v294_v47  ;;  %v329_v0 = vld [vmem:[%s6167_s1 + $0x918] sm:$0xff]  ;;  %v3589_v47 = vpack.c.bf16 %v321_v40, %v320_v39  ;;  %v304_v48 = vld [vmem:[%s6167_s1 + $0x850] sm:$0xff]  ;;  %v322_v32 = vld [vmem:[%s6167_s1 + $0x8e0] sm:$0xff] }
  0x64   :  { %3538 = vmatprep.subr.bf16.mxu1 %v3537_v7  ;;  %1265 = vmatmul.mubr.f32.vlgmr.msra.gmra.mrb[4].mxu0 %v4499_v43  ;;  %v234_v43 = vld [vmem:[%s6167_s1 + $0x620] sm:$0xff]  ;;  %v272_v7 = vld [vmem:[%s6167_s1 + $0x750] sm:$0xff]  ;;  %v337_v53 = vld [vmem:[%s6167_s1 + $0x958] sm:$0xff] }
  0x65   :  { %3508 = vmatpush3.bf16.msra.mxu0 %v3507_v16  ;;  %1404 = vmatprep.mubr.f32.mxu0 %v766_v26  ;;  %v3515_v42 = vpack.c.bf16 %v235_v34, %v234_v43  ;;  %v291_v16 = vld [vmem:[%s6167_s1 + $0x7e8] sm:$0xff]  ;;  %v261_v26 = vld [vmem:[%s6167_s1 + $0x6f8] sm:$0xff]  ;;  %v244_v43 = vld [vmem:[%s6167_s1 + $0x670] sm:$0xff] }
  0x66   :  { %1335 = vmatmul.mubr.f32.vlgmr.msra.gmra.mrb[4].mxu1 %v4520_v52  ;;  %3510 = vmatprep.subr.bf16.mxu0 %v3509_v18  ;;  %v267_v52 = vld [vmem:[%s6167_s1 + $0x728] sm:$0xff]  ;;  %v3559_v18 = vpack.c.bf16 %v273_v9, %v272_v7  ;;  %v3561_v23 = vpack.c.bf16 %v291_v16, %v290_v14  ;;  %v245_v34 = vld [vmem:[%s6167_s1 + $0x678] sm:$0xff]  ;;  %v316_v16 = vld [vmem:[%s6167_s1 + $0x8b0] sm:$0xff] }
  0x67   :  { %3540 = vmatpush3.bf16.msra.mxu1 %v3539_v17  ;;  %1474 = vmatprep.mubr.f32.mxu1 %v767_v29  ;;  %v3547_v44 = vpack.c.bf16 %v267_v52, %v266_v35  ;;  %v3527_v17 = vpack.c.bf16 %v241_v6, %v240_v5  ;;  %v3531_v29 = vpack.c.bf16 %v243_v21, %v242_v20  ;;  %v276_v35 = vld [vmem:[%s6167_s1 + $0x770] sm:$0xff]  ;;  %v277_v52 = vld [vmem:[%s6167_s1 + $0x778] sm:$0xff]  ;;  %v347_v5 = vld [vmem:[%s6167_s1 + $0x9a8] sm:$0xff] }
  0x68   :  { %3542 = vmatprep.subr.bf16.mxu1 %v3541_v22  ;;  %v274_v22 = vld [vmem:[%s6167_s1 + $0x760] sm:$0xff]  ;;  %v392_v39 = vld [vmem:[%s6167_s1 + $0xb10] sm:$0xff] }
  0x69   :  { %3512 = vmatpush3.bf16.msra.mxu0 %v3511_v30  ;;  %v31_v30 = vld [vmem:[%s6166_s0 + $0x20] sm:$0xff] }
  0x6a   :  { %3514 = vmatprep.subr.bf16.mxu0 %v3513_v33  ;;  %v3533_v33 = vpack.c.bf16 %v261_v26, %v260_v25  ;;  %v4898_v54 = vrot.slane %v31_v30, %v4190_v10  ;;  %v332_v25 = vld [vmem:[%s6167_s1 + $0x930] sm:$0xff] }
  0x6b   :  { %3544 = vmatpush3.bf16.msra.mxu1 %v3543_v31  ;;  %v3563_v31 = vpack.c.bf16 %v275_v24, %v274_v22  ;;  %v301_v24 = vld [vmem:[%s6167_s1 + $0x838] sm:$0xff] }
  0x6c   :  { %3546 = vmatprep.subr.bf16.mxu1 %v3545_v36  ;;  %v3565_v36 = vpack.c.bf16 %v293_v28, %v292_v27  ;;  %v333_v27 = vld [vmem:[%s6167_s1 + $0x938] sm:$0xff]  ;;  %v318_v28 = vld [vmem:[%s6167_s1 + $0x8c0] sm:$0xff] }
  0x6d   :  { %3516 = vmatpush3.bf16.msra.mxu0 %v3515_v42  ;;  %v768_v42 = vcombine.high %v31_v30, %v31_v30  ;;  %v350_v30 = vld [vmem:[%s6167_s1 + $0x9c0] sm:$0xff] }
  0x6e   :  { %3518 = vmatprep.subr.bf16.mxu0 %v3517_v45  ;;  %v3567_v45 = vpack.c.bf16 %v277_v52, %v276_v35  ;;  %v302_v35 = vld [vmem:[%s6167_s1 + $0x840] sm:$0xff] }
  0x6f   :  { %3548 = vmatpush3.bf16.msra.mxu1 %v3547_v44  ;;  %v3535_v44 = vpack.c.bf16 %v245_v34, %v244_v43  ;;  %v3615_v43 = vpack.c.bf16 %v333_v27, %v332_v25  ;;  %v334_v52 = vld [vmem:[%s6167_s1 + $0x940] sm:$0xff]  ;;  %v359_v25 = vld [vmem:[%s6167_s1 + $0xa08] sm:$0xff] }
  0x70   :  { %3550 = vmatprep.subr.bf16.mxu1 %v3549_v49  ;;  %v326_v49 = vld [vmem:[%s6167_s1 + $0x900] sm:$0xff] }
  0x71   :  { %3520 = vmatpush3.bf16.msra.mxu0 %v3519_v55  ;;  %v344_v55 = vld [vmem:[%s6167_s1 + $0x990] sm:$0xff]  ;;  %v3603_v58 = vpack.c.bf16 %v327_v51, %v326_v49  ;;  %v305_v49 = vld [vmem:[%s6167_s1 + $0x858] sm:$0xff] }
  0x72   :  { %3522 = vmatprep.subr.bf16.mxu0 %v3521_v57  ;;  %v4907_v57 = vrot.slane %v768_v42, %v4190_v10  ;;  %v352_v42 = vld [vmem:[%s6167_s1 + $0x9d0] sm:$0xff] }
  0x73   :  { %3552 = vmatpush3.bf16.msra.mxu1 %v3551_v56  ;;  %v345_v56 = vld [vmem:[%s6167_s1 + $0x998] sm:$0xff] }
  0x74   :  { %3554 = vmatprep.subr.bf16.mxu1 %v3553_v60  ;;  %v296_v60 = vld [vmem:[%s6167_s1 + $0x810] sm:$0xff]  ;;  %v3605_v63 = vpack.c.bf16 %v345_v56, %v344_v55  ;;  %v784_v6 = vcombine.high %v4907_v57, %v4907_v57  ;;  %v323_v55 = vld [vmem:[%s6167_s1 + $0x8e8] sm:$0xff]  ;;  %v354_v56 = vld [vmem:[%s6167_s1 + $0x9e0] sm:$0xff] }
  0x75   :  { %3524 = vmatpush3.bf16.msra.mxu0 %v3523_v2  ;;  %v315_v2 = vld [vmem:[%s6167_s1 + $0x8a8] sm:$0xff]  ;;  %v3575_v7 = vpack.c.bf16 %v297_v61, %v296_v60  ;;  %v3593_v60 = vpack.c.bf16 %v323_v55, %v322_v32  ;;  %v306_v61 = vld [vmem:[%s6167_s1 + $0x860] sm:$0xff] }
  0x76   :  { %3526 = vmatprep.subr.bf16.mxu0 %v3525_v4  ;;  %v346_v4 = vld [vmem:[%s6167_s1 + $0x9a0] sm:$0xff]  ;;  %v3577_v9 = vpack.c.bf16 %v315_v2, %v314_v1  ;;  %v339_v1 = vld [vmem:[%s6167_s1 + $0x968] sm:$0xff]  ;;  %v324_v2 = vld [vmem:[%s6167_s1 + $0x8f0] sm:$0xff] }
  0x77   :  { %3556 = vmatpush3.bf16.msra.mxu1 %v3555_v3  ;;  %v783_v3 = vcombine.high %v4898_v54, %v4898_v54  ;;  %v3609_v14 = vpack.c.bf16 %v347_v5, %v346_v4  ;;  %v356_v4 = vld [vmem:[%s6167_s1 + $0x9f0] sm:$0xff]  ;;  %v357_v5 = vld [vmem:[%s6167_s1 + $0x9f8] sm:$0xff]  ;;  %v363_v32 = vld [vmem:[%s6167_s1 + $0xa28] sm:$0xff] }
  0x78   :  { %3558 = vmatprep.subr.bf16.mxu1 %v3557_v8  ;;  %v3607_v8 = vpack.c.bf16 %v329_v0, %v328_v62  ;;  %v307_v62 = vld [vmem:[%s6167_s1 + $0x868] sm:$0xff]  ;;  %v394_v55 = vld [vmem:[%s6167_s1 + $0xb20] sm:$0xff] }
  0x79   :  { %3528 = vmatpush3.bf16.msra.mxu0 %v3527_v17  ;;  %v317_v17 = vld [vmem:[%s6167_s1 + $0x8b8] sm:$0xff] }
  0x7a   :  { %3530 = vmatprep.subr.bf16.mxu0 %v3529_v19  ;;  %v349_v19 = vld [vmem:[%s6167_s1 + $0x9b8] sm:$0xff]  ;;  %v3581_v22 = vpack.c.bf16 %v317_v17, %v316_v16  ;;  %v374_v16 = vld [vmem:[%s6167_s1 + $0xa80] sm:$0xff]  ;;  %v375_v17 = vld [vmem:[%s6167_s1 + $0xa88] sm:$0xff] }
  0x7b   :  { %3560 = vmatpush3.bf16.msra.mxu1 %v3559_v18  ;;  %v348_v18 = vld [vmem:[%s6167_s1 + $0x9b0] sm:$0xff] }
  0x7c   :  { %3562 = vmatprep.subr.bf16.mxu1 %v3561_v23  ;;  %v300_v23 = vld [vmem:[%s6167_s1 + $0x830] sm:$0xff]  ;;  %v3613_v26 = vpack.c.bf16 %v349_v19, %v348_v18  ;;  %v406_v18 = vld [vmem:[%s6167_s1 + $0xb80] sm:$0xff]  ;;  %v407_v19 = vld [vmem:[%s6167_s1 + $0xb88] sm:$0xff] }
  0x7d   :  { %3532 = vmatpush3.bf16.msra.mxu0 %v3531_v29  ;;  %v319_v29 = vld [vmem:[%s6167_s1 + $0x8c8] sm:$0xff]  ;;  %v3665_v27 = vpack.c.bf16 %v407_v19, %v406_v18  ;;  %v384_v18 = vld [vmem:[%s6167_s1 + $0xad0] sm:$0xff]  ;;  %v385_v19 = vld [vmem:[%s6167_s1 + $0xad8] sm:$0xff] }
  0x7e   :  { %3534 = vmatprep.subr.bf16.mxu0 %v3533_v33  ;;  %v3583_v33 = vpack.c.bf16 %v301_v24, %v300_v23  ;;  %v3585_v34 = vpack.c.bf16 %v319_v29, %v318_v28  ;;  %v3633_v23 = vpack.c.bf16 %v375_v17, %v374_v16  ;;  %v358_v24 = vld [vmem:[%s6167_s1 + $0xa00] sm:$0xff]  ;;  %v391_v28 = vld [vmem:[%s6167_s1 + $0xb08] sm:$0xff]  ;;  %v376_v29 = vld [vmem:[%s6167_s1 + $0xa90] sm:$0xff] }
  0x7f   :  { %3564 = vmatpush3.bf16.msra.mxu1 %v3563_v31  ;;  %v351_v31 = vld [vmem:[%s6167_s1 + $0x9c8] sm:$0xff] }
  0x80   :  { %3566 = vmatprep.subr.bf16.mxu1 %v3565_v36  ;;  %v303_v36 = vld [vmem:[%s6167_s1 + $0x848] sm:$0xff]  ;;  %v3617_v37 = vpack.c.bf16 %v351_v31, %v350_v30  ;;  %v377_v30 = vld [vmem:[%s6167_s1 + $0xa98] sm:$0xff] }
  0x81   :  { %3536 = vmatpush3.bf16.msra.mxu0 %v3535_v44  ;;  %v353_v44 = vld [vmem:[%s6167_s1 + $0x9d8] sm:$0xff]  ;;  %v399_v17 = vld [vmem:[%s6167_s1 + $0xb48] sm:$0xff] }
  0x82   :  { %3570 = vmatprep.subr.bf16.mxu0 %v3569_v46  ;;  %v3619_v46 = vpack.c.bf16 %v335_v38, %v334_v52  ;;  %v3621_v51 = vpack.c.bf16 %v353_v44, %v352_v42  ;;  %v3637_v52 = vpack.c.bf16 %v377_v30, %v376_v29  ;;  %v361_v38 = vld [vmem:[%s6167_s1 + $0xa18] sm:$0xff]  ;;  %v378_v44 = vld [vmem:[%s6167_s1 + $0xaa0] sm:$0xff] }
  0x83   :  { %3568 = vmatpush3.bf16.msra.mxu1 %v3567_v45  ;;  %v3587_v45 = vpack.c.bf16 %v303_v36, %v302_v35  ;;  %v3635_v35 = vpack.c.bf16 %v359_v25, %v358_v24  ;;  %v393_v42 = vld [vmem:[%s6167_s1 + $0xb18] sm:$0xff]  ;;  %v3653_v24 = vpack.c.bf16 %v385_v19, %v384_v18  ;;  %v368_v25 = vld [vmem:[%s6167_s1 + $0xa50] sm:$0xff]  ;;  %v386_v30 = vld [vmem:[%s6167_s1 + $0xae0] sm:$0xff] }
  0x84   :  { %3602 = vmatprep.subr.bf16.mxu1 %v3601_v50  ;;  %1405 = vmatmul.mubr.f32.vlgmr.msra.gmra.mrb[6].mxu0 %v4691_v12  ;;  %v298_v12 = vld [vmem:[%s6167_s1 + $0x820] sm:$0xff]  ;;  %v336_v50 = vld [vmem:[%s6167_s1 + $0x950] sm:$0xff]  ;;  %v401_v29 = vld [vmem:[%s6167_s1 + $0xb58] sm:$0xff] }
  0x85   :  { %3572 = vmatpush3.bf16.msra.mxu0 %v3571_v41  ;;  %1544 = vmatprep.mubr.f32.mxu0 %v783_v3  ;;  %v3579_v20 = vpack.c.bf16 %v299_v11, %v298_v12  ;;  %v355_v41 = vld [vmem:[%s6167_s1 + $0x9e8] sm:$0xff]  ;;  %v325_v3 = vld [vmem:[%s6167_s1 + $0x8f8] sm:$0xff]  ;;  %v308_v12 = vld [vmem:[%s6167_s1 + $0x870] sm:$0xff] }
  0x86   :  { %1475 = vmatmul.mubr.f32.vlgmr.msra.gmra.mrb[6].mxu1 %v4700_v15  ;;  %3574 = vmatprep.subr.bf16.mxu0 %v3573_v59  ;;  %v331_v15 = vld [vmem:[%s6167_s1 + $0x928] sm:$0xff]  ;;  %v3623_v59 = vpack.c.bf16 %v337_v53, %v336_v50  ;;  %v3625_v0 = vpack.c.bf16 %v355_v41, %v354_v56  ;;  %v309_v11 = vld [vmem:[%s6167_s1 + $0x878] sm:$0xff]  ;;  %v380_v41 = vld [vmem:[%s6167_s1 + $0xab0] sm:$0xff] }
  0x87   :  { %3604 = vmatpush3.bf16.msra.mxu1 %v3603_v58  ;;  %1614 = vmatprep.mubr.f32.mxu1 %v784_v6  ;;  %v3611_v21 = vpack.c.bf16 %v331_v15, %v330_v13  ;;  %v3591_v58 = vpack.c.bf16 %v305_v49, %v304_v48  ;;  %v3595_v6 = vpack.c.bf16 %v307_v62, %v306_v61  ;;  %v340_v13 = vld [vmem:[%s6167_s1 + $0x970] sm:$0xff]  ;;  %v341_v15 = vld [vmem:[%s6167_s1 + $0x978] sm:$0xff]  ;;  %v411_v48 = vld [vmem:[%s6167_s1 + $0xba8] sm:$0xff] }
  0x88   :  { %3606 = vmatprep.subr.bf16.mxu1 %v3605_v63  ;;  %v338_v63 = vld [vmem:[%s6167_s1 + $0x960] sm:$0xff]  ;;  %v456_v18 = vld [vmem:[%s6167_s1 + $0xd10] sm:$0xff] }
  0x89   :  { %3576 = vmatpush3.bf16.msra.mxu0 %v3575_v7  ;;  %v32_v7 = vld [vmem:[%s6166_s0 + $0x28] sm:$0xff] }
  0x8a   :  { %3578 = vmatprep.subr.bf16.mxu0 %v3577_v9  ;;  %v3597_v9 = vpack.c.bf16 %v325_v3, %v324_v2  ;;  %v5105_v31 = vrot.slane %v32_v7, %v4190_v10  ;;  %v396_v2 = vld [vmem:[%s6167_s1 + $0xb30] sm:$0xff] }
  0x8b   :  { %3608 = vmatpush3.bf16.msra.mxu1 %v3607_v8  ;;  %v3627_v8 = vpack.c.bf16 %v339_v1, %v338_v63  ;;  %v365_v1 = vld [vmem:[%s6167_s1 + $0xa38] sm:$0xff] }
  0x8c   :  { %3610 = vmatprep.subr.bf16.mxu1 %v3609_v14  ;;  %v3629_v14 = vpack.c.bf16 %v357_v5, %v356_v4  ;;  %v397_v4 = vld [vmem:[%s6167_s1 + $0xb38] sm:$0xff]  ;;  %v382_v5 = vld [vmem:[%s6167_s1 + $0xac0] sm:$0xff] }
  0x8d   :  { %3580 = vmatpush3.bf16.msra.mxu0 %v3579_v20  ;;  %v785_v20 = vcombine.high %v32_v7, %v32_v7  ;;  %v414_v7 = vld [vmem:[%s6167_s1 + $0xbc0] sm:$0xff] }
  0x8e   :  { %3582 = vmatprep.subr.bf16.mxu0 %v3581_v22  ;;  %v3631_v22 = vpack.c.bf16 %v341_v15, %v340_v13  ;;  %v366_v13 = vld [vmem:[%s6167_s1 + $0xa40] sm:$0xff] }
  0x8f   :  { %3612 = vmatpush3.bf16.msra.mxu1 %v3611_v21  ;;  %v3599_v21 = vpack.c.bf16 %v309_v11, %v308_v12  ;;  %v3679_v12 = vpack.c.bf16 %v397_v4, %v396_v2  ;;  %v398_v15 = vld [vmem:[%s6167_s1 + $0xb40] sm:$0xff]  ;;  %v423_v2 = vld [vmem:[%s6167_s1 + $0xc08] sm:$0xff] }
  0x90   :  { %3614 = vmatprep.subr.bf16.mxu1 %v3613_v26  ;;  %v390_v26 = vld [vmem:[%s6167_s1 + $0xb00] sm:$0xff] }
  0x91   :  { %3584 = vmatpush3.bf16.msra.mxu0 %v3583_v33  ;;  %v408_v33 = vld [vmem:[%s6167_s1 + $0xb90] sm:$0xff]  ;;  %v3667_v36 = vpack.c.bf16 %v391_v28, %v390_v26  ;;  %v369_v26 = vld [vmem:[%s6167_s1 + $0xa58] sm:$0xff] }
  0x92   :  { %3586 = vmatprep.subr.bf16.mxu0 %v3585_v34  ;;  %v5114_v34 = vrot.slane %v785_v20, %v4190_v10  ;;  %v416_v20 = vld [vmem:[%s6167_s1 + $0xbd0] sm:$0xff] }
  0x93   :  { %3616 = vmatpush3.bf16.msra.mxu1 %v3615_v43  ;;  %v409_v43 = vld [vmem:[%s6167_s1 + $0xb98] sm:$0xff] }
  0x94   :  { %3618 = vmatprep.subr.bf16.mxu1 %v3617_v37  ;;  %v360_v37 = vld [vmem:[%s6167_s1 + $0xa10] sm:$0xff]  ;;  %v3669_v40 = vpack.c.bf16 %v409_v43, %v408_v33  ;;  %v801_v49 = vcombine.high %v5114_v34, %v5114_v34  ;;  %v387_v33 = vld [vmem:[%s6167_s1 + $0xae8] sm:$0xff]  ;;  %v418_v43 = vld [vmem:[%s6167_s1 + $0xbe0] sm:$0xff] }
  0x95   :  { %3588 = vmatpush3.bf16.msra.mxu0 %v3587_v45  ;;  %v379_v45 = vld [vmem:[%s6167_s1 + $0xaa8] sm:$0xff]  ;;  %v3639_v50 = vpack.c.bf16 %v361_v38, %v360_v37  ;;  %v3657_v37 = vpack.c.bf16 %v387_v33, %v386_v30  ;;  %v370_v38 = vld [vmem:[%s6167_s1 + $0xa60] sm:$0xff] }
  0x96   :  { %3590 = vmatprep.subr.bf16.mxu0 %v3589_v47  ;;  %v410_v47 = vld [vmem:[%s6167_s1 + $0xba0] sm:$0xff]  ;;  %v3641_v53 = vpack.c.bf16 %v379_v45, %v378_v44  ;;  %v403_v44 = vld [vmem:[%s6167_s1 + $0xb68] sm:$0xff]  ;;  %v388_v45 = vld [vmem:[%s6167_s1 + $0xaf0] sm:$0xff] }
  0x97   :  { %3620 = vmatpush3.bf16.msra.mxu1 %v3619_v46  ;;  %v800_v46 = vcombine.high %v5105_v31, %v5105_v31  ;;  %v3673_v56 = vpack.c.bf16 %v411_v48, %v410_v47  ;;  %v420_v47 = vld [vmem:[%s6167_s1 + $0xbf0] sm:$0xff]  ;;  %v421_v48 = vld [vmem:[%s6167_s1 + $0xbf8] sm:$0xff]  ;;  %v427_v30 = vld [vmem:[%s6167_s1 + $0xc28] sm:$0xff] }
  0x98   :  { %3622 = vmatprep.subr.bf16.mxu1 %v3621_v51  ;;  %v3671_v51 = vpack.c.bf16 %v393_v42, %v392_v39  ;;  %v371_v39 = vld [vmem:[%s6167_s1 + $0xa68] sm:$0xff]  ;;  %v458_v33 = vld [vmem:[%s6167_s1 + $0xd20] sm:$0xff] }
  0x99   :  { %3592 = vmatpush3.bf16.msra.mxu0 %v3591_v58  ;;  %v381_v58 = vld [vmem:[%s6167_s1 + $0xab8] sm:$0xff] }
  0x9a   :  { %3594 = vmatprep.subr.bf16.mxu0 %v3593_v60  ;;  %v413_v60 = vld [vmem:[%s6167_s1 + $0xbb8] sm:$0xff]  ;;  %v3645_v63 = vpack.c.bf16 %v381_v58, %v380_v41  ;;  %v438_v41 = vld [vmem:[%s6167_s1 + $0xc80] sm:$0xff]  ;;  %v439_v58 = vld [vmem:[%s6167_s1 + $0xc88] sm:$0xff] }
  0x9b   :  { %3624 = vmatpush3.bf16.msra.mxu1 %v3623_v59  ;;  %v412_v59 = vld [vmem:[%s6167_s1 + $0xbb0] sm:$0xff] }
  0x9c   :  { %3626 = vmatprep.subr.bf16.mxu1 %v3625_v0  ;;  %v364_v0 = vld [vmem:[%s6167_s1 + $0xa30] sm:$0xff]  ;;  %v3677_v3 = vpack.c.bf16 %v413_v60, %v412_v59  ;;  %v470_v59 = vld [vmem:[%s6167_s1 + $0xd80] sm:$0xff]  ;;  %v471_v60 = vld [vmem:[%s6167_s1 + $0xd88] sm:$0xff] }
  0x9d   :  { %3596 = vmatpush3.bf16.msra.mxu0 %v3595_v6  ;;  %v383_v6 = vld [vmem:[%s6167_s1 + $0xac8] sm:$0xff]  ;;  %v3729_v4 = vpack.c.bf16 %v471_v60, %v470_v59  ;;  %v448_v59 = vld [vmem:[%s6167_s1 + $0xcd0] sm:$0xff]  ;;  %v449_v60 = vld [vmem:[%s6167_s1 + $0xcd8] sm:$0xff] }
  0x9e   :  { %3598 = vmatprep.subr.bf16.mxu0 %v3597_v9  ;;  %v3647_v9 = vpack.c.bf16 %v365_v1, %v364_v0  ;;  %v3649_v11 = vpack.c.bf16 %v383_v6, %v382_v5  ;;  %v3697_v0 = vpack.c.bf16 %v439_v58, %v438_v41  ;;  %v422_v1 = vld [vmem:[%s6167_s1 + $0xc00] sm:$0xff]  ;;  %v455_v5 = vld [vmem:[%s6167_s1 + $0xd08] sm:$0xff]  ;;  %v440_v6 = vld [vmem:[%s6167_s1 + $0xc90] sm:$0xff] }
  0x9f   :  { %3628 = vmatpush3.bf16.msra.mxu1 %v3627_v8  ;;  %v415_v8 = vld [vmem:[%s6167_s1 + $0xbc8] sm:$0xff] }
  0xa0   :  { %3630 = vmatprep.subr.bf16.mxu1 %v3629_v14  ;;  %v367_v14 = vld [vmem:[%s6167_s1 + $0xa48] sm:$0xff]  ;;  %v3681_v16 = vpack.c.bf16 %v415_v8, %v414_v7  ;;  %v441_v7 = vld [vmem:[%s6167_s1 + $0xc98] sm:$0xff] }
  0xa1   :  { %3600 = vmatpush3.bf16.msra.mxu0 %v3599_v21  ;;  %v417_v21 = vld [vmem:[%s6167_s1 + $0xbd8] sm:$0xff]  ;;  %v463_v58 = vld [vmem:[%s6167_s1 + $0xd48] sm:$0xff] }
  0xa2   :  { %3634 = vmatprep.subr.bf16.mxu0 %v3633_v23  ;;  %v3683_v23 = vpack.c.bf16 %v399_v17, %v398_v15  ;;  %v3685_v28 = vpack.c.bf16 %v417_v21, %v416_v20  ;;  %v3701_v15 = vpack.c.bf16 %v441_v7, %v440_v6  ;;  %v425_v17 = vld [vmem:[%s6167_s1 + $0xc18] sm:$0xff]  ;;  %v442_v21 = vld [vmem:[%s6167_s1 + $0xca0] sm:$0xff] }
  0xa3   :  { %3632 = vmatpush3.bf16.msra.mxu1 %v3631_v22  ;;  %v3651_v22 = vpack.c.bf16 %v367_v14, %v366_v13  ;;  %v3699_v13 = vpack.c.bf16 %v423_v2, %v422_v1  ;;  %v457_v20 = vld [vmem:[%s6167_s1 + $0xd18] sm:$0xff]  ;;  %v3717_v1 = vpack.c.bf16 %v449_v60, %v448_v59  ;;  %v432_v2 = vld [vmem:[%s6167_s1 + $0xc50] sm:$0xff]  ;;  %v450_v7 = vld [vmem:[%s6167_s1 + $0xce0] sm:$0xff] }
  0xa4   :  { %3666 = vmatprep.subr.bf16.mxu1 %v3665_v27  ;;  %1545 = vmatmul.mubr.f32.vlgmr.msra.gmra.mrb[8].mxu0 %v4898_v54  ;;  %v362_v54 = vld [vmem:[%s6167_s1 + $0xa20] sm:$0xff]  ;;  %v400_v27 = vld [vmem:[%s6167_s1 + $0xb50] sm:$0xff]  ;;  %v465_v6 = vld [vmem:[%s6167_s1 + $0xd58] sm:$0xff] }
  0xa5   :  { %3636 = vmatpush3.bf16.msra.mxu0 %v3635_v35  ;;  %1684 = vmatprep.mubr.f32.mxu0 %v800_v46  ;;  %v3643_v61 = vpack.c.bf16 %v363_v32, %v362_v54  ;;  %v419_v35 = vld [vmem:[%s6167_s1 + $0xbe8] sm:$0xff]  ;;  %v389_v46 = vld [vmem:[%s6167_s1 + $0xaf8] sm:$0xff]  ;;  %v372_v54 = vld [vmem:[%s6167_s1 + $0xa70] sm:$0xff] }
  0xa6   :  { %1615 = vmatmul.mubr.f32.vlgmr.msra.gmra.mrb[8].mxu1 %v4907_v57  ;;  %3638 = vmatprep.subr.bf16.mxu0 %v3637_v52  ;;  %v395_v57 = vld [vmem:[%s6167_s1 + $0xb28] sm:$0xff]  ;;  %v3687_v52 = vpack.c.bf16 %v401_v29, %v400_v27  ;;  %v3689_v42 = vpack.c.bf16 %v419_v35, %v418_v43  ;;  %v373_v32 = vld [vmem:[%s6167_s1 + $0xa78] sm:$0xff]  ;;  %v444_v35 = vld [vmem:[%s6167_s1 + $0xcb0] sm:$0xff] }
  0xa7   :  { %3668 = vmatpush3.bf16.msra.mxu1 %v3667_v36  ;;  %1754 = vmatprep.mubr.f32.mxu1 %v801_v49  ;;  %v3675_v62 = vpack.c.bf16 %v395_v57, %v394_v55  ;;  %v3655_v36 = vpack.c.bf16 %v369_v26, %v368_v25  ;;  %v3659_v49 = vpack.c.bf16 %v371_v39, %v370_v38  ;;  %v404_v55 = vld [vmem:[%s6167_s1 + $0xb70] sm:$0xff]  ;;  %v405_v57 = vld [vmem:[%s6167_s1 + $0xb78] sm:$0xff]  ;;  %v475_v25 = vld [vmem:[%s6167_s1 + $0xda8] sm:$0xff] }
  0xa8   :  { %3670 = vmatprep.subr.bf16.mxu1 %v3669_v40  ;;  %v402_v40 = vld [vmem:[%s6167_s1 + $0xb60] sm:$0xff] }
  0xa9   :  { %3640 = vmatpush3.bf16.msra.mxu0 %v3639_v50  ;;  %v33_v50 = vld [vmem:[%s6166_s0 + $0x30] sm:$0xff] }
  0xaa   :  { %3642 = vmatprep.subr.bf16.mxu0 %v3641_v53  ;;  %v3661_v53 = vpack.c.bf16 %v389_v46, %v388_v45  ;;  %v5312_v8 = vrot.slane %v33_v50, %v4190_v10  ;;  %v460_v45 = vld [vmem:[%s6167_s1 + $0xd30] sm:$0xff] }
  0xab   :  { %3672 = vmatpush3.bf16.msra.mxu1 %v3671_v51  ;;  %v3691_v51 = vpack.c.bf16 %v403_v44, %v402_v40  ;;  %v429_v44 = vld [vmem:[%s6167_s1 + $0xc38] sm:$0xff] }
  0xac   :  { %3674 = vmatprep.subr.bf16.mxu1 %v3673_v56  ;;  %v3693_v56 = vpack.c.bf16 %v421_v48, %v420_v47  ;;  %v461_v47 = vld [vmem:[%s6167_s1 + $0xd38] sm:$0xff]  ;;  %v446_v48 = vld [vmem:[%s6167_s1 + $0xcc0] sm:$0xff] }
  0xad   :  { %3644 = vmatpush3.bf16.msra.mxu0 %v3643_v61  ;;  %v802_v61 = vcombine.high %v33_v50, %v33_v50  ;;  %v478_v50 = vld [vmem:[%s6167_s1 + $0xdc0] sm:$0xff] }
  0xae   :  { %3646 = vmatprep.subr.bf16.mxu0 %v3645_v63  ;;  %v3695_v63 = vpack.c.bf16 %v405_v57, %v404_v55  ;;  %v430_v55 = vld [vmem:[%s6167_s1 + $0xc40] sm:$0xff] }
  0xaf   :  { %3676 = vmatpush3.bf16.msra.mxu1 %v3675_v62  ;;  %v3663_v62 = vpack.c.bf16 %v373_v32, %v372_v54  ;;  %v3743_v54 = vpack.c.bf16 %v461_v47, %v460_v45  ;;  %v462_v57 = vld [vmem:[%s6167_s1 + $0xd40] sm:$0xff] }
  0xb0   :  { %3678 = vmatprep.subr.bf16.mxu1 %v3677_v3  ;;  %v454_v3 = vld [vmem:[%s6167_s1 + $0xd00] sm:$0xff] }
  0xb1   :  { %3648 = vmatpush3.bf16.msra.mxu0 %v3647_v9  ;;  %v472_v9 = vld [vmem:[%s6167_s1 + $0xd90] sm:$0xff]  ;;  %v3731_v14 = vpack.c.bf16 %v455_v5, %v454_v3  ;;  %v433_v3 = vld [vmem:[%s6167_s1 + $0xc58] sm:$0xff] }
  0xb2   :  { %3650 = vmatprep.subr.bf16.mxu0 %v3649_v11  ;;  %v5321_v11 = vrot.slane %v802_v61, %v4190_v10  ;;  %v480_v61 = vld [vmem:[%s6167_s1 + $0xdd0] sm:$0xff] }
  0xb3   :  { %3680 = vmatpush3.bf16.msra.mxu1 %v3679_v12  ;;  %v473_v12 = vld [vmem:[%s6167_s1 + $0xd98] sm:$0xff] }
  0xb4   :  { %3682 = vmatprep.subr.bf16.mxu1 %v3681_v16  ;;  %v424_v16 = vld [vmem:[%s6167_s1 + $0xc10] sm:$0xff]  ;;  %v3733_v19 = vpack.c.bf16 %v473_v12, %v472_v9  ;;  %v818_v26 = vcombine.high %v5321_v11, %v5321_v11  ;;  %v451_v9 = vld [vmem:[%s6167_s1 + $0xce8] sm:$0xff]  ;;  %v482_v12 = vld [vmem:[%s6167_s1 + $0xde0] sm:$0xff] }
  0xb5   :  { %3652 = vmatpush3.bf16.msra.mxu0 %v3651_v22  ;;  %v443_v22 = vld [vmem:[%s6167_s1 + $0xca8] sm:$0xff]  ;;  %v3703_v27 = vpack.c.bf16 %v425_v17, %v424_v16  ;;  %v3721_v16 = vpack.c.bf16 %v451_v9, %v450_v7  ;;  %v434_v17 = vld [vmem:[%s6167_s1 + $0xc60] sm:$0xff] }
  0xb6   :  { %3654 = vmatprep.subr.bf16.mxu0 %v3653_v24  ;;  %v474_v24 = vld [vmem:[%s6167_s1 + $0xda0] sm:$0xff]  ;;  %v3705_v29 = vpack.c.bf16 %v443_v22, %v442_v21  ;;  %v467_v21 = vld [vmem:[%s6167_s1 + $0xd68] sm:$0xff]  ;;  %v452_v22 = vld [vmem:[%s6167_s1 + $0xcf0] sm:$0xff] }
  0xb7   :  { %3684 = vmatpush3.bf16.msra.mxu1 %v3683_v23  ;;  %v817_v23 = vcombine.high %v5312_v8, %v5312_v8  ;;  %v3737_v43 = vpack.c.bf16 %v475_v25, %v474_v24  ;;  %v484_v24 = vld [vmem:[%s6167_s1 + $0xdf0] sm:$0xff]  ;;  %v485_v25 = vld [vmem:[%s6167_s1 + $0xdf8] sm:$0xff] }
  0xb8   :  { %3686 = vmatprep.subr.bf16.mxu1 %v3685_v28  ;;  %v3735_v28 = vpack.c.bf16 %v457_v20, %v456_v18  ;;  %v435_v18 = vld [vmem:[%s6167_s1 + $0xc68] sm:$0xff] }
  0xb9   :  { %3656 = vmatpush3.bf16.msra.mxu0 %v3655_v36  ;;  %v445_v36 = vld [vmem:[%s6167_s1 + $0xcb8] sm:$0xff] }
  0xba   :  { %3658 = vmatprep.subr.bf16.mxu0 %v3657_v37  ;;  %v477_v37 = vld [vmem:[%s6167_s1 + $0xdb8] sm:$0xff]  ;;  %v3709_v40 = vpack.c.bf16 %v445_v36, %v444_v35  ;;  %v502_v35 = vld [vmem:[%s6167_s1 + $0xe80] sm:$0xff]  ;;  %v503_v36 = vld [vmem:[%s6167_s1 + $0xe88] sm:$0xff] }
  0xbb   :  { %3688 = vmatpush3.bf16.msra.mxu1 %v3687_v52  ;;  %v476_v52 = vld [vmem:[%s6167_s1 + $0xdb0] sm:$0xff] }
  0xbc   :  { %3690 = vmatprep.subr.bf16.mxu1 %v3689_v42  ;;  %v428_v42 = vld [vmem:[%s6167_s1 + $0xc30] sm:$0xff]  ;;  %v3741_v46 = vpack.c.bf16 %v477_v37, %v476_v52  ;;  %v534_v52 = vld [vmem:[%s6167_s1 + $0xf80] sm:$0xff]  ;;  %v535_v37 = vld [vmem:[%s6167_s1 + $0xf88] sm:$0xff] }
  0xbd   :  { %3660 = vmatpush3.bf16.msra.mxu0 %v3659_v49  ;;  %v447_v49 = vld [vmem:[%s6167_s1 + $0xcc8] sm:$0xff] }
  0xbe   :  { %3662 = vmatprep.subr.bf16.mxu0 %v3661_v53  ;;  %v3711_v53 = vpack.c.bf16 %v429_v44, %v428_v42  ;;  %v3713_v32 = vpack.c.bf16 %v447_v49, %v446_v48 }
  0xbf   :  { %3692 = vmatpush3.bf16.msra.mxu1 %v3691_v51  ;;  %v479_v51 = vld [vmem:[%s6167_s1 + $0xdc8] sm:$0xff] }
  0xc0   :  { %3694 = vmatprep.subr.bf16.mxu1 %v3693_v56  ;;  %v431_v56 = vld [vmem:[%s6167_s1 + $0xc48] sm:$0xff]  ;;  %v3745_v41 = vpack.c.bf16 %v479_v51, %v478_v50 }
  0xc1   :  { %3664 = vmatpush3.bf16.msra.mxu0 %v3663_v62  ;;  %v481_v62 = vld [vmem:[%s6167_s1 + $0xdd8] sm:$0xff] }
  0xc2   :  { %3698 = vmatprep.subr.bf16.mxu0 %v3697_v0  ;;  %v3747_v0 = vpack.c.bf16 %v463_v58, %v462_v57  ;;  %v3749_v5 = vpack.c.bf16 %v481_v62, %v480_v61 }
  0xc3   :  { %3696 = vmatpush3.bf16.msra.mxu1 %v3695_v63  ;;  %v3715_v63 = vpack.c.bf16 %v431_v56, %v430_v55 }
  0xc4   :  { %3730 = vmatprep.subr.bf16.mxu1 %v3729_v4  ;;  %1685 = vmatmul.mubr.f32.vlgmr.msra.gmra.mrb[10].mxu0 %v5105_v31  ;;  %v426_v31 = vld [vmem:[%s6167_s1 + $0xc20] sm:$0xff]  ;;  %v464_v4 = vld [vmem:[%s6167_s1 + $0xd50] sm:$0xff] }
  0xc5   :  { %3700 = vmatpush3.bf16.msra.mxu0 %v3699_v13  ;;  %1824 = vmatprep.mubr.f32.mxu0 %v817_v23  ;;  %v3707_v38 = vpack.c.bf16 %v427_v30, %v426_v31  ;;  %v483_v13 = vld [vmem:[%s6167_s1 + $0xde8] sm:$0xff]  ;;  %v453_v23 = vld [vmem:[%s6167_s1 + $0xcf8] sm:$0xff]  ;;  %v436_v31 = vld [vmem:[%s6167_s1 + $0xc70] sm:$0xff] }
  0xc6   :  { %1755 = vmatmul.mubr.f32.vlgmr.msra.gmra.mrb[10].mxu1 %v5114_v34  ;;  %3702 = vmatprep.subr.bf16.mxu0 %v3701_v15  ;;  %v459_v34 = vld [vmem:[%s6167_s1 + $0xd28] sm:$0xff]  ;;  %v3751_v15 = vpack.c.bf16 %v465_v6, %v464_v4  ;;  %v3753_v20 = vpack.c.bf16 %v483_v13, %v482_v12  ;;  %v437_v30 = vld [vmem:[%s6167_s1 + $0xc78] sm:$0xff] }
  0xc7   :  { %3732 = vmatpush3.bf16.msra.mxu1 %v3731_v14  ;;  %1894 = vmatprep.mubr.f32.mxu1 %v818_v26  ;;  %v3739_v39 = vpack.c.bf16 %v459_v34, %v458_v33  ;;  %v3719_v14 = vpack.c.bf16 %v433_v3, %v432_v2  ;;  %v3723_v26 = vpack.c.bf16 %v435_v18, %v434_v17  ;;  %v468_v33 = vld [vmem:[%s6167_s1 + $0xd70] sm:$0xff]  ;;  %v469_v34 = vld [vmem:[%s6167_s1 + $0xd78] sm:$0xff] }
  0xc8   :  { %3734 = vmatprep.subr.bf16.mxu1 %v3733_v19  ;;  %v466_v19 = vld [vmem:[%s6167_s1 + $0xd60] sm:$0xff] }
  0xc9   :  { %3704 = vmatpush3.bf16.msra.mxu0 %v3703_v27  ;;  %v34_v27 = vld [vmem:[%s6166_s0 + $0x38] sm:$0xff] }
  0xca   :  { %3706 = vmatprep.subr.bf16.mxu0 %v3705_v29  ;;  %v3725_v29 = vpack.c.bf16 %v453_v23, %v452_v22 }
  0xcb   :  { %3736 = vmatpush3.bf16.msra.mxu1 %v3735_v28  ;;  %v3755_v28 = vpack.c.bf16 %v467_v21, %v466_v19 }
  0xcc   :  { %3738 = vmatprep.subr.bf16.mxu1 %v3737_v43  ;;  %v3757_v43 = vpack.c.bf16 %v485_v25, %v484_v24 }
  0xcd   :  { %3708 = vmatpush3.bf16.msra.mxu0 %v3707_v38  ;;  %v819_v38 = vcombine.high %v34_v27, %v34_v27 }
  0xce   :  { %3710 = vmatprep.subr.bf16.mxu0 %v3709_v40 }
  0xcf   :  { %3740 = vmatpush3.bf16.msra.mxu1 %v3739_v39 }
  0xd0   :  { %3742 = vmatprep.subr.bf16.mxu1 %v3741_v46 }
  0xd1   :  { %3712 = vmatpush3.bf16.msra.mxu0 %v3711_v53 }
  0xd2   :  { %3714 = vmatprep.subr.bf16.mxu0 %v3713_v32 }
  0xd3   :  { %3744 = vmatpush3.bf16.msra.mxu1 %v3743_v54 }
  0xd4   :  { %3746 = vmatprep.subr.bf16.mxu1 %v3745_v41 }
  0xd5   :  { %3716 = vmatpush3.bf16.msra.mxu0 %v3715_v63 }
  0xd6   :  { %3718 = vmatprep.subr.bf16.mxu0 %v3717_v1 }
  0xd7   :  { %3748 = vmatpush3.bf16.msra.mxu1 %v3747_v0 }
  0xd8   :  { %3750 = vmatprep.subr.bf16.mxu1 %v3749_v5 }
  0xd9   :  { %3720 = vmatpush3.bf16.msra.mxu0 %v3719_v14 }
  0xda   :  { %3722 = vmatprep.subr.bf16.mxu0 %v3721_v16 }
  0xdb   :  { %3752 = vmatpush3.bf16.msra.mxu1 %v3751_v15 }
  0xdc   :  { %3754 = vmatprep.subr.bf16.mxu1 %v3753_v20 }
  0xdd   :  { %12 = vsyncpa [#allocation3], 0  ;;  %3724 = vmatpush3.bf16.msra.mxu0 %v3723_v26  ;;  %v3727_v39 = vpack.c.bf16 %v437_v30, %v436_v31  ;;  %v3759_v40 = vpack.c.bf16 %v469_v34, %v468_v33  ;;  %v3761_v42 = vpack.c.bf16 %v503_v36, %v502_v35  ;;  %v486_v44 = vld [vmem:[%s6167_s1 + $0xe00] sm:$0xff]  ;;  %v487_v45 = vld [vmem:[%s6167_s1 + $0xe08] sm:$0xff]  ;;  %v3793_v47 = vpack.c.bf16 %v535_v37, %v534_v52  ;;  %s4005_s20 = smov [#allocation2]  }
  0xde   :  { %3726 = vmatprep.subr.bf16.mxu0 %v3725_v29  ;;  %v518_v46 = vld [vmem:[%s6167_s1 + $0xf00] sm:$0xff]  ;;  %v519_v48 = vld [vmem:[%s6167_s1 + $0xf08] sm:$0xff]  ;;  %v504_v49 = vld [vmem:[%s6167_s1 + $0xe90] sm:$0xff]  ;;  %v5519_v51 = vrot.slane %v34_v27, %v4190_v10  ;;  %v5528_v32 = vrot.slane %v819_v38, %v4190_v10  ;;  %v3763_v55 = vpack.c.bf16 %v487_v45, %v486_v44  ;;  %vm4003_vm0 = vmmov 0   ;;  %s2565_s21 = sshll.u32 %s4005_s20, 4  ;;  %s2566_s21 = int_to_ptr.vmem [resolvable:$true] %s2565_s21 }
  0xdf   :  { %3756 = vmatpush3.bf16.msra.mxu1 %v3755_v28  ;;  %v505_v50 = vld [vmem:[%s6167_s1 + $0xe98] sm:$0xff]  ;;  %v536_v53 = vld [vmem:[%s6167_s1 + $0xf90] sm:$0xff]  ;;  %v3795_v56 = vpack.c.bf16 %v519_v48, %v518_v46  ;;  %v506_v62 = vld [vmem:[%s6167_s1 + $0xea0] sm:$0xff]  ;;  %vm917_vm1 = vcmask 261120   ;;  %vm2400_vm2 = vcmask 130048   ;;  %vm2483_vm3 = vcmask 64512   ;;  %p3982_p1 = scmp.lt.s32.totalorder %s2566_s21, %s2566_s21 }
  0xe0   :  { %3758 = vmatprep.subr.bf16.mxu1 %v3757_v43  ;;  %v537_v54 = vld [vmem:[%s6167_s1 + $0xf98] sm:$0xff]  ;;  %v3765_v57 = vpack.c.bf16 %v505_v50, %v504_v49  ;;  %v488_v41 = vld [vmem:[%s6167_s1 + $0xe10] sm:$0xff]  ;;  %v507_v63 = vld [vmem:[%s6167_s1 + $0xea8] sm:$0xff]  ;;  %v834_v0 = vcombine.high %v5519_v51, %v5519_v51  ;;  %v835_v3 = vcombine.high %v5528_v32, %v5528_v32  ;;  %vm2557_vm4 = vcmask 9216  }
  0xe1   :  { %3728 = vmatpush3.bf16.msra.mxu0 %v3727_v39  ;;  %v489_v58 = vld [vmem:[%s6167_s1 + $0xe18] sm:$0xff]  ;;  %v520_v59 = vld [vmem:[%s6167_s1 + $0xf10] sm:$0xff]  ;;  %v3797_v60 = vpack.c.bf16 %v537_v54, %v536_v53  ;;  %v538_v1 = vld [vmem:[%s6167_s1 + $0xfa0] sm:$0xff]  ;;  %v3769_v6 = vpack.c.bf16 %v507_v63, %v506_v62 }
  0xe2   :  { %3762 = vmatprep.subr.bf16.mxu0 %v3761_v42  ;;  %v521_v61 = vld [vmem:[%s6167_s1 + $0xf18] sm:$0xff]  ;;  %v539_v2 = vld [vmem:[%s6167_s1 + $0xfa8] sm:$0xff]  ;;  %v3767_v4 = vpack.c.bf16 %v489_v58, %v488_v41  ;;  %v522_v9 = vld [vmem:[%s6167_s1 + $0xf20] sm:$0xff] }
  0xe3   :  { %3760 = vmatpush3.bf16.msra.mxu1 %v3759_v40  ;;  %v3799_v5 = vpack.c.bf16 %v521_v61, %v520_v59  ;;  %v491_v7 = vld [vmem:[%s6167_s1 + $0xe28] sm:$0xff]  ;;  %v3801_v12 = vpack.c.bf16 %v539_v2, %v538_v1  ;;  %v508_v13 = vld [vmem:[%s6167_s1 + $0xeb0] sm:$0xff]  ;;  %v509_v14 = vld [vmem:[%s6167_s1 + $0xeb8] sm:$0xff] }
  0xe4   :  { %3794 = vmatprep.subr.bf16.mxu1 %v3793_v47  ;;  %1825 = vmatmul.mubr.f32.vlgmr.msra.gmra.mrb[12].mxu0 %v5312_v8  ;;  %v490_v8 = vld [vmem:[%s6167_s1 + $0xe20] sm:$0xff]  ;;  %v540_v15 = vld [vmem:[%s6167_s1 + $0xfb0] sm:$0xff]  ;;  %v541_v16 = vld [vmem:[%s6167_s1 + $0xfb8] sm:$0xff]  ;;  %v3773_v19 = vpack.c.bf16 %v509_v14, %v508_v13 }
  0xe5   :  { %3764 = vmatpush3.bf16.msra.mxu0 %v3763_v55  ;;  %1964 = vmatprep.mubr.f32.mxu0 %v834_v0  ;;  %v3771_v17 = vpack.c.bf16 %v491_v7, %v490_v8  ;;  %v492_v20 = vld [vmem:[%s6167_s1 + $0xe30] sm:$0xff]  ;;  %v493_v21 = vld [vmem:[%s6167_s1 + $0xe38] sm:$0xff]  ;;  %v3805_v23 = vpack.c.bf16 %v541_v16, %v540_v15  ;;  %v510_v25 = vld [vmem:[%s6167_s1 + $0xec0] sm:$0xff] }
  0xe6   :  { %1895 = vmatmul.mubr.f32.vlgmr.msra.gmra.mrb[12].mxu1 %v5321_v11  ;;  %3766 = vmatprep.subr.bf16.mxu0 %v3765_v57  ;;  %v523_v11 = vld [vmem:[%s6167_s1 + $0xf28] sm:$0xff]  ;;  %v524_v22 = vld [vmem:[%s6167_s1 + $0xf30] sm:$0xff]  ;;  %v525_v24 = vld [vmem:[%s6167_s1 + $0xf38] sm:$0xff]  ;;  %v3775_v29 = vpack.c.bf16 %v493_v21, %v492_v20 }
  0xe7   :  { %3796 = vmatpush3.bf16.msra.mxu1 %v3795_v56  ;;  %2034 = vmatprep.mubr.f32.mxu1 %v835_v3  ;;  %v3803_v18 = vpack.c.bf16 %v523_v11, %v522_v9  ;;  %v511_v26 = vld [vmem:[%s6167_s1 + $0xec8] sm:$0xff]  ;;  %v542_v27 = vld [vmem:[%s6167_s1 + $0xfc0] sm:$0xff]  ;;  %v3807_v31 = vpack.c.bf16 %v525_v24, %v524_v22  ;;  %v512_v52 = vld [vmem:[%s6167_s1 + $0xed0] sm:$0xff] }
  0xe8   :  { %3798 = vmatprep.subr.bf16.mxu1 %v3797_v60  ;;  %v543_v28 = vld [vmem:[%s6167_s1 + $0xfc8] sm:$0xff]  ;;  %v3777_v30 = vpack.c.bf16 %v511_v26, %v510_v25  ;;  %v494_v33 = vld [vmem:[%s6167_s1 + $0xe40] sm:$0xff]  ;;  %v513_v37 = vld [vmem:[%s6167_s1 + $0xed8] sm:$0xff] }
  0xe9   :  { %3768 = vmatpush3.bf16.msra.mxu0 %v3767_v4  ;;  %v495_v43 = vld [vmem:[%s6167_s1 + $0xe48] sm:$0xff]  ;;  %v526_v34 = vld [vmem:[%s6167_s1 + $0xf40] sm:$0xff]  ;;  %v3809_v35 = vpack.c.bf16 %v543_v28, %v542_v27  ;;  %v544_v38 = vld [vmem:[%s6167_s1 + $0xfd0] sm:$0xff]  ;;  %v3781_v44 = vpack.c.bf16 %v513_v37, %v512_v52 }
  0xea   :  { %3770 = vmatprep.subr.bf16.mxu0 %v3769_v6  ;;  %v527_v36 = vld [vmem:[%s6167_s1 + $0xf48] sm:$0xff]  ;;  %v545_v39 = vld [vmem:[%s6167_s1 + $0xfd8] sm:$0xff]  ;;  %v3779_v40 = vpack.c.bf16 %v495_v43, %v494_v33  ;;  %v496_v45 = vld [vmem:[%s6167_s1 + $0xe50] sm:$0xff] }
  0xeb   :  { %3800 = vmatpush3.bf16.msra.mxu1 %v3799_v5  ;;  %v3811_v42 = vpack.c.bf16 %v527_v36, %v526_v34  ;;  %v497_v46 = vld [vmem:[%s6167_s1 + $0xe58] sm:$0xff]  ;;  %v528_v47 = vld [vmem:[%s6167_s1 + $0xf50] sm:$0xff]  ;;  %v3813_v48 = vpack.c.bf16 %v545_v39, %v544_v38  ;;  %v514_v50 = vld [vmem:[%s6167_s1 + $0xee0] sm:$0xff] }
  0xec   :  { %3802 = vmatprep.subr.bf16.mxu1 %v3801_v12  ;;  %v529_v49 = vld [vmem:[%s6167_s1 + $0xf58] sm:$0xff]  ;;  %v515_v53 = vld [vmem:[%s6167_s1 + $0xee8] sm:$0xff]  ;;  %v546_v54 = vld [vmem:[%s6167_s1 + $0xfe0] sm:$0xff]  ;;  %v3783_v56 = vpack.c.bf16 %v497_v46, %v496_v45 }
  0xed   :  { %3772 = vmatpush3.bf16.msra.mxu0 %v3771_v17  ;;  %v547_v55 = vld [vmem:[%s6167_s1 + $0xfe8] sm:$0xff]  ;;  %v3815_v57 = vpack.c.bf16 %v529_v49, %v528_v47  ;;  %v3785_v41 = vpack.c.bf16 %v515_v53, %v514_v50  ;;  %v498_v58 = vld [vmem:[%s6167_s1 + $0xe60] sm:$0xff]  ;;  %v516_v0 = vld [vmem:[%s6167_s1 + $0xef0] sm:$0xff] }
  0xee   :  { %3774 = vmatprep.subr.bf16.mxu0 %v3773_v19  ;;  %v499_v59 = vld [vmem:[%s6167_s1 + $0xe68] sm:$0xff]  ;;  %v530_v60 = vld [vmem:[%s6167_s1 + $0xf60] sm:$0xff]  ;;  %v3817_v62 = vpack.c.bf16 %v547_v55, %v546_v54  ;;  %v517_v1 = vld [vmem:[%s6167_s1 + $0xef8] sm:$0xff] }
  0xef   :  { %3804 = vmatpush3.bf16.msra.mxu1 %v3803_v18  ;;  %v531_v63 = vld [vmem:[%s6167_s1 + $0xf68] sm:$0xff]  ;;  %v2573_v2 = vld [vmem:[%s6168_s2] ss:$0 sm:$0xff]  ;;  %v548_v5 = vld [vmem:[%s6167_s1 + $0xff0] sm:$0xff]  ;;  %v3787_v9 = vpack.c.bf16 %v499_v59, %v498_v58  ;;  %v3789_v14 = vpack.c.bf16 %v517_v1, %v516_v0 }
  0xf0   :  { %3806 = vmatprep.subr.bf16.mxu1 %v3805_v23  ;;  %v549_v6 = vld [vmem:[%s6167_s1 + $0xff8] sm:$0xff]  ;;  %v35_v12 = vld [vmem:[%s6166_s0 + $0x40] sm:$0xff]  ;;  %v3819_v13 = vpack.c.bf16 %v531_v63, %v530_v60  ;;  %v500_v15 = vld [vmem:[%s6167_s1 + $0xe70] sm:$0xff] }
  0xf1   :  { %3776 = vmatpush3.bf16.msra.mxu0 %v3775_v29  ;;  %v501_v16 = vld [vmem:[%s6167_s1 + $0xe78] sm:$0xff]  ;;  %v532_v17 = vld [vmem:[%s6167_s1 + $0xf70] sm:$0xff]  ;;  %v3821_v19 = vpack.c.bf16 %v549_v6, %v548_v5  ;;  %v566_v21 = vld [vmem:[%s6167_s1 + $0x1080] sm:$0xff]  ;;  %v836_v25 = vcombine.high %v35_v12, %v35_v12  ;;  %v5731_v52 = vrot.slane %v35_v12, %v4190_v10 }
  0xf2   :  { %3778 = vmatprep.subr.bf16.mxu0 %v3777_v30  ;;  %v533_v20 = vld [vmem:[%s6167_s1 + $0xf78] sm:$0xff]  ;;  %v567_v22 = vld [vmem:[%s6167_s1 + $0x1088] sm:$0xff]  ;;  %v598_v23 = vld [vmem:[%s6167_s1 + $0x1180] sm:$0xff]  ;;  %v3791_v27 = vpack.c.bf16 %v501_v16, %v500_v15 }
  0xf3   :  { %3808 = vmatpush3.bf16.msra.mxu1 %v3807_v31  ;;  %v599_v24 = vld [vmem:[%s6167_s1 + $0x1188] sm:$0xff]  ;;  %v3823_v28 = vpack.c.bf16 %v533_v20, %v532_v17  ;;  %v3825_v29 = vpack.c.bf16 %v567_v22, %v566_v21  ;;  %v550_v31 = vld [vmem:[%s6167_s1 + $0x1000] sm:$0xff]  ;;  %v569_v36 = vld [vmem:[%s6167_s1 + $0x1098] sm:$0xff]  ;;  %v5740_v39 = vrot.slane %v836_v25, %v4190_v10  ;;  %v851_v54 = vcombine.high %v5731_v52, %v5731_v52 }
  0xf4   :  { %3810 = vmatprep.subr.bf16.mxu1 %v3809_v35  ;;  %v551_v30 = vld [vmem:[%s6167_s1 + $0x1008] sm:$0xff]  ;;  %v582_v33 = vld [vmem:[%s6167_s1 + $0x1100] sm:$0xff]  ;;  %v3857_v43 = vpack.c.bf16 %v599_v24, %v598_v23  ;;  %v568_v35 = vld [vmem:[%s6167_s1 + $0x1090] sm:$0xff] }
  0xf5   :  { %3780 = vmatpush3.bf16.msra.mxu0 %v3779_v40  ;;  %v583_v34 = vld [vmem:[%s6167_s1 + $0x1108] sm:$0xff]  ;;  %v600_v37 = vld [vmem:[%s6167_s1 + $0x1190] sm:$0xff]  ;;  %v601_v38 = vld [vmem:[%s6167_s1 + $0x1198] sm:$0xff]  ;;  %v3827_v40 = vpack.c.bf16 %v551_v30, %v550_v31 }
  0xf6   :  { %3782 = vmatprep.subr.bf16.mxu0 %v3781_v44  ;;  %v3829_v44 = vpack.c.bf16 %v569_v36, %v568_v35  ;;  %v552_v45 = vld [vmem:[%s6167_s1 + $0x1010] sm:$0xff]  ;;  %v553_v46 = vld [vmem:[%s6167_s1 + $0x1018] sm:$0xff]  ;;  %v570_v50 = vld [vmem:[%s6167_s1 + $0x10a0] sm:$0xff] }
  0xf7   :  { %3812 = vmatpush3.bf16.msra.mxu1 %v3811_v42  ;;  %v2612_v61 = vpop.f32.mrb[0].mxu0  ;;  %v3859_v42 = vpack.c.bf16 %v583_v34, %v582_v33  ;;  %v584_v47 = vld [vmem:[%s6167_s1 + $0x1110] sm:$0xff]  ;;  %v585_v49 = vld [vmem:[%s6167_s1 + $0x1118] sm:$0xff]  ;;  %v571_v53 = vld [vmem:[%s6167_s1 + $0x10a8] sm:$0xff] }
  0xf8   :  { %3814 = vmatprep.subr.bf16.mxu1 %v3813_v48  ;;  %v2613_v3 = vpop.f32.mrb[1].mxu0  ;;  %v3861_v48 = vpack.c.bf16 %v601_v38, %v600_v37  ;;  %v602_v55 = vld [vmem:[%s6167_s1 + $0x11a0] sm:$0xff]  ;;  %v3863_v58 = vpack.c.bf16 %v585_v49, %v584_v47  ;;  %v3833_v59 = vpack.c.bf16 %v571_v53, %v570_v50  ;;  %v555_v60 = vld [vmem:[%s6167_s1 + $0x1028] sm:$0xff]  ;;  %v572_v63 = vld [vmem:[%s6167_s1 + $0x10b0] sm:$0xff] }
  0xf9   :  { %v2647_v4 = vpop.f32.mrb[0].mxu1  ;;  %v2614_v8 = vadd.f32 %v2613_v3, %v2612_v61  ;;  %3784 = vmatpush3.bf16.msra.mxu0 %v3783_v56  ;;  %v603_v56 = vld [vmem:[%s6167_s1 + $0x11a8] sm:$0xff]  ;;  %v586_v61 = vld [vmem:[%s6167_s1 + $0x1120] sm:$0xff]  ;;  %v573_v0 = vld [vmem:[%s6167_s1 + $0x10b8] sm:$0xff] }
  0xfa   :  { %v2648_v7 = vpop.f32.mrb[1].mxu1  ;;  %3786 = vmatprep.subr.bf16.mxu0 %v3785_v41  ;;  %v3831_v41 = vpack.c.bf16 %v553_v46, %v552_v45  ;;  %v604_v1 = vld [vmem:[%s6167_s1 + $0x11b0] sm:$0xff]  ;;  %v3837_v5 = vpack.c.bf16 %v573_v0, %v572_v63  ;;  %v589_v12 = vld [vmem:[%s6167_s1 + $0x1138] sm:$0xff]  ;;  %v607_v15 = vld [vmem:[%s6167_s1 + $0x11c8] sm:$0xff] }
  0xfb   :  { %v2649_v11 = vadd.f32 %v2648_v7, %v2647_v4  ;;  %3816 = vmatpush3.bf16.msra.mxu1 %v3815_v57  ;;  %v987_v18 = vadd.f32 %v2614_v8, %v2573_v2  ;;  %v852_v57 = vcombine.high %v5740_v39, %v5740_v39  ;;  %v605_v2 = vld [vmem:[%s6167_s1 + $0x11b8] sm:$0xff]  ;;  %v556_v6 = vld [vmem:[%s6167_s1 + $0x1030] sm:$0xff]  ;;  %v559_v20 = vld [vmem:[%s6167_s1 + $0x1048] sm:$0xff] }
  0xfc   :  { %3818 = vmatprep.subr.bf16.mxu1 %v3817_v62  ;;  %v3865_v62 = vpack.c.bf16 %v603_v56, %v602_v55  ;;  %v557_v8 = vld [vmem:[%s6167_s1 + $0x1038] sm:$0xff]  ;;  %v588_v7 = vld [vmem:[%s6167_s1 + $0x1130] sm:$0xff]  ;;  %v590_v21 = vld [vmem:[%s6167_s1 + $0x1140] sm:$0xff] }
  0xfd   :  { %v5710_v26 = vadd.f32 %v2649_v11, %v987_v18  ;;  %3788 = vmatpush3.bf16.msra.mxu0 %v3787_v9  ;;  %v3869_v9 = vpack.c.bf16 %v605_v2, %v604_v1  ;;  %v574_v11 = vld [vmem:[%s6167_s1 + $0x10c0] sm:$0xff]  ;;  %v3839_v16 = vpack.c.bf16 %v557_v8, %v556_v6  ;;  %v3871_v17 = vpack.c.bf16 %v589_v12, %v588_v7  ;;  %v591_v23 = vld [vmem:[%s6167_s1 + $0x1148] sm:$0xff]  ;;  %v576_v24 = vld [vmem:[%s6167_s1 + $0x10d0] sm:$0xff] }
  0xfe   :  { %3790 = vmatprep.subr.bf16.mxu0 %v3789_v14  ;;  %v606_v14 = vld [vmem:[%s6167_s1 + $0x11c0] sm:$0xff]  ;;  %v577_v25 = vld [vmem:[%s6167_s1 + $0x10d8] sm:$0xff]  ;;  %v3875_v31 = vpack.c.bf16 %v591_v23, %v590_v21  ;;  %v560_v33 = vld [vmem:[%s6167_s1 + $0x1050] sm:$0xff] }
  0xff   :  { %3820 = vmatpush3.bf16.msra.mxu1 %v3819_v13  ;;  %v575_v13 = vld [vmem:[%s6167_s1 + $0x10c8] sm:$0xff]  ;;  %v3873_v22 = vpack.c.bf16 %v607_v15, %v606_v14  ;;  %v3845_v30 = vpack.c.bf16 %v577_v25, %v576_v24  ;;  %v592_v34 = vld [vmem:[%s6167_s1 + $0x1150] sm:$0xff]  ;;  %v593_v36 = vld [vmem:[%s6167_s1 + $0x1158] sm:$0xff] }
 0x100   :  { %3822 = vmatprep.subr.bf16.mxu1 %v3821_v19  ;;  %v3841_v18 = vpack.c.bf16 %v575_v13, %v574_v11  ;;  %v558_v19 = vld [vmem:[%s6167_s1 + $0x1040] sm:$0xff]  ;;  %v579_v38 = vld [vmem:[%s6167_s1 + $0x10e8] sm:$0xff]  ;;  %v3879_v45 = vpack.c.bf16 %v593_v36, %v592_v34  ;;  %v580_v55 = vld [vmem:[%s6167_s1 + $0x10f0] sm:$0xff] }
 0x101   :  { %3792 = vmatpush3.bf16.msra.mxu0 %v3791_v27  ;;  %v608_v27 = vld [vmem:[%s6167_s1 + $0x11d0] sm:$0xff]  ;;  %v578_v37 = vld [vmem:[%s6167_s1 + $0x10e0] sm:$0xff]  ;;  %v581_v56 = vld [vmem:[%s6167_s1 + $0x10f8] sm:$0xff] }
 0x102   :  { %3826 = vmatprep.subr.bf16.mxu0 %v3825_v29  ;;  %v3843_v29 = vpack.c.bf16 %v559_v20, %v558_v19  ;;  %v3849_v46 = vpack.c.bf16 %v579_v38, %v578_v37  ;;  %v562_v47 = vld [vmem:[%s6167_s1 + $0x1060] sm:$0xff]  ;;  %v3853_v0 = vpack.c.bf16 %v581_v56, %v580_v55  ;;  %v564_v1 = vld [vmem:[%s6167_s1 + $0x1070] sm:$0xff]  ;;  %v565_v2 = vld [vmem:[%s6167_s1 + $0x1078] sm:$0xff] }
 0x103   :  { %3824 = vmatpush3.bf16.msra.mxu1 %v3823_v28  ;;  %v609_v28 = vld [vmem:[%s6167_s1 + $0x11d8] sm:$0xff]  ;;  %v594_v49 = vld [vmem:[%s6167_s1 + $0x1160] sm:$0xff]  ;;  %v631_v7 = vld [vmem:[%s6167_s1 + $0x1288] sm:$0xff]  ;;  %v3855_v13 = vpack.c.bf16 %v565_v2, %v564_v1 }
 0x104   :  { %3858 = vmatprep.subr.bf16.mxu1 %v3857_v43  ;;  %1965 = vmatmul.mubr.f32.vlgmr.msra.gmra.mrb[14].mxu0 %v5519_v51  ;;  %v554_v51 = vld [vmem:[%s6167_s1 + $0x1020] sm:$0xff]  ;;  %v561_v43 = vld [vmem:[%s6167_s1 + $0x1058] sm:$0xff]  ;;  %v3877_v35 = vpack.c.bf16 %v609_v28, %v608_v27  ;;  %v647_v20 = vld [vmem:[%s6167_s1 + $0x1308] sm:$0xff] }
 0x105   :  { %3828 = vmatpush3.bf16.msra.mxu0 %v3827_v40  ;;  %2104 = vmatprep.mubr.f32.mxu0 %v851_v54  ;;  %v3835_v3 = vpack.c.bf16 %v555_v60, %v554_v51  ;;  %v610_v40 = vld [vmem:[%s6167_s1 + $0x11e0] sm:$0xff]  ;;  %v595_v54 = vld [vmem:[%s6167_s1 + $0x1168] sm:$0xff]  ;;  %v597_v6 = vld [vmem:[%s6167_s1 + $0x1178] sm:$0xff] }
 0x106   :  { %2035 = vmatmul.mubr.f32.vlgmr.msra.gmra.mrb[14].mxu1 %v5528_v32  ;;  %3830 = vmatprep.subr.bf16.mxu0 %v3829_v44  ;;  %v587_v32 = vld [vmem:[%s6167_s1 + $0x1128] sm:$0xff]  ;;  %v3847_v44 = vpack.c.bf16 %v561_v43, %v560_v33  ;;  %v3883_v63 = vpack.c.bf16 %v595_v54, %v594_v49  ;;  %v630_v8 = vld [vmem:[%s6167_s1 + $0x1280] sm:$0xff]  ;;  %v632_v21 = vld [vmem:[%s6167_s1 + $0x1290] sm:$0xff] }
 0x107   :  { %3860 = vmatpush3.bf16.msra.mxu1 %v3859_v42  ;;  %2174 = vmatprep.mubr.f32.mxu1 %v852_v57  ;;  %v3867_v4 = vpack.c.bf16 %v587_v32, %v586_v61  ;;  %v611_v42 = vld [vmem:[%s6167_s1 + $0x11e8] sm:$0xff]  ;;  %v3889_v15 = vpack.c.bf16 %v631_v7, %v630_v8  ;;  %v664_v24 = vld [vmem:[%s6167_s1 + $0x1390] sm:$0xff]  ;;  %v665_v25 = vld [vmem:[%s6167_s1 + $0x1398] sm:$0xff] }
 0x108   :  { %3862 = vmatprep.subr.bf16.mxu1 %v3861_v48  ;;  %v563_v48 = vld [vmem:[%s6167_s1 + $0x1068] sm:$0xff]  ;;  %v3881_v53 = vpack.c.bf16 %v611_v42, %v610_v40  ;;  %v617_v33 = vld [vmem:[%s6167_s1 + $0x1218] sm:$0xff]  ;;  %v648_v43 = vld [vmem:[%s6167_s1 + $0x1310] sm:$0xff] }
 0x109   :  { %3832 = vmatpush3.bf16.msra.mxu0 %v3831_v41  ;;  %v3851_v61 = vpack.c.bf16 %v563_v48, %v562_v47  ;;  %v649_v34 = vld [vmem:[%s6167_s1 + $0x1318] sm:$0xff]  ;;  %v635_v36 = vld [vmem:[%s6167_s1 + $0x12a8] sm:$0xff]  ;;  %v666_v38 = vld [vmem:[%s6167_s1 + $0x13a0] sm:$0xff] }
 0x10a   :  { %3834 = vmatprep.subr.bf16.mxu0 %v3833_v59  ;;  %v613_v59 = vld [vmem:[%s6167_s1 + $0x11f8] sm:$0xff]  ;;  %v667_v40 = vld [vmem:[%s6167_s1 + $0x13a8] sm:$0xff]  ;;  %v650_v48 = vld [vmem:[%s6167_s1 + $0x1320] sm:$0xff] }
 0x10b   :  { %3864 = vmatpush3.bf16.msra.mxu1 %v3863_v58  ;;  %v612_v58 = vld [vmem:[%s6167_s1 + $0x11f0] sm:$0xff]  ;;  %v619_v47 = vld [vmem:[%s6167_s1 + $0x1228] sm:$0xff]  ;;  %v3929_v49 = vpack.c.bf16 %v667_v40, %v666_v38  ;;  %v669_v55 = vld [vmem:[%s6167_s1 + $0x13b8] sm:$0xff] }
 0x10c   :  { %3866 = vmatprep.subr.bf16.mxu1 %v3865_v62  ;;  %v36_v62 = vld [vmem:[%s6166_s0 + $0x48] sm:$0xff]  ;;  %v668_v54 = vld [vmem:[%s6167_s1 + $0x13b0] sm:$0xff]  ;;  %v645_v38 = vld [vmem:[%s6167_s1 + $0x12f8] sm:$0xff] }
 0x10d   :  { %3836 = vmatpush3.bf16.msra.mxu0 %v3835_v3  ;;  %v596_v3 = vld [vmem:[%s6167_s1 + $0x1170] sm:$0xff]  ;;  %v853_v12 = vcombine.high %v36_v62, %v36_v62  ;;  %v5941_v23 = vrot.slane %v36_v62, %v4190_v10  ;;  %v638_v62 = vld [vmem:[%s6167_s1 + $0x12c0] sm:$0xff]  ;;  %v655_v7 = vld [vmem:[%s6167_s1 + $0x1348] sm:$0xff] }
 0x10e   :  { %3838 = vmatprep.subr.bf16.mxu0 %v3837_v5  ;;  %v3885_v5 = vpack.c.bf16 %v613_v59, %v612_v58  ;;  %v3887_v14 = vpack.c.bf16 %v597_v6, %v596_v3  ;;  %v620_v58 = vld [vmem:[%s6167_s1 + $0x1230] sm:$0xff]  ;;  %v621_v59 = vld [vmem:[%s6167_s1 + $0x1238] sm:$0xff]  ;;  %v654_v6 = vld [vmem:[%s6167_s1 + $0x1340] sm:$0xff] }
 0x10f   :  { %3868 = vmatpush3.bf16.msra.mxu1 %v3867_v4  ;;  %v5950_v27 = vrot.slane %v853_v12, %v4190_v10  ;;  %v3925_v10 = vpack.c.bf16 %v665_v25, %v664_v24  ;;  %v868_v37 = vcombine.high %v5941_v23, %v5941_v23  ;;  %v3903_v1 = vpack.c.bf16 %v621_v59, %v620_v58  ;;  %v672_v12 = vld [vmem:[%s6167_s1 + $0x13d0] sm:$0xff]  ;;  %v643_v24 = vld [vmem:[%s6167_s1 + $0x12e8] sm:$0xff]  ;;  %v674_v25 = vld [vmem:[%s6167_s1 + $0x13e0] sm:$0xff] }
 0x110   :  { %3870 = vmatprep.subr.bf16.mxu1 %v3869_v9  ;;  %v662_v9 = vld [vmem:[%s6167_s1 + $0x1380] sm:$0xff] }
 0x111   :  { %3840 = vmatpush3.bf16.msra.mxu0 %v3839_v16  ;;  %v614_v16 = vld [vmem:[%s6167_s1 + $0x1200] sm:$0xff]  ;;  %v869_v42 = vcombine.high %v5950_v27, %v5950_v27 }
 0x112   :  { %3842 = vmatprep.subr.bf16.mxu0 %v3841_v18  ;;  %v646_v18 = vld [vmem:[%s6167_s1 + $0x1300] sm:$0xff] }
 0x113   :  { %3872 = vmatpush3.bf16.msra.mxu1 %v3871_v17  ;;  %v615_v17 = vld [vmem:[%s6167_s1 + $0x1208] sm:$0xff] }
 0x114   :  { %3874 = vmatprep.subr.bf16.mxu1 %v3873_v22  ;;  %v633_v22 = vld [vmem:[%s6167_s1 + $0x1298] sm:$0xff]  ;;  %v3891_v28 = vpack.c.bf16 %v615_v17, %v614_v16  ;;  %v624_v17 = vld [vmem:[%s6167_s1 + $0x1250] sm:$0xff] }
 0x115   :  { %3844 = vmatpush3.bf16.msra.mxu0 %v3843_v29  ;;  %v3923_v29 = vpack.c.bf16 %v647_v20, %v646_v18  ;;  %v625_v18 = vld [vmem:[%s6167_s1 + $0x1258] sm:$0xff] }
 0x116   :  { %3846 = vmatprep.subr.bf16.mxu0 %v3845_v30  ;;  %v616_v30 = vld [vmem:[%s6167_s1 + $0x1210] sm:$0xff] }
 0x117   :  { %3876 = vmatpush3.bf16.msra.mxu1 %v3875_v31  ;;  %v2682_v50 = vpop.f32.mrb[2].mxu0  ;;  %v3893_v31 = vpack.c.bf16 %v633_v22, %v632_v21  ;;  %v657_v21 = vld [vmem:[%s6167_s1 + $0x1358] sm:$0xff]  ;;  %v642_v22 = vld [vmem:[%s6167_s1 + $0x12e0] sm:$0xff] }
 0x118   :  { %3878 = vmatprep.subr.bf16.mxu1 %v3877_v35  ;;  %v2683_v57 = vpop.f32.mrb[3].mxu0  ;;  %v634_v35 = vld [vmem:[%s6167_s1 + $0x12a0] sm:$0xff] }
 0x119   :  { %v2717_v41 = vpop.f32.mrb[2].mxu1  ;;  %v2684_v51 = vadd.f32 %v2683_v57, %v2682_v50  ;;  %3848 = vmatpush3.bf16.msra.mxu0 %v3847_v44  ;;  %v3895_v44 = vpack.c.bf16 %v617_v33, %v616_v30  ;;  %v636_v50 = vld [vmem:[%s6167_s1 + $0x12b0] sm:$0xff]  ;;  %v3913_v30 = vpack.c.bf16 %v643_v24, %v642_v22  ;;  %v626_v33 = vld [vmem:[%s6167_s1 + $0x1260] sm:$0xff] }
 0x11a   :  { %v2718_v60 = vpop.f32.mrb[3].mxu1  ;;  %3850 = vmatprep.subr.bf16.mxu0 %v3849_v46  ;;  %v3897_v46 = vpack.c.bf16 %v635_v36, %v634_v35  ;;  %v659_v36 = vld [vmem:[%s6167_s1 + $0x1368] sm:$0xff] }
 0x11b   :  { %v2719_v32 = vadd.f32 %v2718_v60, %v2717_v41  ;;  %3880 = vmatpush3.bf16.msra.mxu1 %v3879_v45  ;;  %v1127_v4 = vadd.f32 %v2684_v51, %v5710_v26  ;;  %v663_v26 = vld [vmem:[%s6167_s1 + $0x1388] sm:$0xff]  ;;  %v3927_v45 = vpack.c.bf16 %v649_v34, %v648_v43  ;;  %v652_v51 = vld [vmem:[%s6167_s1 + $0x1330] sm:$0xff]  ;;  %v3933_v60 = vpack.c.bf16 %v669_v55, %v668_v54 }
 0x11c   :  { %3882 = vmatprep.subr.bf16.mxu1 %v3881_v53  ;;  %v3921_v19 = vpack.c.bf16 %v663_v26, %v662_v9  ;;  %v637_v53 = vld [vmem:[%s6167_s1 + $0x12b8] sm:$0xff]  ;;  %v640_v9 = vld [vmem:[%s6167_s1 + $0x12d0] sm:$0xff]  ;;  %v627_v43 = vld [vmem:[%s6167_s1 + $0x1268] sm:$0xff] }
 0x11d   :  { %v5920_v11 = vadd.f32 %v2719_v32, %v1127_v4  ;;  %3852 = vmatpush3.bf16.msra.mxu0 %v3851_v61  ;;  %v3901_v41 = vpack.c.bf16 %v637_v53, %v636_v50  ;;  %v653_v61 = vld [vmem:[%s6167_s1 + $0x1338] sm:$0xff]  ;;  %v639_v32 = vld [vmem:[%s6167_s1 + $0x12c8] sm:$0xff]  ;;  %v622_v4 = vld [vmem:[%s6167_s1 + $0x1240] sm:$0xff] }
 0x11e   :  { %3854 = vmatprep.subr.bf16.mxu0 %v3853_v0  ;;  %v671_v0 = vld [vmem:[%s6167_s1 + $0x13c8] sm:$0xff]  ;;  %v3935_v2 = vpack.c.bf16 %v653_v61, %v652_v51  ;;  %v3905_v3 = vpack.c.bf16 %v639_v32, %v638_v62  ;;  %v641_v26 = vld [vmem:[%s6167_s1 + $0x12d8] sm:$0xff]  ;;  %v628_v50 = vld [vmem:[%s6167_s1 + $0x1270] sm:$0xff]  ;;  %v4002_v61 = vmov 0.0|0.0  }
 0x11f   :  { %3884 = vmatpush3.bf16.msra.mxu1 %v3883_v63  ;;  %v670_v63 = vld [vmem:[%s6167_s1 + $0x13c0] sm:$0xff]  ;;  %v3909_v16 = vpack.c.bf16 %v641_v26, %v640_v9  ;;  %v629_v53 = vld [vmem:[%s6167_s1 + $0x1278] sm:$0xff]  ;;  %v679_v51 = vld [vmem:[%s6167_s1 + $0x1408] sm:$0xff] }
 0x120   :  { %3886 = vmatprep.subr.bf16.mxu1 %v3885_v5  ;;  %v623_v5 = vld [vmem:[%s6167_s1 + $0x1248] sm:$0xff]  ;;  %v3937_v8 = vpack.c.bf16 %v671_v0, %v670_v63  ;;  %v3919_v58 = vpack.c.bf16 %v629_v53, %v628_v50  ;;  %v680_v62 = vld [vmem:[%s6167_s1 + $0x1410] sm:$0xff]  ;;  %v681_v32 = vld [vmem:[%s6167_s1 + $0x1418] sm:$0xff]  ;;  %v4004_v0 = vmov 0.0  }
 0x121   :  { %3856 = vmatpush3.bf16.msra.mxu0 %v3855_v13  ;;  %v673_v13 = vld [vmem:[%s6167_s1 + $0x13d8] sm:$0xff]  ;;  %v3957_v63 = vpack.c.bf16 %v681_v32, %v680_v62 }
 0x122   :  { %3890 = vmatprep.subr.bf16.mxu0 %v3889_v15  ;;  %v3939_v15 = vpack.c.bf16 %v655_v7, %v654_v6  ;;  %v3941_v20 = vpack.c.bf16 %v673_v13, %v672_v12 }
 0x123   :  { %3888 = vmatpush3.bf16.msra.mxu1 %v3887_v14  ;;  %v3907_v14 = vpack.c.bf16 %v623_v5, %v622_v4 }
 0x124   :  { %3922 = vmatprep.subr.bf16.mxu1 %v3921_v19  ;;  %2105 = vmatmul.mubr.f32.vlgmr.msra.gmra.mrb[16].mxu0 %v5731_v52  ;;  %v618_v52 = vld [vmem:[%s6167_s1 + $0x1220] sm:$0xff]  ;;  %v656_v19 = vld [vmem:[%s6167_s1 + $0x1350] sm:$0xff] }
 0x125   :  { %3892 = vmatpush3.bf16.msra.mxu0 %v3891_v28  ;;  %2244 = vmatprep.mubr.f32.mxu0 %v868_v37  ;;  %v3899_v56 = vpack.c.bf16 %v619_v47, %v618_v52  ;;  %v675_v28 = vld [vmem:[%s6167_s1 + $0x13e8] sm:$0xff]  ;;  %v644_v37 = vld [vmem:[%s6167_s1 + $0x12f0] sm:$0xff]  ;;  %v3915_v47 = vpack.c.bf16 %v627_v43, %v626_v33 }
 0x126   :  { %2175 = vmatmul.mubr.f32.vlgmr.msra.gmra.mrb[16].mxu1 %v5740_v39  ;;  %3894 = vmatprep.subr.bf16.mxu0 %v3893_v31  ;;  %v651_v39 = vld [vmem:[%s6167_s1 + $0x1328] sm:$0xff]  ;;  %v3943_v31 = vpack.c.bf16 %v657_v21, %v656_v19  ;;  %v3945_v35 = vpack.c.bf16 %v675_v28, %v674_v25  ;;  %v2391_v28 = vld [vmem:[%s6169_s3] sm:$0xff] }
 0x127   :  { %3924 = vmatpush3.bf16.msra.mxu1 %v3923_v29  ;;  %2314 = vmatprep.mubr.f32.mxu1 %v869_v42  ;;  %v3931_v57 = vpack.c.bf16 %v651_v39, %v650_v48  ;;  %v3911_v29 = vpack.c.bf16 %v625_v18, %v624_v17  ;;  %v3917_v39 = vpack.c.bf16 %v645_v38, %v644_v37 }
 0x128   :  { %3926 = vmatprep.subr.bf16.mxu1 %v3925_v10  ;;  %v658_v10 = vld [vmem:[%s6167_s1 + $0x1360] sm:$0xff] }
 0x129   :  { %3896 = vmatpush3.bf16.msra.mxu0 %v3895_v44  ;;  %v676_v44 = vld [vmem:[%s6167_s1 + $0x13f0] sm:$0xff] }
 0x12a   :  { %3898 = vmatprep.subr.bf16.mxu0 %v3897_v46 }
 0x12b   :  { %3928 = vmatpush3.bf16.msra.mxu1 %v3927_v45  ;;  %v677_v45 = vld [vmem:[%s6167_s1 + $0x13f8] sm:$0xff] }
 0x12c   :  { %3930 = vmatprep.subr.bf16.mxu1 %v3929_v49  ;;  %v3947_v49 = vpack.c.bf16 %v659_v36, %v658_v10  ;;  %v3949_v55 = vpack.c.bf16 %v677_v45, %v676_v44 }
 0x12d   :  { %3900 = vmatpush3.bf16.msra.mxu0 %v3899_v56  ;;  %v660_v56 = vld [vmem:[%s6167_s1 + $0x1370] sm:$0xff] }
 0x12e   :  { %3902 = vmatprep.subr.bf16.mxu0 %v3901_v41 }
 0x12f   :  { %3932 = vmatpush3.bf16.msra.mxu1 %v3931_v57  ;;  %v661_v57 = vld [vmem:[%s6167_s1 + $0x1378] sm:$0xff] }
 0x130   :  { %3934 = vmatprep.subr.bf16.mxu1 %v3933_v60  ;;  %v3951_v59 = vpack.c.bf16 %v661_v57, %v660_v56 }
 0x131   :  { %3904 = vmatpush3.bf16.msra.mxu0 %v3903_v1  ;;  %v2574_v1 = vld.sshfl [vmem:[%s6166_s0 + $0x50] sm:$0x3 pattern:$0x76325410] }
 0x132   :  { %3906 = vmatprep.subr.bf16.mxu0 %v3905_v3 }
 0x133   :  { %3936 = vmatpush3.bf16.msra.mxu1 %v3935_v2 }
 0x134   :  { %3938 = vmatprep.subr.bf16.mxu1 %v3937_v8 }
 0x135   :  { %3908 = vmatpush3.bf16.msra.mxu0 %v3907_v14 }
 0x136   :  { %3910 = vmatprep.subr.bf16.mxu0 %v3909_v16 }
 0x137   :  { %3940 = vmatpush3.bf16.msra.mxu1 %v3939_v15  ;;  %v2752_v34 = vpop.f32.mrb[4].mxu0 }
 0x138   :  { %3942 = vmatprep.subr.bf16.mxu1 %v3941_v20  ;;  %v2753_v40 = vpop.f32.mrb[5].mxu0 }
 0x139   :  { %v2787_v42 = vpop.f32.mrb[4].mxu1  ;;  %v2754_v46 = vadd.f32 %v2753_v40, %v2752_v34  ;;  %3912 = vmatpush3.bf16.msra.mxu0 %v3911_v29  ;;  %v2392_v29 = vld [vmem:[%s6169_s3 + $0x8] sm:$0xff] }
 0x13a   :  { %v2788_v52 = vpop.f32.mrb[5].mxu1  ;;  %3914 = vmatprep.subr.bf16.mxu0 %v3913_v30 }
 0x13b   :  { %v2789_v48 = vadd.f32 %v2788_v52, %v2787_v42  ;;  %3944 = vmatpush3.bf16.msra.mxu1 %v3943_v31  ;;  %v1267_v54 = vadd.f32 %v2754_v46, %v5920_v11  ;;  %v678_v11 = vld [vmem:[%s6167_s1 + $0x1400] sm:$0xff]  ;;  %v3960_v31 = vpack.c.bf16 %v2392_v29, %v2391_v28 }
 0x13c   :  { %3946 = vmatprep.subr.bf16.mxu1 %v3945_v35  ;;  %v3954_v60 = vpack.c.bf16 %v679_v51, %v678_v11 }
 0x13d   :  { %v1337_v41 = vadd.f32 %v2789_v48, %v1267_v54  ;;  %3916 = vmatpush3.bf16.msra.mxu0 %v3915_v47 }
 0x13e   :  { %3918 = vmatprep.subr.bf16.mxu0 %v3917_v39 }
 0x13f   :  { %3948 = vmatpush3.bf16.msra.mxu1 %v3947_v49 }
 0x140   :  { %3950 = vmatprep.subr.bf16.mxu1 %v3949_v55 }
 0x141   :  { %3920 = vmatpush3.bf16.msra.mxu0 %v3919_v58 }
 0x142   :  { %3953 = vmatprep.subr.bf16.mxu0 %v4002_v61 }
 0x143   :  { %3952 = vmatpush3.bf16.msra.mxu1 %v3951_v59 }
 0x144   :  { %3959 = vmatprep.subr.bf16.mxu1 %v4002_v61  ;;  %2245 = vmatmul.mubr.f32.vlgmr.msra.gmra.mrb[18].mxu0 %v5941_v23 }
 0x145   :  { %3955 = vmatpush3.bf16.msra.mxu0 %v3954_v60  ;;  %3298 = vmatprep.mubr.msk.f32.mxu0 %vm4003_vm0, %v4004_v0 }
 0x146   :  { %2315 = vmatmul.mubr.f32.vlgmr.msra.gmra.mrb[18].mxu1 %v5950_v27  ;;  %3956 = vmatprep.subr.bf16.mxu0 %v4002_v61 }
 0x147   :  { %3305 = vmatprep.mubr.msk.f32.mxu1 %vm4003_vm0, %v4004_v0  ;;  %3961 = vmatpush3.bf16.msra.mxu1 %v3960_v31 }
 0x148   :  { %3308 = vmatprep.subr.mxu1 %v4004_v0 }
 0x149   :  { %3958 = vmatpush3.bf16.msra.mxu0 %v3957_v63 }
 0x14c   :  { %3299 = vmatmul.mubr.msk.f32.vlgmr.msra.gmra.mrb[20].mxu0 %vm917_vm1, %v2574_v1 }
 0x157   :  { %v2822_v23 = vpop.f32.mrb[6].mxu0 }
 0x158   :  { %v2823_v2 = vpop.f32.mrb[7].mxu0 }
 0x159   :  { %v2857_v27 = vpop.f32.mrb[6].mxu1  ;;  %v2824_v3 = vadd.f32 %v2823_v2, %v2822_v23  ;;  %v2475_v23 = vld [vmem:[%s6171_s5] sm:$0xff]  ;;  %s3977_s5 = scalar_lea.vmem %s2566_s21, 32 }
 0x15a   :  { %v2858_v4 = vpop.f32.mrb[7].mxu1  ;;  %v2576_v2 = vld [vmem:[%s6170_s4] ss:$0 sm:$0xff]  ;;  %p3978_p0 = scmp.ne.s32.totalorder %s2566_s21, %s3977_s5  ;;  %p3983_p2 = scmp.lt.s32.totalorder %s3977_s5, %s3977_s5 }
 0x15b   :  { %v2859_v5 = vadd.f32 %v2858_v4, %v2857_v27  ;;  %v1407_v6 = vadd.f32 %v2824_v3, %v1337_v41 }
 0x15c   :  { %p3984_p3 = por %p3983_p2, %p3982_p1 }
 0x15d   :  { %v1477_v8 = vadd.f32 %v2859_v5, %v1407_v6  ;;  %v2578_v6 = vld [vmem:[%s6172_s6] ss:$0 sm:$0xff] }
 0x15e   :  { %p3985_p4 = pnand %p3984_p3, %p3978_p0 }
 0x177   :  { %v2892_v7 = vpop.f32.mrb[8].mxu0 }
 0x178   :  { %v2893_v9 = vpop.f32.mrb[9].mxu0 }
 0x179   :  { %v2927_v26 = vpop.f32.mrb[8].mxu1  ;;  %v2894_v12 = vadd.f32 %v2893_v9, %v2892_v7 }
 0x17a   :  { %v2928_v13 = vpop.f32.mrb[9].mxu1 }
 0x17b   :  { %v2929_v14 = vadd.f32 %v2928_v13, %v2927_v26  ;;  %v1547_v15 = vadd.f32 %v2894_v12, %v1477_v8 }
 0x17d   :  { %v1617_v16 = vadd.f32 %v2929_v14, %v1547_v15 }
 0x197   :  { %v2962_v17 = vpop.f32.mrb[10].mxu0 }
 0x198   :  { %v2963_v18 = vpop.f32.mrb[11].mxu0 }
 0x199   :  { %v2997_v19 = vpop.f32.mrb[10].mxu1  ;;  %v2964_v20 = vadd.f32 %v2963_v18, %v2962_v17 }
 0x19a   :  { %v2998_v21 = vpop.f32.mrb[11].mxu1 }
 0x19b   :  { %v2999_v22 = vadd.f32 %v2998_v21, %v2997_v19  ;;  %v1687_v24 = vadd.f32 %v2964_v20, %v1617_v16 }
 0x19d   :  { %v1757_v25 = vadd.f32 %v2999_v22, %v1687_v24 }
 0x1b7   :  { %v3032_v30 = vpop.f32.mrb[12].mxu0 }
 0x1b8   :  { %v3033_v33 = vpop.f32.mrb[13].mxu0 }
 0x1b9   :  { %v3067_v43 = vpop.f32.mrb[12].mxu1  ;;  %v3034_v10 = vadd.f32 %v3033_v33, %v3032_v30 }
 0x1ba   :  { %v3068_v34 = vpop.f32.mrb[13].mxu1 }
 0x1bb   :  { %v3069_v35 = vadd.f32 %v3068_v34, %v3067_v43  ;;  %v1827_v36 = vadd.f32 %v3034_v10, %v1757_v25 }
 0x1bd   :  { %v1897_v37 = vadd.f32 %v3069_v35, %v1827_v36 }
 0x1d7   :  { %v3102_v38 = vpop.f32.mrb[14].mxu0 }
 0x1d8   :  { %v3103_v40 = vpop.f32.mrb[15].mxu0 }
 0x1d9   :  { %v3137_v42 = vpop.f32.mrb[14].mxu1  ;;  %v3104_v44 = vadd.f32 %v3103_v40, %v3102_v38 }
 0x1da   :  { %v3138_v45 = vpop.f32.mrb[15].mxu1 }
 0x1db   :  { %v3139_v46 = vadd.f32 %v3138_v45, %v3137_v42  ;;  %v1967_v52 = vadd.f32 %v3104_v44, %v1897_v37 }
 0x1dd   :  { %v2037_v47 = vadd.f32 %v3139_v46, %v1967_v52 }
 0x1f7   :  { %v3172_v48 = vpop.f32.mrb[16].mxu0 }
 0x1f8   :  { %v3173_v49 = vpop.f32.mrb[17].mxu0 }
 0x1f9   :  { %v3207_v39 = vpop.f32.mrb[16].mxu1  ;;  %v3174_v50 = vadd.f32 %v3173_v49, %v3172_v48 }
 0x1fa   :  { %v3208_v53 = vpop.f32.mrb[17].mxu1 }
 0x1fb   :  { %v3209_v54 = vadd.f32 %v3208_v53, %v3207_v39  ;;  %v2107_v55 = vadd.f32 %v3174_v50, %v2037_v47 }
 0x1fd   :  { %v2177_v56 = vadd.f32 %v3209_v54, %v2107_v55 }
 0x217   :  { %v3242_v57 = vpop.f32.mrb[18].mxu0 }
 0x218   :  { %v3243_v41 = vpop.f32.mrb[19].mxu0 }
 0x219   :  { %v3277_v58 = vpop.f32.mrb[18].mxu1  ;;  %v3244_v59 = vadd.f32 %v3243_v41, %v3242_v57 }
 0x21a   :  { %v3278_v11 = vpop.f32.mrb[19].mxu1 }
 0x21b   :  { %v3279_v51 = vadd.f32 %v3278_v11, %v3277_v58  ;;  %v2247_v60 = vadd.f32 %v3244_v59, %v2177_v56 }
 0x21d   :  { %v2317_v61 = vadd.f32 %v3279_v51, %v2247_v60 }
 0x21f   :  { %v2386_v62 = vpop.f32.mrb[20].mxu0 }
 0x220   :  { %v2387_v32 = vadd.f32 %v2386_v62, %v2317_v61  ;;  %v3300_v63 = vpop.f32.mrb[21].mxu0 }
 0x222   :  { %v2390_v1 = vmax.f32 %v2387_v32, 0.0 }
 0x224   :  { %3306 = vmatmul.mubr.msk.f32.vlgmr.msra.gmra.mrb[20].mxu1 %vm2400_vm2, %v2390_v1 }
 0x225   :  { %3310 = vmatprep.mubr.msk.f32.mxu1 %vm4003_vm0, %v4004_v0  ;;  %3309 = vmatpush3.msra.mxu1 %v2475_v23 }
 0x2f7   :  { %v2470_v27 = vpop.f32.mrb[20].mxu1 }
 0x2f8   :  { %v2471_v3 = vadd.f32 %v2576_v2, %v2470_v27  ;;  %v3307_v4 = vpop.f32.mrb[21].mxu1 }
 0x2fa   :  { %v2474_v5 = vmax.f32 %v2471_v3, 0.0 }
 0x2fc   :  { %3311 = vmatmul.mubr.msk.f32.vlgmr.msra.gmra.mrb[22].mxu1 %vm2483_vm3, %v2474_v5 }
 0x3cf   :  { %v2553_v0 = vpop.f32.mrb[22].mxu1 }
 0x3d0   :  { %v2554_v8 = vadd.f32 %v2578_v6, %v2553_v0  ;;  %v3312_v7 = vpop.f32.mrb[23].mxu1 }
 0x3d2   :  { %2558 = vst.msk [vmem:[#allocation2] sm:$0x3] %vm2557_vm4, %v2554_v8 }
 0x3d3   :  { %3988 = shalt.err (!%p3985_p4)
}
 0x3d4   :  { %s3989_s23 = scalar_lea.hbm %s6173_s7, 32 }
 0x3d5   :  { %p3990_p5 = scmp.ne.s32.totalorder %s6173_s7, %s3989_s23  ;;  %p3993_p6 = scmp.lt.u32.totalorder %s3989_s23, %s6173_s7 }
 0x3d7   :  { %p3995_p7 = pnand %p3993_p6, %p3990_p5 }
 0x3d9   :  { %3998 = shalt.err (!%p3995_p7)
}
 0x3da   :  { %2568 = dma.vmem_to_hbm [thread:$0]  %s2566_s21, 32, %s6173_s7, [#allocation3]  }
 0x3db   :  { %3999 = dma.done.wait [#allocation3], 32  }
 0x3dc   :  { %4000 = vsyncadd [#allocation3], 4294967264 }
 0x3dd   :  { %2572 = vsyncpa [#allocation3], 1 }

</bundles_post_ra>
